<compile_context>
chip_gen: v7x
topology: tpu7x:2x2x1
jax: 0.10.0
libtpu: 0.0.40
codegen_flags: <defaults>
</compile_context>

<pallas_src>
import jax
import jax.numpy as jnp
from jax import lax
from jax.experimental import pallas as pl
from jax.experimental.pallas import tpu as pltpu


def make_rdb_kernel(H, W, G0, G, C, compute_dtype):
    Cin_last = G0 + max(C - 1, 0) * G   # widest conv input; pad only needs this
    n_in = 1 + 2 * C + 2                # x, (w_c, b_c) * C, lff_w, lff_b

    def kernel(*refs):
        in_refs = refs[:n_in]
        out_ref = refs[n_in]
        pad_ref = refs[n_in + 1]        # (H+2, W+2, Cin_last) padded features
        col_ref = refs[n_in + 2]        # (H+2, W, 3*Cin_last) dx-staged im2col

        x_ref = in_refs[0]
        lff_w_ref = in_refs[1 + 2 * C]  # (Ctot, G0)
        lff_b_ref = in_refs[2 + 2 * C]  # (1, G0)

        x = x_ref[0].astype(jnp.float32)          # (H, W, G0)
        x_flat = x.reshape(H * W, G0)             # f32, kept for residual

        # Zero only the 1-pixel border; the interior is always fully written.
        zrow = jnp.zeros((1, W + 2, Cin_last), compute_dtype)
        zcol = jnp.zeros((H + 2, 1, Cin_last), compute_dtype)
        pad_ref[0:1, :, :] = zrow
        pad_ref[H + 1:H + 2, :, :] = zrow
        pad_ref[:, 0:1, :] = zcol
        pad_ref[:, W + 1:W + 2, :] = zcol

        # Input features go straight into the padded buffer interior.
        pad_ref[1:H + 1, 1:W + 1, 0:G0] = x.astype(compute_dtype)

        # LFF accumulated incrementally: 1x1 conv = sum of per-slab matmuls.
        lff_acc = jnp.dot(x_flat.astype(compute_dtype), lff_w_ref[0:G0, :],
                          preferred_element_type=jnp.float32)

        for c in range(C):
            cin = G0 + c * G
            w_ref = in_refs[1 + 2 * c]            # (3, 3*cin, G): [dy, dx*cin+i, o]
            b_ref = in_refs[2 + 2 * c]            # (1, G)

            # Stage the 3 dx-shifted views once per layer (the awkward
            # sublane-shift direction); dy shifts are free leading-dim offsets.
            for dx in range(3):
                col_ref[:, :, dx * cin:(dx + 1) * cin] = (
                    pad_ref[0:H + 2, dx:dx + W, 0:cin])

            # 3 fat matmuls with K = 3*cin instead of 9 thin K = cin matmuls.
            acc = None
            for dy in range(3):
                lhs = col_ref[dy:dy + H, :, 0:3 * cin].reshape(H * W, 3 * cin)
                d = jnp.dot(lhs, w_ref[dy], preferred_element_type=jnp.float32)
                acc = d if acc is None else acc + d

            out = jnp.maximum(acc + b_ref[...], 0.0)      # f32 bias + ReLU

            # Concat-by-construction: new channels go straight into the padded
            # buffer.  The last layer's output is only consumed by LFF below,
            # so skip the write-back entirely.
            if c < C - 1:
                pad_ref[1:H + 1, 1:W + 1, cin:cin + G] = (
                    out.reshape(H, W, G).astype(compute_dtype))

            # Per-slab LFF contribution while `out` is still live in registers.
            lff_acc = lff_acc + jnp.dot(
                out.astype(compute_dtype), lff_w_ref[cin:cin + G, :],
                preferred_element_type=jnp.float32)

        # Bias + residual in f32.
        res = lff_acc + lff_b_ref[...] + x_flat
        out_ref[0] = res.reshape(H, W, G0).astype(out_ref.dtype)

    return kernel


def rdb_pallas(x_nchw, conv_ws, conv_bs, lff_w, lff_b, G0, G, C,
               compute_dtype=jnp.float32):
    """x_nchw: (N, G0, H, W).  conv_ws[c]: (G, G0+c*G, 3, 3) OIHW.  Returns NCHW.

    compute_dtype: dtype used for staged activations and MXU operands
    (jnp.float32 for exact/v5e, jnp.bfloat16 for v6e/v7x throughput);
    accumulation, bias, ReLU and residual are always f32.
    """
    N, _, H, W = x_nchw.shape
    Ctot = G0 + C * G
    Cin_last = G0 + max(C - 1, 0) * G

    # Boundary-only transpose; a full RDN graph should stay NHWC throughout.
    x_nhwc = jnp.transpose(x_nchw, (0, 2, 3, 1)).astype(jnp.float32)

    kernel_args = [x_nhwc]
    in_specs = [pl.BlockSpec((1, H, W, G0), lambda n: (n, 0, 0, 0))]
    for c in range(C):
        cin = G0 + c * G
        # OIHW -> HWIO -> (3, 3*cin, G) with dx-major cin blocks per dy,
        # matching the dx-staged im2col slab ordering in the kernel.
        w_hwio = jnp.transpose(conv_ws[c], (2, 3, 1, 0))
        wk = w_hwio.reshape(3, 3 * cin, G).astype(compute_dtype)
        b2d = conv_bs[c].reshape(1, G).astype(jnp.float32)
        kernel_args += [wk, b2d]
        in_specs += [
            pl.BlockSpec((3, 3 * cin, G), lambda n: (0, 0, 0)),
            pl.BlockSpec((1, G), lambda n: (0, 0)),
        ]
    # LFF 1x1 conv: (G0, Ctot, 1, 1) -> (Ctot, G0)
    lff_w2d = jnp.transpose(lff_w[:, :, 0, 0], (1, 0)).astype(compute_dtype)
    lff_b2d = lff_b.reshape(1, G0).astype(jnp.float32)
    kernel_args += [lff_w2d, lff_b2d]
    in_specs += [
        pl.BlockSpec((Ctot, G0), lambda n: (0, 0)),
        pl.BlockSpec((1, G0), lambda n: (0, 0)),
    ]

    kernel = make_rdb_kernel(H, W, G0, G, C, compute_dtype)

    out_nhwc = pl.pallas_call(
        kernel,
        out_shape=jax.ShapeDtypeStruct((N, H, W, G0), jnp.float32),
        grid_spec=pltpu.PrefetchScalarGridSpec(
            num_scalar_prefetch=0,
            grid=(N,),
            in_specs=in_specs,
            out_specs=pl.BlockSpec((1, H, W, G0), lambda n: (n, 0, 0, 0)),
            scratch_shapes=[
                pltpu.VMEM((H + 2, W + 2, Cin_last), compute_dtype),
                pltpu.VMEM((H + 2, W, 3 * Cin_last), compute_dtype),
            ],
        ),
        compiler_params=pltpu.CompilerParams(
            dimension_semantics=("parallel",)),
    )(*kernel_args)

    return jnp.transpose(out_nhwc, (0, 3, 1, 2))


def rdb_reference(x_nchw, conv_ws, conv_bs, lff_w, lff_b, G0, G, C):
    """Pure-JAX reference in NCHW, mirroring the PyTorch module exactly."""
    feat = x_nchw
    for c in range(C):
        out = lax.conv_general_dilated(
            feat, conv_ws[c], window_strides=(1, 1), padding=((1, 1), (1, 1)),
            dimension_numbers=("NCHW", "OIHW", "NCHW"))
        out = out + conv_bs[c][None, :, None, None]
        out = jnp.maximum(out, 0.0)
        feat = jnp.concatenate([feat, out], axis=1)
    lff = lax.conv_general_dilated(
        feat, lff_w, window_strides=(1, 1), padding=((0, 0), (0, 0)),
        dimension_numbers=("NCHW", "OIHW", "NCHW"))
    lff = lff + lff_b[None, :, None, None]
    return lff + x_nchw


if __name__ == "__main__":
    N, G0, G, C = 2, 8, 4, 3
    H = W = 16
    Ctot = G0 + C * G

    key = jax.random.PRNGKey(0)
    keys = jax.random.split(key, 2 * C + 3)

    x = jax.random.normal(keys[0], (N, G0, H, W), dtype=jnp.float32)

    conv_ws, conv_bs = [], []
    for c in range(C):
        cin = G0 + c * G
        conv_ws.append(0.1 * jax.random.normal(keys[1 + 2 * c], (G, cin, 3, 3),
                                               dtype=jnp.float32))
        conv_bs.append(0.05 * jax.random.normal(keys[2 + 2 * c], (G,),
                                                dtype=jnp.float32))
    lff_w = 0.1 * jax.random.normal(keys[1 + 2 * C], (G0, Ctot, 1, 1),
                                    dtype=jnp.float32)
    lff_b = 0.05 * jax.random.normal(keys[2 + 2 * C], (G0,), dtype=jnp.float32)

    ref = rdb_reference(x, conv_ws, conv_bs, lff_w, lff_b, G0, G, C)

    # f32 staging (exact path; preferred on v5e): tight tolerance.
    out_f32 = jax.block_until_ready(
        rdb_pallas(x, conv_ws, conv_bs, lff_w, lff_b, G0, G, C,
                   compute_dtype=jnp.float32))
    assert out_f32.shape == (N, G0, H, W)
    assert jnp.allclose(out_f32, ref, atol=1e-4, rtol=1e-4), (
        float(jnp.max(jnp.abs(out_f32 - ref))))

    # bf16 staging (v6e/v7x fast path; f32 accumulation): looser tolerance.
    out_bf16 = jax.block_until_ready(
        rdb_pallas(x, conv_ws, conv_bs, lff_w, lff_b, G0, G, C,
                   compute_dtype=jnp.bfloat16))
    assert jnp.allclose(out_bf16, ref, atol=5e-2, rtol=5e-2), (
        float(jnp.max(jnp.abs(out_bf16 - ref))))

    print("KERNEL_OK")
</pallas_src>

<mosaic_0001>
module attributes {stable_mosaic.version = 11 : i64} {
  func.func @kernel(%arg0: i32, %arg1: memref<1x16x16x8xf32, #tpu.memory_space<vmem>>, %arg2: memref<3x24x4xf32, #tpu.memory_space<vmem>>, %arg3: memref<1x4xf32, #tpu.memory_space<vmem>>, %arg4: memref<3x36x4xf32, #tpu.memory_space<vmem>>, %arg5: memref<1x4xf32, #tpu.memory_space<vmem>>, %arg6: memref<3x48x4xf32, #tpu.memory_space<vmem>>, %arg7: memref<1x4xf32, #tpu.memory_space<vmem>>, %arg8: memref<20x8xf32, #tpu.memory_space<vmem>>, %arg9: memref<1x8xf32, #tpu.memory_space<vmem>>, %arg10: memref<1x16x16x8xf32, #tpu.memory_space<vmem>>, %arg11: memref<18x18x16xf32, #tpu.memory_space<vmem>>, %arg12: memref<18x16x48xf32, #tpu.memory_space<vmem>>) attributes {dimension_semantics = [#tpu.dimension_semantics<parallel>], iteration_bounds = array<i64: 2>, scalar_prefetch = 0 : i64, scratch_operands = 2 : i64, tpu.core_type = #tpu.core_type<tc>, window_params = [{transform_indices = @transform_0, window_bounds = array<i64: 1, 16, 16, 8>}, {pipeline_mode = #tpu.pipeline_mode<synchronous>, transform_indices = @transform_1, window_bounds = array<i64: 3, 24, 4>}, {pipeline_mode = #tpu.pipeline_mode<synchronous>, transform_indices = @transform_2, window_bounds = array<i64: 1, 4>}, {pipeline_mode = #tpu.pipeline_mode<synchronous>, transform_indices = @transform_3, window_bounds = array<i64: 3, 36, 4>}, {pipeline_mode = #tpu.pipeline_mode<synchronous>, transform_indices = @transform_4, window_bounds = array<i64: 1, 4>}, {pipeline_mode = #tpu.pipeline_mode<synchronous>, transform_indices = @transform_5, window_bounds = array<i64: 3, 48, 4>}, {pipeline_mode = #tpu.pipeline_mode<synchronous>, transform_indices = @transform_6, window_bounds = array<i64: 1, 4>}, {pipeline_mode = #tpu.pipeline_mode<synchronous>, transform_indices = @transform_7, window_bounds = array<i64: 20, 8>}, {pipeline_mode = #tpu.pipeline_mode<synchronous>, transform_indices = @transform_8, window_bounds = array<i64: 1, 8>}, {transform_indices = @transform_9, window_bounds = array<i64: 1, 16, 16, 8>}]} {
    %c0 = arith.constant 0 : index
    %c0_0 = arith.constant 0 : index
    %c0_1 = arith.constant 0 : index
    %c0_2 = arith.constant 0 : index
    %0 = vector.load %arg1[%c0, %c0_0, %c0_1, %c0_2] : memref<1x16x16x8xf32, #tpu.memory_space<vmem>>, vector<1x16x16x8xf32>
    %1 = vector.shape_cast %0 : vector<1x16x16x8xf32> to vector<16x16x8xf32>
    %2 = vector.shape_cast %1 : vector<16x16x8xf32> to vector<256x8xf32>
    %cst = arith.constant 0.000000e+00 : f32
    %3 = vector.broadcast %cst : f32 to vector<1x18x16xf32>
    %cst_3 = arith.constant 0.000000e+00 : f32
    %4 = vector.broadcast %cst_3 : f32 to vector<18x1x16xf32>
    %c0_4 = arith.constant 0 : index
    %c0_5 = arith.constant 0 : index
    %c0_6 = arith.constant 0 : index
    %5 = vector.load %arg11[%c0_4, %c0_5, %c0_6] : memref<18x18x16xf32, #tpu.memory_space<vmem>>, vector<1x18x16xf32>
    tpu.vector_store %arg11[%c0_4, %c0_5, %c0_6], %3 {strides = array<i32>} : memref<18x18x16xf32, #tpu.memory_space<vmem>>, vector<1x18x16xf32>,
    %c17 = arith.constant 17 : index
    %c0_7 = arith.constant 0 : index
    %c0_8 = arith.constant 0 : index
    %6 = vector.load %arg11[%c17, %c0_7, %c0_8] : memref<18x18x16xf32, #tpu.memory_space<vmem>>, vector<1x18x16xf32>
    tpu.vector_store %arg11[%c17, %c0_7, %c0_8], %3 {strides = array<i32>} : memref<18x18x16xf32, #tpu.memory_space<vmem>>, vector<1x18x16xf32>,
    %c0_9 = arith.constant 0 : index
    %c0_10 = arith.constant 0 : index
    %c0_11 = arith.constant 0 : index
    %7 = vector.load %arg11[%c0_9, %c0_10, %c0_11] : memref<18x18x16xf32, #tpu.memory_space<vmem>>, vector<18x1x16xf32>
    tpu.vector_store %arg11[%c0_9, %c0_10, %c0_11], %4 {strides = array<i32>} : memref<18x18x16xf32, #tpu.memory_space<vmem>>, vector<18x1x16xf32>,
    %c0_12 = arith.constant 0 : index
    %c17_13 = arith.constant 17 : index
    %c0_14 = arith.constant 0 : index
    %8 = vector.load %arg11[%c0_12, %c17_13, %c0_14] : memref<18x18x16xf32, #tpu.memory_space<vmem>>, vector<18x1x16xf32>
    tpu.vector_store %arg11[%c0_12, %c17_13, %c0_14], %4 {strides = array<i32>} : memref<18x18x16xf32, #tpu.memory_space<vmem>>, vector<18x1x16xf32>,
    %c1 = arith.constant 1 : index
    %c1_15 = arith.constant 1 : index
    %c0_16 = arith.constant 0 : index
    %9 = vector.load %arg11[%c1, %c1_15, %c0_16] : memref<18x18x16xf32, #tpu.memory_space<vmem>>, vector<16x16x8xf32>
    tpu.vector_store %arg11[%c1, %c1_15, %c0_16], %1 {strides = array<i32>} : memref<18x18x16xf32, #tpu.memory_space<vmem>>, vector<16x16x8xf32>,
    %c0_17 = arith.constant 0 : index
    %c0_18 = arith.constant 0 : index
    %10 = vector.load %arg8[%c0_17, %c0_18] : memref<20x8xf32, #tpu.memory_space<vmem>>, vector<8x8xf32>
    %cst_19 = arith.constant dense<0.000000e+00> : vector<256x8xf32>
    %11 = tpu.matmul %2, %10, %cst_19 {dimension_numbers = #tpu.dot_dimension_numbers<[1], [0], [0], [1], [0, 0, 1, 1], [], []>} : vector<256x8xf32>, vector<8x8xf32>, vector<256x8xf32> -> vector<256x8xf32>
    %c0_20 = arith.constant 0 : index
    %c0_21 = arith.constant 0 : index
    %c0_22 = arith.constant 0 : index
    %12 = vector.load %arg11[%c0_20, %c0_21, %c0_22] : memref<18x18x16xf32, #tpu.memory_space<vmem>>, vector<18x16x8xf32>
    %c0_23 = arith.constant 0 : index
    %c0_24 = arith.constant 0 : index
    %c0_25 = arith.constant 0 : index
    %13 = vector.load %arg12[%c0_23, %c0_24, %c0_25] : memref<18x16x48xf32, #tpu.memory_space<vmem>>, vector<18x16x8xf32>
    tpu.vector_store %arg12[%c0_23, %c0_24, %c0_25], %12 {strides = array<i32>} : memref<18x16x48xf32, #tpu.memory_space<vmem>>, vector<18x16x8xf32>,
    %c0_26 = arith.constant 0 : index
    %c1_27 = arith.constant 1 : index
    %c0_28 = arith.constant 0 : index
    %14 = vector.load %arg11[%c0_26, %c1_27, %c0_28] : memref<18x18x16xf32, #tpu.memory_space<vmem>>, vector<18x16x8xf32>
    %c0_29 = arith.constant 0 : index
    %c0_30 = arith.constant 0 : index
    %c8 = arith.constant 8 : index
    %15 = vector.load %arg12[%c0_29, %c0_30, %c8] : memref<18x16x48xf32, #tpu.memory_space<vmem>>, vector<18x16x8xf32>
    tpu.vector_store %arg12[%c0_29, %c0_30, %c8], %14 {strides = array<i32>} : memref<18x16x48xf32, #tpu.memory_space<vmem>>, vector<18x16x8xf32>,
    %c0_31 = arith.constant 0 : index
    %c2 = arith.constant 2 : index
    %c0_32 = arith.constant 0 : index
    %16 = vector.load %arg11[%c0_31, %c2, %c0_32] : memref<18x18x16xf32, #tpu.memory_space<vmem>>, vector<18x16x8xf32>
    %c0_33 = arith.constant 0 : index
    %c0_34 = arith.constant 0 : index
    %c16 = arith.constant 16 : index
    %17 = vector.load %arg12[%c0_33, %c0_34, %c16] : memref<18x16x48xf32, #tpu.memory_space<vmem>>, vector<18x16x8xf32>
    tpu.vector_store %arg12[%c0_33, %c0_34, %c16], %16 {strides = array<i32>} : memref<18x16x48xf32, #tpu.memory_space<vmem>>, vector<18x16x8xf32>,
    %c0_35 = arith.constant 0 : index
    %c0_36 = arith.constant 0 : index
    %c0_37 = arith.constant 0 : index
    %18 = vector.load %arg12[%c0_35, %c0_36, %c0_37] : memref<18x16x48xf32, #tpu.memory_space<vmem>>, vector<16x16x24xf32>
    %19 = vector.shape_cast %18 : vector<16x16x24xf32> to vector<256x24xf32>
    %c0_38 = arith.constant 0 : index
    %c0_39 = arith.constant 0 : index
    %c0_40 = arith.constant 0 : index
    %20 = vector.load %arg2[%c0_38, %c0_39, %c0_40] : memref<3x24x4xf32, #tpu.memory_space<vmem>>, vector<1x24x4xf32>
    %21 = vector.shape_cast %20 : vector<1x24x4xf32> to vector<24x4xf32>
    %cst_41 = arith.constant dense<0.000000e+00> : vector<256x4xf32>
    %22 = tpu.matmul %19, %21, %cst_41 {dimension_numbers = #tpu.dot_dimension_numbers<[1], [0], [0], [1], [0, 0, 1, 1], [], []>} : vector<256x24xf32>, vector<24x4xf32>, vector<256x4xf32> -> vector<256x4xf32>
    %c1_42 = arith.constant 1 : index
    %c0_43 = arith.constant 0 : index
    %c0_44 = arith.constant 0 : index
    %23 = vector.load %arg12[%c1_42, %c0_43, %c0_44] : memref<18x16x48xf32, #tpu.memory_space<vmem>>, vector<16x16x24xf32>
    %24 = vector.shape_cast %23 : vector<16x16x24xf32> to vector<256x24xf32>
    %c1_45 = arith.constant 1 : index
    %c0_46 = arith.constant 0 : index
    %c0_47 = arith.constant 0 : index
    %25 = vector.load %arg2[%c1_45, %c0_46, %c0_47] : memref<3x24x4xf32, #tpu.memory_space<vmem>>, vector<1x24x4xf32>
    %26 = vector.shape_cast %25 : vector<1x24x4xf32> to vector<24x4xf32>
    %cst_48 = arith.constant dense<0.000000e+00> : vector<256x4xf32>
    %27 = tpu.matmul %24, %26, %cst_48 {dimension_numbers = #tpu.dot_dimension_numbers<[1], [0], [0], [1], [0, 0, 1, 1], [], []>} : vector<256x24xf32>, vector<24x4xf32>, vector<256x4xf32> -> vector<256x4xf32>
    %28 = arith.addf %22, %27 : vector<256x4xf32>
    %c2_49 = arith.constant 2 : index
    %c0_50 = arith.constant 0 : index
    %c0_51 = arith.constant 0 : index
    %29 = vector.load %arg12[%c2_49, %c0_50, %c0_51] : memref<18x16x48xf32, #tpu.memory_space<vmem>>, vector<16x16x24xf32>
    %30 = vector.shape_cast %29 : vector<16x16x24xf32> to vector<256x24xf32>
    %c2_52 = arith.constant 2 : index
    %c0_53 = arith.constant 0 : index
    %c0_54 = arith.constant 0 : index
    %31 = vector.load %arg2[%c2_52, %c0_53, %c0_54] : memref<3x24x4xf32, #tpu.memory_space<vmem>>, vector<1x24x4xf32>
    %32 = vector.shape_cast %31 : vector<1x24x4xf32> to vector<24x4xf32>
    %cst_55 = arith.constant dense<0.000000e+00> : vector<256x4xf32>
    %33 = tpu.matmul %30, %32, %cst_55 {dimension_numbers = #tpu.dot_dimension_numbers<[1], [0], [0], [1], [0, 0, 1, 1], [], []>} : vector<256x24xf32>, vector<24x4xf32>, vector<256x4xf32> -> vector<256x4xf32>
    %34 = arith.addf %28, %33 : vector<256x4xf32>
    %c0_56 = arith.constant 0 : index
    %c0_57 = arith.constant 0 : index
    %35 = vector.load %arg3[%c0_56, %c0_57] : memref<1x4xf32, #tpu.memory_space<vmem>>, vector<1x4xf32>
    %36 = vector.broadcast %35 : vector<1x4xf32> to vector<256x4xf32>
    %37 = arith.addf %34, %36 : vector<256x4xf32>
    %cst_58 = arith.constant 0.000000e+00 : f32
    %38 = vector.broadcast %cst_58 : f32 to vector<256x4xf32>
    %39 = arith.maximumf %37, %38 : vector<256x4xf32>
    %40 = vector.shape_cast %39 : vector<256x4xf32> to vector<16x16x4xf32>
    %c1_59 = arith.constant 1 : index
    %c1_60 = arith.constant 1 : index
    %c8_61 = arith.constant 8 : index
    %41 = vector.load %arg11[%c1_59, %c1_60, %c8_61] : memref<18x18x16xf32, #tpu.memory_space<vmem>>, vector<16x16x4xf32>
    tpu.vector_store %arg11[%c1_59, %c1_60, %c8_61], %40 {strides = array<i32>} : memref<18x18x16xf32, #tpu.memory_space<vmem>>, vector<16x16x4xf32>,
    %c8_62 = arith.constant 8 : index
    %c0_63 = arith.constant 0 : index
    %42 = vector.load %arg8[%c8_62, %c0_63] : memref<20x8xf32, #tpu.memory_space<vmem>>, vector<4x8xf32>
    %cst_64 = arith.constant dense<0.000000e+00> : vector<256x8xf32>
    %43 = tpu.matmul %39, %42, %cst_64 {dimension_numbers = #tpu.dot_dimension_numbers<[1], [0], [0], [1], [0, 0, 1, 1], [], []>} : vector<256x4xf32>, vector<4x8xf32>, vector<256x8xf32> -> vector<256x8xf32>
    %44 = arith.addf %11, %43 : vector<256x8xf32>
    %c0_65 = arith.constant 0 : index
    %c0_66 = arith.constant 0 : index
    %c0_67 = arith.constant 0 : index
    %45 = vector.load %arg11[%c0_65, %c0_66, %c0_67] : memref<18x18x16xf32, #tpu.memory_space<vmem>>, vector<18x16x12xf32>
    %c0_68 = arith.constant 0 : index
    %c0_69 = arith.constant 0 : index
    %c0_70 = arith.constant 0 : index
    %46 = vector.load %arg12[%c0_68, %c0_69, %c0_70] : memref<18x16x48xf32, #tpu.memory_space<vmem>>, vector<18x16x12xf32>
    tpu.vector_store %arg12[%c0_68, %c0_69, %c0_70], %45 {strides = array<i32>} : memref<18x16x48xf32, #tpu.memory_space<vmem>>, vector<18x16x12xf32>,
    %c0_71 = arith.constant 0 : index
    %c1_72 = arith.constant 1 : index
    %c0_73 = arith.constant 0 : index
    %47 = vector.load %arg11[%c0_71, %c1_72, %c0_73] : memref<18x18x16xf32, #tpu.memory_space<vmem>>, vector<18x16x12xf32>
    %c0_74 = arith.constant 0 : index
    %c0_75 = arith.constant 0 : index
    %c12 = arith.constant 12 : index
    %48 = vector.load %arg12[%c0_74, %c0_75, %c12] : memref<18x16x48xf32, #tpu.memory_space<vmem>>, vector<18x16x12xf32>
    tpu.vector_store %arg12[%c0_74, %c0_75, %c12], %47 {strides = array<i32>} : memref<18x16x48xf32, #tpu.memory_space<vmem>>, vector<18x16x12xf32>,
    %c0_76 = arith.constant 0 : index
    %c2_77 = arith.constant 2 : index
    %c0_78 = arith.constant 0 : index
    %49 = vector.load %arg11[%c0_76, %c2_77, %c0_78] : memref<18x18x16xf32, #tpu.memory_space<vmem>>, vector<18x16x12xf32>
    %c0_79 = arith.constant 0 : index
    %c0_80 = arith.constant 0 : index
    %c24 = arith.constant 24 : index
    %50 = vector.load %arg12[%c0_79, %c0_80, %c24] : memref<18x16x48xf32, #tpu.memory_space<vmem>>, vector<18x16x12xf32>
    tpu.vector_store %arg12[%c0_79, %c0_80, %c24], %49 {strides = array<i32>} : memref<18x16x48xf32, #tpu.memory_space<vmem>>, vector<18x16x12xf32>,
    %c0_81 = arith.constant 0 : index
    %c0_82 = arith.constant 0 : index
    %c0_83 = arith.constant 0 : index
    %51 = vector.load %arg12[%c0_81, %c0_82, %c0_83] : memref<18x16x48xf32, #tpu.memory_space<vmem>>, vector<16x16x36xf32>
    %52 = vector.shape_cast %51 : vector<16x16x36xf32> to vector<256x36xf32>
    %c0_84 = arith.constant 0 : index
    %c0_85 = arith.constant 0 : index
    %c0_86 = arith.constant 0 : index
    %53 = vector.load %arg4[%c0_84, %c0_85, %c0_86] : memref<3x36x4xf32, #tpu.memory_space<vmem>>, vector<1x36x4xf32>
    %54 = vector.shape_cast %53 : vector<1x36x4xf32> to vector<36x4xf32>
    %cst_87 = arith.constant dense<0.000000e+00> : vector<256x4xf32>
    %55 = tpu.matmul %52, %54, %cst_87 {dimension_numbers = #tpu.dot_dimension_numbers<[1], [0], [0], [1], [0, 0, 1, 1], [], []>} : vector<256x36xf32>, vector<36x4xf32>, vector<256x4xf32> -> vector<256x4xf32>
    %c1_88 = arith.constant 1 : index
    %c0_89 = arith.constant 0 : index
    %c0_90 = arith.constant 0 : index
    %56 = vector.load %arg12[%c1_88, %c0_89, %c0_90] : memref<18x16x48xf32, #tpu.memory_space<vmem>>, vector<16x16x36xf32>
    %57 = vector.shape_cast %56 : vector<16x16x36xf32> to vector<256x36xf32>
    %c1_91 = arith.constant 1 : index
    %c0_92 = arith.constant 0 : index
    %c0_93 = arith.constant 0 : index
    %58 = vector.load %arg4[%c1_91, %c0_92, %c0_93] : memref<3x36x4xf32, #tpu.memory_space<vmem>>, vector<1x36x4xf32>
    %59 = vector.shape_cast %58 : vector<1x36x4xf32> to vector<36x4xf32>
    %cst_94 = arith.constant dense<0.000000e+00> : vector<256x4xf32>
    %60 = tpu.matmul %57, %59, %cst_94 {dimension_numbers = #tpu.dot_dimension_numbers<[1], [0], [0], [1], [0, 0, 1, 1], [], []>} : vector<256x36xf32>, vector<36x4xf32>, vector<256x4xf32> -> vector<256x4xf32>
    %61 = arith.addf %55, %60 : vector<256x4xf32>
    %c2_95 = arith.constant 2 : index
    %c0_96 = arith.constant 0 : index
    %c0_97 = arith.constant 0 : index
    %62 = vector.load %arg12[%c2_95, %c0_96, %c0_97] : memref<18x16x48xf32, #tpu.memory_space<vmem>>, vector<16x16x36xf32>
    %63 = vector.shape_cast %62 : vector<16x16x36xf32> to vector<256x36xf32>
    %c2_98 = arith.constant 2 : index
    %c0_99 = arith.constant 0 : index
    %c0_100 = arith.constant 0 : index
    %64 = vector.load %arg4[%c2_98, %c0_99, %c0_100] : memref<3x36x4xf32, #tpu.memory_space<vmem>>, vector<1x36x4xf32>
    %65 = vector.shape_cast %64 : vector<1x36x4xf32> to vector<36x4xf32>
    %cst_101 = arith.constant dense<0.000000e+00> : vector<256x4xf32>
    %66 = tpu.matmul %63, %65, %cst_101 {dimension_numbers = #tpu.dot_dimension_numbers<[1], [0], [0], [1], [0, 0, 1, 1], [], []>} : vector<256x36xf32>, vector<36x4xf32>, vector<256x4xf32> -> vector<256x4xf32>
    %67 = arith.addf %61, %66 : vector<256x4xf32>
    %c0_102 = arith.constant 0 : index
    %c0_103 = arith.constant 0 : index
    %68 = vector.load %arg5[%c0_102, %c0_103] : memref<1x4xf32, #tpu.memory_space<vmem>>, vector<1x4xf32>
    %69 = vector.broadcast %68 : vector<1x4xf32> to vector<256x4xf32>
    %70 = arith.addf %67, %69 : vector<256x4xf32>
    %cst_104 = arith.constant 0.000000e+00 : f32
    %71 = vector.broadcast %cst_104 : f32 to vector<256x4xf32>
    %72 = arith.maximumf %70, %71 : vector<256x4xf32>
    %73 = vector.shape_cast %72 : vector<256x4xf32> to vector<16x16x4xf32>
    %c1_105 = arith.constant 1 : index
    %c1_106 = arith.constant 1 : index
    %c12_107 = arith.constant 12 : index
    %74 = vector.load %arg11[%c1_105, %c1_106, %c12_107] : memref<18x18x16xf32, #tpu.memory_space<vmem>>, vector<16x16x4xf32>
    tpu.vector_store %arg11[%c1_105, %c1_106, %c12_107], %73 {strides = array<i32>} : memref<18x18x16xf32, #tpu.memory_space<vmem>>, vector<16x16x4xf32>,
    %c12_108 = arith.constant 12 : index
    %c0_109 = arith.constant 0 : index
    %75 = vector.load %arg8[%c12_108, %c0_109] : memref<20x8xf32, #tpu.memory_space<vmem>>, vector<4x8xf32>
    %cst_110 = arith.constant dense<0.000000e+00> : vector<256x8xf32>
    %76 = tpu.matmul %72, %75, %cst_110 {dimension_numbers = #tpu.dot_dimension_numbers<[1], [0], [0], [1], [0, 0, 1, 1], [], []>} : vector<256x4xf32>, vector<4x8xf32>, vector<256x8xf32> -> vector<256x8xf32>
    %77 = arith.addf %44, %76 : vector<256x8xf32>
    %c0_111 = arith.constant 0 : index
    %c0_112 = arith.constant 0 : index
    %c0_113 = arith.constant 0 : index
    %78 = vector.load %arg11[%c0_111, %c0_112, %c0_113] : memref<18x18x16xf32, #tpu.memory_space<vmem>>, vector<18x16x16xf32>
    %c0_114 = arith.constant 0 : index
    %c0_115 = arith.constant 0 : index
    %c0_116 = arith.constant 0 : index
    %79 = vector.load %arg12[%c0_114, %c0_115, %c0_116] : memref<18x16x48xf32, #tpu.memory_space<vmem>>, vector<18x16x16xf32>
    tpu.vector_store %arg12[%c0_114, %c0_115, %c0_116], %78 {strides = array<i32>} : memref<18x16x48xf32, #tpu.memory_space<vmem>>, vector<18x16x16xf32>,
    %c0_117 = arith.constant 0 : index
    %c1_118 = arith.constant 1 : index
    %c0_119 = arith.constant 0 : index
    %80 = vector.load %arg11[%c0_117, %c1_118, %c0_119] : memref<18x18x16xf32, #tpu.memory_space<vmem>>, vector<18x16x16xf32>
    %c0_120 = arith.constant 0 : index
    %c0_121 = arith.constant 0 : index
    %c16_122 = arith.constant 16 : index
    %81 = vector.load %arg12[%c0_120, %c0_121, %c16_122] : memref<18x16x48xf32, #tpu.memory_space<vmem>>, vector<18x16x16xf32>
    tpu.vector_store %arg12[%c0_120, %c0_121, %c16_122], %80 {strides = array<i32>} : memref<18x16x48xf32, #tpu.memory_space<vmem>>, vector<18x16x16xf32>,
    %c0_123 = arith.constant 0 : index
    %c2_124 = arith.constant 2 : index
    %c0_125 = arith.constant 0 : index
    %82 = vector.load %arg11[%c0_123, %c2_124, %c0_125] : memref<18x18x16xf32, #tpu.memory_space<vmem>>, vector<18x16x16xf32>
    %c0_126 = arith.constant 0 : index
    %c0_127 = arith.constant 0 : index
    %c32 = arith.constant 32 : index
    %83 = vector.load %arg12[%c0_126, %c0_127, %c32] : memref<18x16x48xf32, #tpu.memory_space<vmem>>, vector<18x16x16xf32>
    tpu.vector_store %arg12[%c0_126, %c0_127, %c32], %82 {strides = array<i32>} : memref<18x16x48xf32, #tpu.memory_space<vmem>>, vector<18x16x16xf32>,
    %c0_128 = arith.constant 0 : index
    %c0_129 = arith.constant 0 : index
    %c0_130 = arith.constant 0 : index
    %84 = vector.load %arg12[%c0_128, %c0_129, %c0_130] : memref<18x16x48xf32, #tpu.memory_space<vmem>>, vector<16x16x48xf32>
    %85 = vector.shape_cast %84 : vector<16x16x48xf32> to vector<256x48xf32>
    %c0_131 = arith.constant 0 : index
    %c0_132 = arith.constant 0 : index
    %c0_133 = arith.constant 0 : index
    %86 = vector.load %arg6[%c0_131, %c0_132, %c0_133] : memref<3x48x4xf32, #tpu.memory_space<vmem>>, vector<1x48x4xf32>
    %87 = vector.shape_cast %86 : vector<1x48x4xf32> to vector<48x4xf32>
    %cst_134 = arith.constant dense<0.000000e+00> : vector<256x4xf32>
    %88 = tpu.matmul %85, %87, %cst_134 {dimension_numbers = #tpu.dot_dimension_numbers<[1], [0], [0], [1], [0, 0, 1, 1], [], []>} : vector<256x48xf32>, vector<48x4xf32>, vector<256x4xf32> -> vector<256x4xf32>
    %c1_135 = arith.constant 1 : index
    %c0_136 = arith.constant 0 : index
    %c0_137 = arith.constant 0 : index
    %89 = vector.load %arg12[%c1_135, %c0_136, %c0_137] : memref<18x16x48xf32, #tpu.memory_space<vmem>>, vector<16x16x48xf32>
    %90 = vector.shape_cast %89 : vector<16x16x48xf32> to vector<256x48xf32>
    %c1_138 = arith.constant 1 : index
    %c0_139 = arith.constant 0 : index
    %c0_140 = arith.constant 0 : index
    %91 = vector.load %arg6[%c1_138, %c0_139, %c0_140] : memref<3x48x4xf32, #tpu.memory_space<vmem>>, vector<1x48x4xf32>
    %92 = vector.shape_cast %91 : vector<1x48x4xf32> to vector<48x4xf32>
    %cst_141 = arith.constant dense<0.000000e+00> : vector<256x4xf32>
    %93 = tpu.matmul %90, %92, %cst_141 {dimension_numbers = #tpu.dot_dimension_numbers<[1], [0], [0], [1], [0, 0, 1, 1], [], []>} : vector<256x48xf32>, vector<48x4xf32>, vector<256x4xf32> -> vector<256x4xf32>
    %94 = arith.addf %88, %93 : vector<256x4xf32>
    %c2_142 = arith.constant 2 : index
    %c0_143 = arith.constant 0 : index
    %c0_144 = arith.constant 0 : index
    %95 = vector.load %arg12[%c2_142, %c0_143, %c0_144] : memref<18x16x48xf32, #tpu.memory_space<vmem>>, vector<16x16x48xf32>
    %96 = vector.shape_cast %95 : vector<16x16x48xf32> to vector<256x48xf32>
    %c2_145 = arith.constant 2 : index
    %c0_146 = arith.constant 0 : index
    %c0_147 = arith.constant 0 : index
    %97 = vector.load %arg6[%c2_145, %c0_146, %c0_147] : memref<3x48x4xf32, #tpu.memory_space<vmem>>, vector<1x48x4xf32>
    %98 = vector.shape_cast %97 : vector<1x48x4xf32> to vector<48x4xf32>
    %cst_148 = arith.constant dense<0.000000e+00> : vector<256x4xf32>
    %99 = tpu.matmul %96, %98, %cst_148 {dimension_numbers = #tpu.dot_dimension_numbers<[1], [0], [0], [1], [0, 0, 1, 1], [], []>} : vector<256x48xf32>, vector<48x4xf32>, vector<256x4xf32> -> vector<256x4xf32>
    %100 = arith.addf %94, %99 : vector<256x4xf32>
    %c0_149 = arith.constant 0 : index
    %c0_150 = arith.constant 0 : index
    %101 = vector.load %arg7[%c0_149, %c0_150] : memref<1x4xf32, #tpu.memory_space<vmem>>, vector<1x4xf32>
    %102 = vector.broadcast %101 : vector<1x4xf32> to vector<256x4xf32>
    %103 = arith.addf %100, %102 : vector<256x4xf32>
    %cst_151 = arith.constant 0.000000e+00 : f32
    %104 = vector.broadcast %cst_151 : f32 to vector<256x4xf32>
    %105 = arith.maximumf %103, %104 : vector<256x4xf32>
    %c16_152 = arith.constant 16 : index
    %c0_153 = arith.constant 0 : index
    %106 = vector.load %arg8[%c16_152, %c0_153] : memref<20x8xf32, #tpu.memory_space<vmem>>, vector<4x8xf32>
    %cst_154 = arith.constant dense<0.000000e+00> : vector<256x8xf32>
    %107 = tpu.matmul %105, %106, %cst_154 {dimension_numbers = #tpu.dot_dimension_numbers<[1], [0], [0], [1], [0, 0, 1, 1], [], []>} : vector<256x4xf32>, vector<4x8xf32>, vector<256x8xf32> -> vector<256x8xf32>
    %108 = arith.addf %77, %107 : vector<256x8xf32>
    %c0_155 = arith.constant 0 : index
    %c0_156 = arith.constant 0 : index
    %109 = vector.load %arg9[%c0_155, %c0_156] : memref<1x8xf32, #tpu.memory_space<vmem>>, vector<1x8xf32>
    %110 = vector.broadcast %109 : vector<1x8xf32> to vector<256x8xf32>
    %111 = arith.addf %108, %110 : vector<256x8xf32>
    %112 = arith.addf %111, %2 : vector<256x8xf32>
    %113 = vector.shape_cast %112 : vector<256x8xf32> to vector<16x16x8xf32>
    %c0_157 = arith.constant 0 : index
    %c0_158 = arith.constant 0 : index
    %c0_159 = arith.constant 0 : index
    %c0_160 = arith.constant 0 : index
    %114 = vector.load %arg10[%c0_157, %c0_158, %c0_159, %c0_160] : memref<1x16x16x8xf32, #tpu.memory_space<vmem>>, vector<1x16x16x8xf32>
    %115 = vector.shape_cast %114 : vector<1x16x16x8xf32> to vector<16x16x8xf32>
    %116 = vector.shape_cast %113 : vector<16x16x8xf32> to vector<1x16x16x8xf32>
    tpu.vector_store %arg10[%c0_157, %c0_158, %c0_159, %c0_160], %116 {strides = array<i32>} : memref<1x16x16x8xf32, #tpu.memory_space<vmem>>, vector<1x16x16x8xf32>,
    return
  }
  func.func @transform_0(%arg0: i32) -> (i32, i32, i32, i32) {
    %c0_i32 = arith.constant 0 : i32
    %c0_i32_0 = arith.constant 0 : i32
    %c0_i32_1 = arith.constant 0 : i32
    %c0_i32_2 = arith.constant 0 : i32
    return %arg0, %c0_i32, %c0_i32_0, %c0_i32_1 : i32, i32, i32, i32
  }
  func.func @transform_1(%arg0: i32) -> (i32, i32, i32) {
    %c0_i32 = arith.constant 0 : i32
    %c0_i32_0 = arith.constant 0 : i32
    %c0_i32_1 = arith.constant 0 : i32
    %c0_i32_2 = arith.constant 0 : i32
    return %c0_i32, %c0_i32_0, %c0_i32_1 : i32, i32, i32
  }
  func.func @transform_2(%arg0: i32) -> (i32, i32) {
    %c0_i32 = arith.constant 0 : i32
    %c0_i32_0 = arith.constant 0 : i32
    %c0_i32_1 = arith.constant 0 : i32
    return %c0_i32, %c0_i32_0 : i32, i32
  }
  func.func @transform_3(%arg0: i32) -> (i32, i32, i32) {
    %c0_i32 = arith.constant 0 : i32
    %c0_i32_0 = arith.constant 0 : i32
    %c0_i32_1 = arith.constant 0 : i32
    %c0_i32_2 = arith.constant 0 : i32
    return %c0_i32, %c0_i32_0, %c0_i32_1 : i32, i32, i32
  }
  func.func @transform_4(%arg0: i32) -> (i32, i32) {
    %c0_i32 = arith.constant 0 : i32
    %c0_i32_0 = arith.constant 0 : i32
    %c0_i32_1 = arith.constant 0 : i32
    return %c0_i32, %c0_i32_0 : i32, i32
  }
  func.func @transform_5(%arg0: i32) -> (i32, i32, i32) {
    %c0_i32 = arith.constant 0 : i32
    %c0_i32_0 = arith.constant 0 : i32
    %c0_i32_1 = arith.constant 0 : i32
    %c0_i32_2 = arith.constant 0 : i32
    return %c0_i32, %c0_i32_0, %c0_i32_1 : i32, i32, i32
  }
  func.func @transform_6(%arg0: i32) -> (i32, i32) {
    %c0_i32 = arith.constant 0 : i32
    %c0_i32_0 = arith.constant 0 : i32
    %c0_i32_1 = arith.constant 0 : i32
    return %c0_i32, %c0_i32_0 : i32, i32
  }
  func.func @transform_7(%arg0: i32) -> (i32, i32) {
    %c0_i32 = arith.constant 0 : i32
    %c0_i32_0 = arith.constant 0 : i32
    %c0_i32_1 = arith.constant 0 : i32
    return %c0_i32, %c0_i32_0 : i32, i32
  }
  func.func @transform_8(%arg0: i32) -> (i32, i32) {
    %c0_i32 = arith.constant 0 : i32
    %c0_i32_0 = arith.constant 0 : i32
    %c0_i32_1 = arith.constant 0 : i32
    return %c0_i32, %c0_i32_0 : i32, i32
  }
  func.func @transform_9(%arg0: i32) -> (i32, i32, i32, i32) {
    %c0_i32 = arith.constant 0 : i32
    %c0_i32_0 = arith.constant 0 : i32
    %c0_i32_1 = arith.constant 0 : i32
    %c0_i32_2 = arith.constant 0 : i32
    return %arg0, %c0_i32, %c0_i32_0, %c0_i32_1 : i32, i32, i32, i32
  }
}

</mosaic_0001>

<bundles_post_ra>
// kernel: tpu_custom_call.1
= control target key start
LH: loop header
LB: loop body
LE: loop exit
PB: predicated region body
PF: predicated region fallthrough
CT: control target
= control target key end

     0   :  { %s9376_s30 = smov 0   ;;  %s11718_s0 = inlined_call_operand.vmem [shape: f32[2,16,16,8], index: 0, kind: input, shape index: {}]   ;;  %s11719_s1 = inlined_call_operand.vmem [shape: f32[3,24,4], index: 1, kind: input, shape index: {}]   ;;  %s11720_s2 = inlined_call_operand.vmem [shape: f32[1,4], index: 2, kind: input, shape index: {}]   ;;  %s11721_s3 = inlined_call_operand.vmem [shape: f32[3,36,4], index: 3, kind: input, shape index: {}]   ;;  %s11722_s4 = inlined_call_operand.vmem [shape: f32[1,4], index: 4, kind: input, shape index: {}]   ;;  %s11723_s5 = inlined_call_operand.vmem [shape: f32[3,48,4], index: 5, kind: input, shape index: {}]   ;;  %s11724_s6 = inlined_call_operand.vmem [shape: f32[1,4], index: 6, kind: input, shape index: {}]   ;;  %s11725_s7 = inlined_call_operand.vmem [shape: f32[20,8], index: 7, kind: input, shape index: {}]   ;;  %s11726_s8 = inlined_call_operand.vmem [shape: f32[1,8], index: 8, kind: input, shape index: {}]   ;;  %s11727_s9 = inlined_call_operand.vmem [shape: f32[2,16,16,8], index: 9, kind: output, shape index: {}]  }
   0x1 LB: > { %s7291_s10 = sadd.s32 4294967295, %s9318_s30   ;;  %p7295_p0 = scmp.ge.s32.totalorder %s9318_s30, 1  ;;  %s9318_s30 = sphi %s9376_s30, %s19_s30  }
   0x2   : > { %p287_p1 = scmp.lt.s32.totalorder %s9318_s30, 3 }
   0x4   : > { %p288_p2 = pnand %p7295_p0, %p287_p1 }
   0x6   : > { %291 = sbr.rel (%p288_p2) target bundleno = 2166 (0x876), region = 56 }
   0xd   : > { %p9386_p3 = scmp.lt.s32.totalorder %s7291_s10, 1  ;;  %vm374_vm0 = vcmask 122880   ;;  %v9320_v0 = vmov 0.0   ;;  %vm412_vm1 = vcmask 64512   ;;  %vm365_vm2 = vcmask 130048   ;;  %s9321_s16 = smov 8  }
   0xe   : > { %394 = vst.msk [vmem:[#allocation2 + $0x29] sm:$0x1] %vm374_vm0, %v9320_v0  ;;  %376 = vst.msk [vmem:[#allocation2 + $0x18] sm:$0x1] %vm374_vm0, %v9320_v0  ;;  %vm368_vm3 = vcmask 123904   ;;  %s9322_s17 = smov 16  }
   0xf   : > { %377 = vst.msk [vmem:[#allocation2 + $0x30] sm:$0x1] %vm374_vm0, %v9320_v0  ;;  %378 = vst.msk [vmem:[#allocation2 + $0x48] sm:$0x1] %vm374_vm0, %v9320_v0  ;;  %s11826_s10 = smov (!%p9386_p3, %s7291_s10), 1  ;;  %v7300_v47 = vld [vmem:[%s11719_s1 + $0x18] sm:$0xff] }
  0x10   : > { %379 = vst.msk [vmem:[#allocation2 + $0x60] sm:$0x1] %vm374_vm0, %v9320_v0  ;;  %380 = vst.msk [vmem:[#allocation2 + $0x78] sm:$0x1] %vm374_vm0, %v9320_v0  ;;  %s7756_s12 = sshll.u32 %s11826_s10, 8  ;;  %v7301_v48 = vld [vmem:[%s11719_s1 + $0x20] sm:$0xff] }
  0x11   : > { %381 = vst.msk [vmem:[#allocation2 + $0x90] sm:$0x1] %vm374_vm0, %v9320_v0  ;;  %382 = vst.msk [vmem:[#allocation2 + $0xa8] sm:$0x1] %vm374_vm0, %v9320_v0  ;;  %s9466_s15 = scalar_lea.vmem %s11718_s0, %s7756_s12  ;;  %v8936_v49 = vpack.c.bf16 %v7301_v48, %v7300_v47  ;;  %v7302_v52 = vld [vmem:[%s11719_s1 + $0x28] sm:$0xff]  ;;  %vm698_vm4 = vcmask 130112   ;;  %s11574_s23 = scalar_lea.vmem %s11727_s9, %s7756_s12 }
  0x12   : > { %383 = vst.msk [vmem:[#allocation2 + $0xc0] sm:$0x1] %vm374_vm0, %v9320_v0  ;;  %384 = vst.msk [vmem:[#allocation2 + $0xd8] sm:$0x1] %vm374_vm0, %v9320_v0  ;;  %v9469_v1 = vld [vmem:[%s9466_s15] sm:$0xff]  ;;  %v9472_v2 = vld [vmem:[%s9466_s15 + $0x8] sm:$0xff] }
  0x13   : > { %385 = vst.msk [vmem:[#allocation2 + $0xf0] sm:$0x1] %vm374_vm0, %v9320_v0  ;;  %386 = vst.msk [vmem:[#allocation2 + $0x108] sm:$0x1] %vm374_vm0, %v9320_v0  ;;  %v9475_v3 = vld [vmem:[%s9466_s15 + $0x10] sm:$0xff]  ;;  %v9484_v4 = vld [vmem:[%s9466_s15 + $0x18] sm:$0xff]  ;;  %8937 = vmatprep.subr.bf16.mxu0 %v8936_v49 }
  0x14   : > { %387 = vst.msk [vmem:[#allocation2 + $0x120] sm:$0x1] %vm374_vm0, %v9320_v0  ;;  %388 = vst.msk [vmem:[#allocation2 + $0x138] sm:$0x1] %vm374_vm0, %v9320_v0  ;;  %v9487_v5 = vld [vmem:[%s9466_s15 + $0x20] sm:$0xff]  ;;  %v9490_v6 = vld [vmem:[%s9466_s15 + $0x28] sm:$0xff]  ;;  %8939 = vmatpush3.bf16.msra.mxu0 %v8936_v49 }
  0x15   : > { %389 = vst.msk [vmem:[#allocation2 + $0x150] sm:$0x1] %vm374_vm0, %v9320_v0  ;;  %390 = vst.msk [vmem:[#allocation2 + $0x168] sm:$0x1] %vm374_vm0, %v9320_v0  ;;  %v9507_v7 = vld [vmem:[%s9466_s15 + $0x30] sm:$0xff]  ;;  %v9510_v8 = vld [vmem:[%s9466_s15 + $0x38] sm:$0xff]  ;;  %8224 = vmatprep.subr.mxu0 %v7302_v52 }
  0x16   : > { %391 = vst.msk [vmem:[#allocation2 + $0x180] sm:$0x1] %vm374_vm0, %v9320_v0  ;;  %395 = vst.msk [vmem:[#allocation2 + $0x41] sm:$0x1] %vm374_vm0, %v9320_v0  ;;  %v9513_v9 = vld [vmem:[%s9466_s15 + $0x40] sm:$0xff]  ;;  %v9528_v10 = vld [vmem:[%s9466_s15 + $0x48] sm:$0xff] }
  0x17   : > { %396 = vst.msk [vmem:[#allocation2 + $0x59] sm:$0x1] %vm374_vm0, %v9320_v0  ;;  %397 = vst.msk [vmem:[#allocation2 + $0x71] sm:$0x1] %vm374_vm0, %v9320_v0  ;;  %v9531_v11 = vld [vmem:[%s9466_s15 + $0x50] sm:$0xff]  ;;  %v9534_v12 = vld [vmem:[%s9466_s15 + $0x58] sm:$0xff] }
  0x18   : > { %398 = vst.msk [vmem:[#allocation2 + $0x89] sm:$0x1] %vm374_vm0, %v9320_v0  ;;  %399 = vst.msk [vmem:[#allocation2 + $0xa1] sm:$0x1] %vm374_vm0, %v9320_v0  ;;  %v9547_v13 = vld [vmem:[%s9466_s15 + $0x60] sm:$0xff]  ;;  %v9550_v14 = vld [vmem:[%s9466_s15 + $0x68] sm:$0xff]  ;;  %8225 = vmatpush3.msra.mxu0 %v7302_v52 }
  0x19   : > { %400 = vst.msk [vmem:[#allocation2 + $0xb9] sm:$0x1] %vm374_vm0, %v9320_v0  ;;  %401 = vst.msk [vmem:[#allocation2 + $0xd1] sm:$0x1] %vm374_vm0, %v9320_v0  ;;  %v9553_v15 = vld [vmem:[%s9466_s15 + $0x70] sm:$0xff]  ;;  %v9562_v16 = vld [vmem:[%s9466_s15 + $0x78] sm:$0xff] }
  0x1a   : > { %402 = vst.msk [vmem:[#allocation2 + $0xe9] sm:$0x1] %vm374_vm0, %v9320_v0  ;;  %403 = vst.msk [vmem:[#allocation2 + $0x101] sm:$0x1] %vm374_vm0, %v9320_v0  ;;  %v9565_v17 = vld [vmem:[%s9466_s15 + $0x80] sm:$0xff]  ;;  %v9568_v18 = vld [vmem:[%s9466_s15 + $0x88] sm:$0xff] }
  0x1b   : > { %404 = vst.msk [vmem:[#allocation2 + $0x119] sm:$0x1] %vm374_vm0, %v9320_v0  ;;  %405 = vst.msk [vmem:[#allocation2 + $0x131] sm:$0x1] %vm374_vm0, %v9320_v0  ;;  %v9577_v19 = vld [vmem:[%s9466_s15 + $0x90] sm:$0xff]  ;;  %v9580_v20 = vld [vmem:[%s9466_s15 + $0x98] sm:$0xff] }
  0x1c   : > { %406 = vst.msk [vmem:[#allocation2 + $0x149] sm:$0x1] %vm374_vm0, %v9320_v0  ;;  %407 = vst.msk [vmem:[#allocation2 + $0x161] sm:$0x1] %vm374_vm0, %v9320_v0  ;;  %v9583_v21 = vld [vmem:[%s9466_s15 + $0xa0] sm:$0xff]  ;;  %v9592_v22 = vld [vmem:[%s9466_s15 + $0xa8] sm:$0xff] }
  0x1d   : > { %408 = vst.msk [vmem:[#allocation2 + $0x179] sm:$0x1] %vm374_vm0, %v9320_v0  ;;  %409 = vst.msk [vmem:[#allocation2 + $0x191] sm:$0x1] %vm374_vm0, %v9320_v0  ;;  %v9595_v23 = vld [vmem:[%s9466_s15 + $0xb0] sm:$0xff]  ;;  %v9598_v24 = vld [vmem:[%s9466_s15 + $0xb8] sm:$0xff] }
  0x1e   : > { %413 = vst.msk [vmem:[#allocation2 + $0x19] sm:$0xff] %vm412_vm1, %v9469_v1  ;;  %414 = vst.msk [vmem:[#allocation2 + $0x21] sm:$0xff] %vm412_vm1, %v9472_v2  ;;  %v9615_v37 = vld [vmem:[%s9466_s15 + $0xc0] sm:$0xff]  ;;  %v9618_v38 = vld [vmem:[%s9466_s15 + $0xc8] sm:$0xff]  ;;  %vm915_vm5 = vcmask 195712   ;;  %vm1024_vm6 = vcmask 195584  }
  0x1f   : > { %415 = vst.msk [vmem:[#allocation2 + $0x31] sm:$0xff] %vm412_vm1, %v9475_v3  ;;  %416 = vst.msk [vmem:[#allocation2 + $0x39] sm:$0xff] %vm412_vm1, %v9484_v4  ;;  %v9621_v39 = vld [vmem:[%s9466_s15 + $0xd0] sm:$0xff]  ;;  %v9632_v40 = vld [vmem:[%s9466_s15 + $0xd8] sm:$0xff]  ;;  %s9323_s20 = smov 12   ;;  %vm2355_vm7 = vcmask 1043456  }
  0x20   : > { %366 = vst.msk [vmem:[#allocation2] sm:$0xff] %vm365_vm2, %v9320_v0  ;;  %367 = vst.msk [vmem:[#allocation2 + $0x8] sm:$0xff] %vm365_vm2, %v9320_v0  ;;  %v9635_v41 = vld [vmem:[%s9466_s15 + $0xe0] sm:$0xff]  ;;  %v9642_v43 = vld [vmem:[%s9466_s15 + $0xe8] sm:$0xff]  ;;  %vm2941_vm8 = vcmask 97280   ;;  %vm3158_vm9 = vcmask 195680  }
  0x21   : > { %371 = vst.msk [vmem:[#allocation2 + $0x198] sm:$0xff] %vm365_vm2, %v9320_v0  ;;  %372 = vst.msk [vmem:[#allocation2 + $0x1a0] sm:$0xff] %vm365_vm2, %v9320_v0  ;;  %v9646_v45 = vld [vmem:[%s9466_s15 + $0xf0] sm:$0xff]  ;;  %v9654_v46 = vld [vmem:[%s9466_s15 + $0xf8] sm:$0xff]  ;;  %vm2290_vm10 = vcmask 31744   ;;  %vm2256_vm11 = vcmask 97344  }
  0x22   : > { %417 = vst.msk [vmem:[#allocation2 + $0x49] sm:$0xff] %vm412_vm1, %v9487_v5  ;;  %418 = vst.msk [vmem:[#allocation2 + $0x51] sm:$0xff] %vm412_vm1, %v9490_v6  ;;  %s9324_s21 = smov 24   ;;  %vm3375_vm12 = vcmask 294080   ;;  %vm3487_vm13 = vcmask 293888   ;;  %vm5339_vm14 = vcmask 261248  }
  0x23   : > { %375 = vst.msk [vmem:[#allocation2] sm:$0x1] %vm374_vm0, %v9320_v0  ;;  %392 = vst.msk [vmem:[#allocation2 + $0x198] sm:$0x1] %vm374_vm0, %v9320_v0  ;;  %vm4729_vm15 = vcmask 130144   ;;  %s9325_s25 = smov 32  }
  0x24   : > { %369 = vst.msk [vmem:[#allocation2 + $0x10] sm:$0x3] %vm368_vm3, %v9320_v0  ;;  %373 = vst.msk [vmem:[#allocation2 + $0x1a8] sm:$0x3] %vm368_vm3, %v9320_v0  ;;  %vm5670_vm3 = vcmask 392192  }
  0x25   : > { %419 = vst.msk [vmem:[#allocation2 + $0x61] sm:$0xff] %vm412_vm1, %v9507_v7  ;;  %420 = vst.msk [vmem:[#allocation2 + $0x69] sm:$0xff] %vm412_vm1, %v9510_v8  ;;  %v520_v25 = vld [vmem:[#allocation2 + $0x19] sm:$0xff]  ;;  %v521_v27 = vld [vmem:[#allocation2 + $0x21] sm:$0xff] }
  0x26   : > { %421 = vst.msk [vmem:[#allocation2 + $0x79] sm:$0xff] %vm412_vm1, %v9513_v9  ;;  %11763 = vst [vmem:[#allocation4_spill] sm:$0xff] %v9531_v11  ;;  %v737_v26 = vld [vmem:[#allocation2 + $0x1a] sm:$0xff]  ;;  %594 = vrot.lane.b32.xlu0 %v520_v25, %s9321_s16  ;;  %v738_v28 = vld [vmem:[#allocation2 + $0x22] sm:$0xff] }
  0x27   : > { %11764 = vst [vmem:[#allocation5_spill] sm:$0xff] %v9534_v12  ;;  %393 = vst.msk [vmem:[#allocation2 + $0x11] sm:$0x1] %vm374_vm0, %v9320_v0  ;;  %811 = vrot.lane.b32.xlu1 %v737_v26, %s9322_s17  ;;  %v522_v29 = vld [vmem:[#allocation2 + $0x31] sm:$0xff]  ;;  %v523_v30 = vld [vmem:[#allocation2 + $0x39] sm:$0xff] }
  0x28   : > { %410 = vst.msk [vmem:[#allocation2 + $0x1a9] sm:$0x1] %vm374_vm0, %v9320_v0  ;;  %11765 = vst [vmem:[#allocation6_spill] sm:$0xff] %v9547_v13  ;;  %v739_v31 = vld [vmem:[#allocation2 + $0x32] sm:$0xff]  ;;  %v740_v32 = vld [vmem:[#allocation2 + $0x3a] sm:$0xff]  ;;  %vm5556_vm0 = vcmask 392448  }
  0x29   : > { %422 = vst.msk [vmem:[#allocation2 + $0x81] sm:$0xff] %vm412_vm1, %v9528_v10  ;;  %423 = vst.msk [vmem:[#allocation2 + $0x91] sm:$0xff] %vm412_vm1, %v9531_v11  ;;  %v524_v33 = vld [vmem:[#allocation2 + $0x49] sm:$0xff]  ;;  %v525_v34 = vld [vmem:[#allocation2 + $0x51] sm:$0xff] }
  0x2a   : > { %424 = vst.msk [vmem:[#allocation2 + $0x99] sm:$0xff] %vm412_vm1, %v9534_v12  ;;  %11766 = vst [vmem:[#allocation7_spill] sm:$0xff] %v9550_v14  ;;  %596 = vrot.lane.b32.xlu0 %v521_v27, %s9321_s16  ;;  %v741_v35 = vld [vmem:[#allocation2 + $0x4a] sm:$0xff]  ;;  %v742_v36 = vld [vmem:[#allocation2 + $0x52] sm:$0xff] }
  0x2b   : > { %11767 = vst [vmem:[#allocation8_spill] sm:$0xff] %v9553_v15  ;;  %425 = vst.msk [vmem:[#allocation2 + $0xa9] sm:$0xff] %vm412_vm1, %v9547_v13  ;;  %813 = vrot.lane.b32.xlu1 %v738_v28, %s9322_s17  ;;  %v448_v42 = vld [vmem:[#allocation2 + $0x18] sm:$0xff]  ;;  %v449_v44 = vld [vmem:[#allocation2 + $0x20] sm:$0xff] }
  0x2c   : > { %426 = vst.msk [vmem:[#allocation2 + $0xb1] sm:$0xff] %vm412_vm1, %v9550_v14  ;;  %427 = vst.msk [vmem:[#allocation2 + $0xc1] sm:$0xff] %vm412_vm1, %v9553_v15  ;;  %v450_v50 = vld [vmem:[#allocation2 + $0x30] sm:$0xff]  ;;  %v451_v51 = vld [vmem:[#allocation2 + $0x38] sm:$0xff] }
  0x2d   : > { %11768 = vst [vmem:[#allocation9_spill] sm:$0xff] %v9562_v16  ;;  %11769 = vst [vmem:[#allocation10_spill] sm:$0xff] %v9565_v17  ;;  %v452_v53 = vld [vmem:[#allocation2 + $0x48] sm:$0xff]  ;;  %v453_v56 = vld [vmem:[#allocation2 + $0x50] sm:$0xff] }
  0x2e   : > { %11770 = vst [vmem:[#allocation11_spill] sm:$0xff] %v9568_v18  ;;  %428 = vst.msk [vmem:[#allocation2 + $0xc9] sm:$0xff] %vm412_vm1, %v9562_v16  ;;  %598 = vrot.lane.b32.xlu0 %v522_v29, %s9321_s16  ;;  %v526_v54 = vld [vmem:[#allocation2 + $0x61] sm:$0xff]  ;;  %v527_v55 = vld [vmem:[#allocation2 + $0x69] sm:$0xff] }
  0x2f   : > { %429 = vst.msk [vmem:[#allocation2 + $0xd9] sm:$0xff] %vm412_vm1, %v9565_v17  ;;  %430 = vst.msk [vmem:[#allocation2 + $0xe1] sm:$0xff] %vm412_vm1, %v9568_v18  ;;  %600 = vrot.lane.b32.xlu1 %v523_v30, %s9321_s16  ;;  %v454_v57 = vld [vmem:[#allocation2 + $0x60] sm:$0xff]  ;;  %v455_v58 = vld [vmem:[#allocation2 + $0x68] sm:$0xff] }
  0x30   : > { %11771 = vst [vmem:[#allocation12_spill] sm:$0xff] %v9577_v19  ;;  %11772 = vst [vmem:[#allocation13_spill] sm:$0xff] %v9580_v20  ;;  %v456_v59 = vld [vmem:[#allocation2 + $0x78] sm:$0xff]  ;;  %v743_v60 = vld [vmem:[#allocation2 + $0x62] sm:$0xff] }
  0x31   : > { %11773 = vst [vmem:[#allocation14_spill] sm:$0xff] %v9583_v21  ;;  %431 = vst.msk [vmem:[#allocation2 + $0xf1] sm:$0xff] %vm412_vm1, %v9577_v19  ;;  %v744_v61 = vld [vmem:[#allocation2 + $0x6a] sm:$0xff]  ;;  %v457_v62 = vld [vmem:[#allocation2 + $0x80] sm:$0xff] }
  0x32   : > { %432 = vst.msk [vmem:[#allocation2 + $0xf9] sm:$0xff] %vm412_vm1, %v9580_v20  ;;  %433 = vst.msk [vmem:[#allocation2 + $0x109] sm:$0xff] %vm412_vm1, %v9583_v21  ;;  %815 = vrot.lane.b32.xlu0 %v739_v31, %s9322_s17  ;;  %v458_v63 = vld [vmem:[#allocation2 + $0x90] sm:$0xff]  ;;  %v528_v0 = vld [vmem:[#allocation2 + $0x79] sm:$0xff] }
  0x33   : > { %11774 = vst [vmem:[#allocation15_spill] sm:$0xff] %v9592_v22  ;;  %11775 = vst [vmem:[#allocation16_spill] sm:$0xff] %v9595_v23  ;;  %817 = vrot.lane.b32.xlu1 %v740_v32, %s9322_s17  ;;  %v529_v25 = vld [vmem:[#allocation2 + $0x81] sm:$0xff]  ;;  %v459_v26 = vld [vmem:[#allocation2 + $0x98] sm:$0xff] }
  0x34   : > { %11776 = vst [vmem:[#allocation17_spill] sm:$0xff] %v9598_v24  ;;  %434 = vst.msk [vmem:[#allocation2 + $0x111] sm:$0xff] %vm412_vm1, %v9592_v22  ;;  %v460_v27 = vld [vmem:[#allocation2 + $0xa8] sm:$0xff]  ;;  %v745_v28 = vld [vmem:[#allocation2 + $0x7a] sm:$0xff] }
  0x35   : > { %435 = vst.msk [vmem:[#allocation2 + $0x121] sm:$0xff] %vm412_vm1, %v9595_v23  ;;  %436 = vst.msk [vmem:[#allocation2 + $0x129] sm:$0xff] %vm412_vm1, %v9598_v24  ;;  %v746_v29 = vld [vmem:[#allocation2 + $0x82] sm:$0xff]  ;;  %v461_v30 = vld [vmem:[#allocation2 + $0xb0] sm:$0xff] }
  0x36   : > { %11777 = vst [vmem:[#allocation18_spill] sm:$0xff] %v9615_v37  ;;  %11778 = vst [vmem:[#allocation19_spill] sm:$0xff] %v9618_v38  ;;  %602 = vrot.lane.b32.xlu0 %v524_v33, %s9321_s16  ;;  %v530_v31 = vld [vmem:[#allocation2 + $0x91] sm:$0xff]  ;;  %v531_v32 = vld [vmem:[#allocation2 + $0x99] sm:$0xff] }
  0x37   : > { %11779 = vst [vmem:[#allocation20_spill] sm:$0xff] %v9621_v39  ;;  %604 = vrot.lane.b32.xlu1 %v525_v34, %s9321_s16  ;;  %437 = vst.msk [vmem:[#allocation2 + $0x139] sm:$0xff] %vm412_vm1, %v9615_v37  ;;  %v462_v33 = vld [vmem:[#allocation2 + $0xc0] sm:$0xff]  ;;  %v747_v34 = vld [vmem:[#allocation2 + $0x92] sm:$0xff] }
  0x38   : > { %438 = vst.msk [vmem:[#allocation2 + $0x141] sm:$0xff] %vm412_vm1, %v9618_v38  ;;  %439 = vst.msk [vmem:[#allocation2 + $0x151] sm:$0xff] %vm412_vm1, %v9621_v39  ;;  %v464_v47 = vld [vmem:[#allocation2 + $0xd8] sm:$0xff]  ;;  %v749_v48 = vld [vmem:[#allocation2 + $0xaa] sm:$0xff] }
  0x39   : > { %11780 = vst [vmem:[#allocation21_spill] sm:$0xff] %v9632_v40  ;;  %11781 = vst [vmem:[#allocation22_spill] sm:$0xff] %v9635_v41  ;;  %v750_v49 = vld [vmem:[#allocation2 + $0xb2] sm:$0xff]  ;;  %v535_v52 = vld [vmem:[#allocation2 + $0xc9] sm:$0xff] }
  0x3a   : > { %440 = vst.msk [vmem:[#allocation2 + $0x159] sm:$0xff] %vm412_vm1, %v9632_v40  ;;  %441 = vst.msk [vmem:[#allocation2 + $0x169] sm:$0xff] %vm412_vm1, %v9635_v41  ;;  %819 = vrot.lane.b32.xlu0 %v741_v35, %s9322_s17  ;;  %v748_v35 = vld [vmem:[#allocation2 + $0x9a] sm:$0xff] }
  0x3b   : > { %11782 = vst [vmem:[#allocation23_spill] sm:$0xff] %v9642_v43  ;;  %484 = vst.msk [vmem:[#allocation3 + $0x10] sm:$0xff] %vm412_vm1, %v448_v42  ;;  %821 = vrot.lane.b32.xlu1 %v742_v36, %s9322_s17  ;;  %v463_v36 = vld [vmem:[#allocation2 + $0xc8] sm:$0xff]  ;;  %v7369_v21 = vld [vmem:[%s11719_s1 + $0x40] sm:$0xff] }
  0x3c   : > { %11783 = vst [vmem:[#allocation24_spill] sm:$0xff] %v9646_v45  ;;  %442 = vst.msk [vmem:[#allocation2 + $0x171] sm:$0xff] %vm412_vm1, %v9642_v43  ;;  %v532_v42 = vld [vmem:[#allocation2 + $0xa9] sm:$0xff] }
  0x3d   : > { %485 = vst.msk [vmem:[#allocation3 + $0x18] sm:$0xff] %vm412_vm1, %v449_v44  ;;  %443 = vst.msk [vmem:[#allocation2 + $0x181] sm:$0xff] %vm412_vm1, %v9646_v45  ;;  %v533_v44 = vld [vmem:[#allocation2 + $0xb1] sm:$0xff] }
  0x3e   : > { %11784 = vst [vmem:[#allocation25_spill] sm:$0xff] %v9654_v46  ;;  %444 = vst.msk [vmem:[#allocation2 + $0x189] sm:$0xff] %vm412_vm1, %v9654_v46  ;;  %606 = vrot.lane.b32.xlu0 %v526_v54, %s9321_s16  ;;  %v751_v54 = vld [vmem:[#allocation2 + $0xc2] sm:$0xff] }
  0x3f   : > { %486 = vst.msk [vmem:[#allocation3 + $0x20] sm:$0xff] %vm412_vm1, %v450_v50  ;;  %487 = vst.msk [vmem:[#allocation3 + $0x28] sm:$0xff] %vm412_vm1, %v451_v51  ;;  %608 = vrot.lane.b32.xlu1 %v527_v55, %s9321_s16  ;;  %v465_v50 = vld [vmem:[#allocation2 + $0xe0] sm:$0xff]  ;;  %v752_v55 = vld [vmem:[#allocation2 + $0xca] sm:$0xff] }
  0x40   : > { %488 = vst.msk [vmem:[#allocation3 + $0x30] sm:$0xff] %vm412_vm1, %v452_v53  ;;  %489 = vst.msk [vmem:[#allocation3 + $0x38] sm:$0xff] %vm412_vm1, %v453_v56  ;;  %v534_v51 = vld [vmem:[#allocation2 + $0xc1] sm:$0xff]  ;;  %v466_v53 = vld [vmem:[#allocation2 + $0xf0] sm:$0xff] }
  0x41   : > { %490 = vst.msk [vmem:[#allocation3 + $0x40] sm:$0xff] %vm412_vm1, %v454_v57  ;;  %491 = vst.msk [vmem:[#allocation3 + $0x48] sm:$0xff] %vm412_vm1, %v455_v58  ;;  %v467_v56 = vld [vmem:[#allocation2 + $0xf8] sm:$0xff]  ;;  %v537_v58 = vld [vmem:[#allocation2 + $0xe1] sm:$0xff] }
  0x42   : > { %492 = vst.msk [vmem:[#allocation3 + $0x50] sm:$0xff] %vm412_vm1, %v456_v59  ;;  %823 = vrot.lane.b32.xlu0 %v743_v60, %s9322_s17  ;;  %493 = vst.msk [vmem:[#allocation3 + $0x58] sm:$0xff] %vm412_vm1, %v457_v62  ;;  %v536_v57 = vld [vmem:[#allocation2 + $0xd9] sm:$0xff]  ;;  %v985_v60 = vld [vmem:[%s11719_s1 + $0x8] sm:$0xff] }
  0x43   : > { %825 = vrot.lane.b32.xlu1 %v744_v61, %s9322_s17  ;;  %494 = vst.msk [vmem:[#allocation3 + $0x60] sm:$0xff] %vm412_vm1, %v458_v63  ;;  %495 = vst.msk [vmem:[#allocation3 + $0x68] sm:$0xff] %vm412_vm1, %v459_v26  ;;  %v984_v59 = vld [vmem:[%s11719_s1] sm:$0xff]  ;;  %v468_v62 = vld [vmem:[#allocation2 + $0x108] sm:$0xff] }
  0x44   : > { %496 = vst.msk [vmem:[#allocation3 + $0x70] sm:$0xff] %vm412_vm1, %v460_v27  ;;  %497 = vst.msk [vmem:[#allocation3 + $0x78] sm:$0xff] %vm412_vm1, %v461_v30  ;;  %v9715_v61 = vpack.c.bf16 %v985_v60, %v984_v59  ;;  %v753_v63 = vld [vmem:[#allocation2 + $0xda] sm:$0xff]  ;;  %v538_v26 = vld [vmem:[#allocation2 + $0xf1] sm:$0xff] }
  0x45   : > { %498 = vst.msk [vmem:[#allocation3 + $0x80] sm:$0xff] %vm412_vm1, %v462_v33  ;;  %499 = vst.msk [vmem:[#allocation3 + $0x88] sm:$0xff] %vm412_vm1, %v463_v36  ;;  %v539_v27 = vld [vmem:[#allocation2 + $0xf9] sm:$0xff]  ;;  %v541_v33 = vld [vmem:[#allocation2 + $0x111] sm:$0xff] }
  0x46   : > { %610 = vrot.lane.b32.xlu0 %v528_v0, %s9321_s16  ;;  %500 = vst.msk [vmem:[#allocation3 + $0x90] sm:$0xff] %vm412_vm1, %v464_v47  ;;  %501 = vst.msk [vmem:[#allocation3 + $0x98] sm:$0xff] %vm412_vm1, %v465_v50  ;;  %v754_v0 = vld [vmem:[#allocation2 + $0xe2] sm:$0xff]  ;;  %8941 = vmatprep.subr.bf16.mxu0 %v9715_v61  ;;  %v756_v30 = vld [vmem:[#allocation2 + $0xfa] sm:$0xff] }
  0x47   : > { %612 = vrot.lane.b32.xlu1 %v529_v25, %s9321_s16  ;;  %502 = vst.msk [vmem:[#allocation3 + $0xa0] sm:$0xff] %vm412_vm1, %v466_v53  ;;  %503 = vst.msk [vmem:[#allocation3 + $0xa8] sm:$0xff] %vm412_vm1, %v467_v56  ;;  %v469_v25 = vld [vmem:[#allocation2 + $0x110] sm:$0xff]  ;;  %v545_v53 = vld [vmem:[#allocation2 + $0x141] sm:$0xff] }
  0x48   : > { %504 = vst.msk [vmem:[#allocation3 + $0xb0] sm:$0xff] %vm412_vm1, %v468_v62  ;;  %505 = vst.msk [vmem:[#allocation3 + $0xb8] sm:$0xff] %vm412_vm1, %v469_v25  ;;  %v758_v36 = vld [vmem:[#allocation2 + $0x112] sm:$0xff]  ;;  %v543_v47 = vld [vmem:[#allocation2 + $0x129] sm:$0xff] }
  0x49   : > { %v760_v50 = vld [vmem:[#allocation2 + $0x12a] sm:$0xff]  ;;  %v762_v56 = vld [vmem:[#allocation2 + $0x142] sm:$0xff]  ;;  %v547_v59 = vld [vmem:[#allocation2 + $0x159] sm:$0xff] }
  0x4a   : > { %827 = vrot.lane.b32.xlu0 %v745_v28, %s9322_s17  ;;  %v470_v28 = vld [vmem:[#allocation2 + $0x120] sm:$0xff]  ;;  %v763_v62 = vld [vmem:[#allocation2 + $0x152] sm:$0xff]  ;;  %v548_v25 = vld [vmem:[#allocation2 + $0x169] sm:$0xff] }
  0x4b   : > { %829 = vrot.lane.b32.xlu1 %v746_v29, %s9322_s17  ;;  %v755_v29 = vld [vmem:[#allocation2 + $0xf2] sm:$0xff]  ;;  %506 = vst.msk [vmem:[#allocation3 + $0xc0] sm:$0xff] %vm412_vm1, %v470_v28  ;;  %v478_v60 = vld [vmem:[#allocation2 + $0x180] sm:$0xff]  ;;  %v765_v28 = vld [vmem:[#allocation2 + $0x16a] sm:$0xff] }
  0x4c   : > { %514 = vst.msk [vmem:[#allocation3 + $0x100] sm:$0xff] %vm412_vm1, %v478_v60 }
  0x4e   : > { %614 = vrot.lane.b32.xlu0 %v530_v31, %s9321_s16  ;;  %v471_v31 = vld [vmem:[#allocation2 + $0x128] sm:$0xff] }
  0x4f   : > { %616 = vrot.lane.b32.xlu1 %v531_v32, %s9321_s16  ;;  %507 = vst.msk [vmem:[#allocation3 + $0xc8] sm:$0xff] %vm412_vm1, %v471_v31  ;;  %v540_v32 = vld [vmem:[#allocation2 + $0x109] sm:$0xff] }
  0x52   : > { %831 = vrot.lane.b32.xlu0 %v747_v34, %s9322_s17  ;;  %v472_v34 = vld [vmem:[#allocation2 + $0x138] sm:$0xff] }
  0x53   : > { %833 = vrot.lane.b32.xlu1 %v748_v35, %s9322_s17  ;;  %v757_v35 = vld [vmem:[#allocation2 + $0x10a] sm:$0xff]  ;;  %508 = vst.msk [vmem:[#allocation3 + $0xd0] sm:$0xff] %vm412_vm1, %v472_v34 }
  0x54   : > { %v551_v34 = vld [vmem:[#allocation2 + $0x189] sm:$0xff] }
  0x56   : > { %618 = vrot.lane.b32.xlu0 %v532_v42, %s9321_s16  ;;  %v473_v42 = vld [vmem:[#allocation2 + $0x140] sm:$0xff] }
  0x57   : > { %620 = vrot.lane.b32.xlu1 %v533_v44, %s9321_s16  ;;  %509 = vst.msk [vmem:[#allocation3 + $0xd8] sm:$0xff] %vm412_vm1, %v473_v42  ;;  %v542_v44 = vld [vmem:[#allocation2 + $0x121] sm:$0xff] }
  0x58   : > { %v767_v42 = vld [vmem:[#allocation2 + $0x182] sm:$0xff] }
  0x5a   : > { %835 = vrot.lane.b32.xlu0 %v749_v48, %s9322_s17  ;;  %v474_v48 = vld [vmem:[#allocation2 + $0x150] sm:$0xff] }
  0x5b   : > { %837 = vrot.lane.b32.xlu1 %v750_v49, %s9322_s17  ;;  %v759_v49 = vld [vmem:[#allocation2 + $0x122] sm:$0xff]  ;;  %510 = vst.msk [vmem:[#allocation3 + $0xe0] sm:$0xff] %vm412_vm1, %v474_v48  ;;  %v768_v48 = vld [vmem:[#allocation2 + $0x18a] sm:$0xff] }
  0x5e   : > { %622 = vrot.lane.b32.xlu0 %v534_v51, %s9321_s16  ;;  %v475_v51 = vld [vmem:[#allocation2 + $0x158] sm:$0xff] }
  0x5f   : > { %624 = vrot.lane.b32.xlu1 %v535_v52, %s9321_s16  ;;  %511 = vst.msk [vmem:[#allocation3 + $0xe8] sm:$0xff] %vm412_vm1, %v475_v51  ;;  %v544_v52 = vld [vmem:[#allocation2 + $0x139] sm:$0xff] }
  0x62   : > { %839 = vrot.lane.b32.xlu0 %v751_v54, %s9322_s17  ;;  %v476_v54 = vld [vmem:[#allocation2 + $0x168] sm:$0xff] }
  0x63   : > { %841 = vrot.lane.b32.xlu1 %v752_v55, %s9322_s17  ;;  %v761_v55 = vld [vmem:[#allocation2 + $0x13a] sm:$0xff]  ;;  %512 = vst.msk [vmem:[#allocation3 + $0xf0] sm:$0xff] %vm412_vm1, %v476_v54  ;;  %v986_v54 = vld [vmem:[%s11719_s1 + $0x10] sm:$0xff] }
  0x66   : > { %626 = vrot.lane.b32.xlu0 %v536_v57, %s9321_s16  ;;  %v477_v57 = vld [vmem:[#allocation2 + $0x170] sm:$0xff] }
  0x67   : > { %628 = vrot.lane.b32.xlu1 %v537_v58, %s9321_s16  ;;  %513 = vst.msk [vmem:[#allocation3 + $0xf8] sm:$0xff] %vm412_vm1, %v477_v57  ;;  %v546_v58 = vld [vmem:[#allocation2 + $0x151] sm:$0xff] }
  0x68   : > { %v7368_v57 = vld [vmem:[%s11719_s1 + $0x38] sm:$0xff] }
  0x6a   : > { %843 = vrot.lane.b32.xlu0 %v753_v63, %s9322_s17  ;;  %v764_v63 = vld [vmem:[#allocation2 + $0x15a] sm:$0xff] }
  0x6b   : > { %845 = vrot.lane.b32.xlu1 %v754_v0, %s9322_s17  ;;  %v479_v0 = vld [vmem:[#allocation2 + $0x188] sm:$0xff] }
  0x6c   : > { %515 = vst.msk [vmem:[#allocation3 + $0x108] sm:$0xff] %vm412_vm1, %v479_v0  ;;  %v552_v0 = vld [vmem:[#allocation2 + $0x199] sm:$0xff] }
  0x6e   : > { %630 = vrot.lane.b32.xlu0 %v538_v26, %s9321_s16  ;;  %v549_v26 = vld [vmem:[#allocation2 + $0x171] sm:$0xff] }
  0x6f   : > { %632 = vrot.lane.b32.xlu1 %v539_v27, %s9321_s16  ;;  %v9754_v27 = vld [vmem:[#allocation2] sm:$0xff] }
  0x70   : > { %482 = vst.msk [vmem:[#allocation3] sm:$0xff] %vm412_vm1, %v9754_v27 }
  0x72   : > { %847 = vrot.lane.b32.xlu0 %v755_v29, %s9322_s17  ;;  %v766_v29 = vld [vmem:[#allocation2 + $0x172] sm:$0xff] }
  0x73   : > { %849 = vrot.lane.b32.xlu1 %v756_v30, %s9322_s17 }
  0x76   : > { %634 = vrot.lane.b32.xlu0 %v540_v32, %s9321_s16  ;;  %v9758_v32 = vld [vmem:[#allocation2 + $0x8] sm:$0xff] }
  0x77   : > { %636 = vrot.lane.b32.xlu1 %v541_v33, %s9321_s16  ;;  %483 = vst.msk [vmem:[#allocation3 + $0x8] sm:$0xff] %vm412_vm1, %v9758_v32  ;;  %v550_v33 = vld [vmem:[#allocation2 + $0x181] sm:$0xff] }
  0x7a   : > { %851 = vrot.lane.b32.xlu0 %v757_v35, %s9322_s17 }
  0x7b   : > { %853 = vrot.lane.b32.xlu1 %v758_v36, %s9322_s17 }
  0x7e   : > { %638 = vrot.lane.b32.xlu0 %v542_v44, %s9321_s16 }
  0x7f   : > { %640 = vrot.lane.b32.xlu1 %v543_v47, %s9321_s16 }
  0x82   : > { %855 = vrot.lane.b32.xlu0 %v759_v49, %s9322_s17 }
  0x83   : > { %857 = vrot.lane.b32.xlu1 %v760_v50, %s9322_s17  ;;  %v9778_v50 = vld [vmem:[#allocation2 + $0x1] sm:$0xff] }
  0x86   : > { %642 = vrot.lane.b32.xlu0 %v544_v52, %s9321_s16 }
  0x87   : > { %644 = vrot.lane.b32.xlu1 %v545_v53, %s9321_s16  ;;  %v9780_v53 = vld [vmem:[#allocation2 + $0x9] sm:$0xff] }
  0x8a   : > { %859 = vrot.lane.b32.xlu0 %v761_v55, %s9322_s17 }
  0x8b   : > { %861 = vrot.lane.b32.xlu1 %v762_v56, %s9322_s17  ;;  %v7367_v56 = vld [vmem:[%s11719_s1 + $0x30] sm:$0xff] }
  0x8e   : > { %646 = vrot.lane.b32.xlu0 %v546_v58, %s9321_s16  ;;  %v735_v58 = vld [vmem:[#allocation2 + $0x2] sm:$0xff] }
  0x8f   : > { %648 = vrot.lane.b32.xlu1 %v547_v59, %s9321_s16 }
  0x92   : > { %863 = vrot.lane.b32.xlu0 %v763_v62, %s9322_s17  ;;  %v736_v62 = vld [vmem:[#allocation2 + $0xa] sm:$0xff] }
  0x93   : > { %865 = vrot.lane.b32.xlu1 %v764_v63, %s9322_s17  ;;  %v9802_v63 = vpack.c.bf16 %v7368_v57, %v7367_v56 }
  0x96   : > { %650 = vrot.lane.b32.xlu0 %v548_v25, %s9321_s16 }
  0x97   : > { %652 = vrot.lane.b32.xlu1 %v549_v26, %s9321_s16 }
  0x98   : > { %v595_v30 = vpop.permute.xlu0 %594 }
  0x99   : > { %v812_v31 = vpop.permute.xlu1 %811  ;;  %701 = vst.msk [vmem:[#allocation3 + $0x10] sm:$0xff] %vm698_vm4, %v595_v30  ;;  %v769_v30 = vld [vmem:[#allocation2 + $0x19a] sm:$0xff] }
  0x9a   : > { %918 = vst.msk [vmem:[#allocation3 + $0x10] sm:$0xff] %vm915_vm5, %v812_v31  ;;  %867 = vrot.lane.b32.xlu0 %v765_v28, %s9322_s17 }
  0x9b   : > { %869 = vrot.lane.b32.xlu1 %v766_v29, %s9322_s17  ;;  %v553_v29 = vld [vmem:[#allocation2 + $0x1a1] sm:$0xff] }
  0x9c   : > { %v597_v35 = vpop.permute.xlu0 %596 }
  0x9d   : > { %v814_v36 = vpop.permute.xlu1 %813  ;;  %702 = vst.msk [vmem:[#allocation3 + $0x18] sm:$0xff] %vm698_vm4, %v597_v35 }
  0x9e   : > { %919 = vst.msk [vmem:[#allocation3 + $0x18] sm:$0xff] %vm915_vm5, %v814_v36  ;;  %654 = vrot.lane.b32.xlu0 %v550_v33, %s9321_s16 }
  0x9f   : > { %656 = vrot.lane.b32.xlu1 %v551_v34, %s9321_s16  ;;  %v770_v34 = vld [vmem:[#allocation2 + $0x1a2] sm:$0xff] }
  0xa0   : > { %v599_v44 = vpop.permute.xlu0 %598 }
  0xa1   : > { %v601_v47 = vpop.permute.xlu1 %600  ;;  %703 = vst.msk [vmem:[#allocation3 + $0x20] sm:$0xff] %vm698_vm4, %v599_v44  ;;  %v9772_v49 = vld [vmem:[#allocation3 + $0x10] sm:$0xff] }
  0xa2   : > { %704 = vst.msk [vmem:[#allocation3 + $0x28] sm:$0xff] %vm698_vm4, %v601_v47  ;;  %871 = vrot.lane.b32.xlu0 %v767_v42, %s9322_s17  ;;  %8226 = vmatprep.mubr.msk.f32.mxu0 %vm1024_vm6, %v9772_v49 }
  0xa3   : > { %873 = vrot.lane.b32.xlu1 %v768_v48, %s9322_s17 }
  0xa4   : > { %v816_v51 = vpop.permute.xlu0 %815 }
  0xa5   : > { %v818_v52 = vpop.permute.xlu1 %817  ;;  %920 = vst.msk [vmem:[#allocation3 + $0x20] sm:$0xff] %vm915_vm5, %v816_v51  ;;  %v9787_v55 = vld [vmem:[#allocation3 + $0x18] sm:$0xff] }
  0xa6   : > { %921 = vst.msk [vmem:[#allocation3 + $0x28] sm:$0xff] %vm915_vm5, %v818_v52  ;;  %590 = vrot.lane.b32.xlu0 %v9778_v50, %s9321_s16  ;;  %8227 = vmatmul.mubr.msk.f32.vlgmr.msra.gmra.mrb[0].mxu0 %vm1024_vm6, %v9787_v55 }
  0xa7   : > { %592 = vrot.lane.b32.xlu1 %v9780_v53, %s9321_s16  ;;  %8943 = vmatpush3.bf16.msra.mxu0 %v9715_v61 }
  0xa8   : > { %v603_v59 = vpop.permute.xlu0 %602  ;;  %8278 = vmatprep.subr.mxu0 %v986_v54 }
  0xa9   : > { %v605_v60 = vpop.permute.xlu1 %604  ;;  %705 = vst.msk [vmem:[#allocation3 + $0x30] sm:$0xff] %vm698_vm4, %v603_v59 }
  0xaa   : > { %706 = vst.msk [vmem:[#allocation3 + $0x38] sm:$0xff] %vm698_vm4, %v605_v60  ;;  %807 = vrot.lane.b32.xlu0 %v735_v58, %s9322_s17 }
  0xab   : > { %809 = vrot.lane.b32.xlu1 %v736_v62, %s9322_s17  ;;  %8279 = vmatpush3.msra.mxu0 %v986_v54 }
  0xac   : > { %v820_v25 = vpop.permute.xlu0 %819  ;;  %v9808_v28 = vld [vmem:[#allocation3 + $0x20] sm:$0xff]  ;;  %8945 = vmatprep.subr.bf16.mxu0 %v9802_v63 }
  0xad   : > { %v822_v26 = vpop.permute.xlu1 %821  ;;  %v9810_v61 = vld [vmem:[#allocation3 + $0x28] sm:$0xff]  ;;  %922 = vst.msk [vmem:[#allocation3 + $0x30] sm:$0xff] %vm915_vm5, %v820_v25  ;;  %8229 = vmatprep.mubr.msk.f32.mxu0 %vm1024_vm6, %v9808_v28 }
  0xae   : > { %923 = vst.msk [vmem:[#allocation3 + $0x38] sm:$0xff] %vm915_vm5, %v822_v26  ;;  %8230 = vmatmul.mubr.msk.f32.gmra.mrb[2].mxu0 %vm1024_vm6, %v9810_v61  ;;  %658 = vrot.lane.b32.xlu0 %v552_v0, %s9321_s16 }
  0xaf   : > { %660 = vrot.lane.b32.xlu1 %v553_v29, %s9321_s16 }
  0xb0   : > { %v607_v31 = vpop.permute.xlu0 %606 }
  0xb1   : > { %v609_v33 = vpop.permute.xlu1 %608  ;;  %707 = vst.msk [vmem:[#allocation3 + $0x40] sm:$0xff] %vm698_vm4, %v607_v31 }
  0xb2   : > { %708 = vst.msk [vmem:[#allocation3 + $0x48] sm:$0xff] %vm698_vm4, %v609_v33  ;;  %875 = vrot.lane.b32.xlu0 %v769_v30, %s9322_s17 }
  0xb3   : > { %877 = vrot.lane.b32.xlu1 %v770_v34, %s9322_s17 }
  0xb4   : > { %v824_v35 = vpop.permute.xlu0 %823  ;;  %v9825_v42 = vld [vmem:[#allocation3 + $0x30] sm:$0xff] }
  0xb5   : > { %v826_v36 = vpop.permute.xlu1 %825  ;;  %v9827_v44 = vld [vmem:[#allocation3 + $0x38] sm:$0xff]  ;;  %924 = vst.msk [vmem:[#allocation3 + $0x40] sm:$0xff] %vm915_vm5, %v824_v35  ;;  %8232 = vmatprep.mubr.msk.f32.mxu0 %vm1024_vm6, %v9825_v42 }
  0xb6   : > { %925 = vst.msk [vmem:[#allocation3 + $0x48] sm:$0xff] %vm915_vm5, %v826_v36  ;;  %8233 = vmatmul.mubr.msk.f32.gmra.mrb[4].mxu0 %vm1024_vm6, %v9827_v44  ;;  %3050 = vrot.lane.b32.xlu0 %v9778_v50, %s9323_s20 }
  0xb7   : > { %3052 = vrot.lane.b32.xlu1 %v9780_v53, %s9323_s20 }
  0xb8   : > { %v611_v47 = vpop.permute.xlu0 %610 }
  0xb9   : > { %v613_v48 = vpop.permute.xlu1 %612  ;;  %709 = vst.msk [vmem:[#allocation3 + $0x50] sm:$0xff] %vm698_vm4, %v611_v47 }
  0xba   : > { %710 = vst.msk [vmem:[#allocation3 + $0x58] sm:$0xff] %vm698_vm4, %v613_v48 }
  0xbc   : > { %v828_v51 = vpop.permute.xlu0 %827  ;;  %v9837_v54 = vld [vmem:[#allocation3 + $0x40] sm:$0xff] }
  0xbd   : > { %v830_v52 = vpop.permute.xlu1 %829  ;;  %v9839_v56 = vld [vmem:[#allocation3 + $0x48] sm:$0xff]  ;;  %926 = vst.msk [vmem:[#allocation3 + $0x50] sm:$0xff] %vm915_vm5, %v828_v51  ;;  %8235 = vmatprep.mubr.msk.f32.mxu0 %vm1024_vm6, %v9837_v54 }
  0xbe   : > { %927 = vst.msk [vmem:[#allocation3 + $0x58] sm:$0xff] %vm915_vm5, %v830_v52  ;;  %8236 = vmatmul.mubr.msk.f32.gmra.mrb[6].mxu0 %vm1024_vm6, %v9839_v56 }
  0xc0   : > { %v615_v57 = vpop.permute.xlu0 %614 }
  0xc1   : > { %v617_v58 = vpop.permute.xlu1 %616  ;;  %711 = vst.msk [vmem:[#allocation3 + $0x60] sm:$0xff] %vm698_vm4, %v615_v57 }
  0xc2   : > { %712 = vst.msk [vmem:[#allocation3 + $0x68] sm:$0xff] %vm698_vm4, %v617_v58 }
  0xc4   : > { %v832_v59 = vpop.permute.xlu0 %831  ;;  %v9849_v62 = vld [vmem:[#allocation3 + $0x50] sm:$0xff] }
  0xc5   : > { %v834_v60 = vpop.permute.xlu1 %833  ;;  %v9851_v0 = vld [vmem:[#allocation3 + $0x58] sm:$0xff]  ;;  %928 = vst.msk [vmem:[#allocation3 + $0x60] sm:$0xff] %vm915_vm5, %v832_v59  ;;  %8238 = vmatprep.mubr.msk.f32.mxu0 %vm1024_vm6, %v9849_v62 }
  0xc6   : > { %929 = vst.msk [vmem:[#allocation3 + $0x68] sm:$0xff] %vm915_vm5, %v834_v60  ;;  %8239 = vmatmul.mubr.msk.f32.gmra.mrb[8].mxu0 %vm1024_vm6, %v9851_v0 }
  0xc8   : > { %v619_v25 = vpop.permute.xlu0 %618 }
  0xc9   : > { %v621_v26 = vpop.permute.xlu1 %620  ;;  %713 = vst.msk [vmem:[#allocation3 + $0x70] sm:$0xff] %vm698_vm4, %v619_v25 }
  0xca   : > { %714 = vst.msk [vmem:[#allocation3 + $0x78] sm:$0xff] %vm698_vm4, %v621_v26 }
  0xcc   : > { %v836_v29 = vpop.permute.xlu0 %835  ;;  %v9861_v31 = vld [vmem:[#allocation3 + $0x60] sm:$0xff] }
  0xcd   : > { %v838_v30 = vpop.permute.xlu1 %837  ;;  %v9863_v33 = vld [vmem:[#allocation3 + $0x68] sm:$0xff]  ;;  %930 = vst.msk [vmem:[#allocation3 + $0x70] sm:$0xff] %vm915_vm5, %v836_v29  ;;  %8241 = vmatprep.mubr.msk.f32.mxu0 %vm1024_vm6, %v9861_v31 }
  0xce   : > { %931 = vst.msk [vmem:[#allocation3 + $0x78] sm:$0xff] %vm915_vm5, %v838_v30  ;;  %8242 = vmatmul.mubr.msk.f32.gmra.mrb[10].mxu0 %vm1024_vm6, %v9863_v33 }
  0xd0   : > { %v623_v34 = vpop.permute.xlu0 %622 }
  0xd1   : > { %v625_v35 = vpop.permute.xlu1 %624  ;;  %715 = vst.msk [vmem:[#allocation3 + $0x80] sm:$0xff] %vm698_vm4, %v623_v34 }
  0xd2   : > { %716 = vst.msk [vmem:[#allocation3 + $0x88] sm:$0xff] %vm698_vm4, %v625_v35 }
  0xd4   : > { %v840_v36 = vpop.permute.xlu0 %839  ;;  %v9873_v48 = vld [vmem:[#allocation3 + $0x70] sm:$0xff] }
  0xd5   : > { %v842_v47 = vpop.permute.xlu1 %841  ;;  %v9875_v51 = vld [vmem:[#allocation3 + $0x78] sm:$0xff]  ;;  %932 = vst.msk [vmem:[#allocation3 + $0x80] sm:$0xff] %vm915_vm5, %v840_v36  ;;  %8244 = vmatprep.mubr.msk.f32.mxu0 %vm1024_vm6, %v9873_v48 }
  0xd6   : > { %933 = vst.msk [vmem:[#allocation3 + $0x88] sm:$0xff] %vm915_vm5, %v842_v47  ;;  %8245 = vmatmul.mubr.msk.f32.gmra.mrb[12].mxu0 %vm1024_vm6, %v9875_v51 }
  0xd8   : > { %v627_v52 = vpop.permute.xlu0 %626 }
  0xd9   : > { %v629_v57 = vpop.permute.xlu1 %628  ;;  %717 = vst.msk [vmem:[#allocation3 + $0x90] sm:$0xff] %vm698_vm4, %v627_v52 }
  0xda   : > { %718 = vst.msk [vmem:[#allocation3 + $0x98] sm:$0xff] %vm698_vm4, %v629_v57 }
  0xdc   : > { %v844_v58 = vpop.permute.xlu0 %843  ;;  %v9885_v60 = vld [vmem:[#allocation3 + $0x80] sm:$0xff] }
  0xdd   : > { %v846_v59 = vpop.permute.xlu1 %845  ;;  %v9887_v25 = vld [vmem:[#allocation3 + $0x88] sm:$0xff]  ;;  %934 = vst.msk [vmem:[#allocation3 + $0x90] sm:$0xff] %vm915_vm5, %v844_v58  ;;  %8247 = vmatprep.mubr.msk.f32.mxu0 %vm1024_vm6, %v9885_v60 }
  0xde   : > { %935 = vst.msk [vmem:[#allocation3 + $0x98] sm:$0xff] %vm915_vm5, %v846_v59  ;;  %8248 = vmatmul.mubr.msk.f32.gmra.mrb[14].mxu0 %vm1024_vm6, %v9887_v25 }
  0xe0   : > { %v631_v26 = vpop.permute.xlu0 %630 }
  0xe1   : > { %v633_v29 = vpop.permute.xlu1 %632  ;;  %719 = vst.msk [vmem:[#allocation3 + $0xa0] sm:$0xff] %vm698_vm4, %v631_v26 }
  0xe2   : > { %720 = vst.msk [vmem:[#allocation3 + $0xa8] sm:$0xff] %vm698_vm4, %v633_v29 }
  0xe4   : > { %v848_v30 = vpop.permute.xlu0 %847  ;;  %v9897_v35 = vld [vmem:[#allocation3 + $0x90] sm:$0xff] }
  0xe5   : > { %v850_v34 = vpop.permute.xlu1 %849  ;;  %v9899_v36 = vld [vmem:[#allocation3 + $0x98] sm:$0xff]  ;;  %936 = vst.msk [vmem:[#allocation3 + $0xa0] sm:$0xff] %vm915_vm5, %v848_v30  ;;  %8250 = vmatprep.mubr.msk.f32.mxu0 %vm1024_vm6, %v9897_v35 }
  0xe6   : > { %937 = vst.msk [vmem:[#allocation3 + $0xa8] sm:$0xff] %vm915_vm5, %v850_v34  ;;  %8251 = vmatmul.mubr.msk.f32.gmra.mrb[16].mxu0 %vm1024_vm6, %v9899_v36 }
  0xe8   : > { %v635_v47 = vpop.permute.xlu0 %634 }
  0xe9   : > { %v637_v52 = vpop.permute.xlu1 %636  ;;  %721 = vst.msk [vmem:[#allocation3 + $0xb0] sm:$0xff] %vm698_vm4, %v635_v47 }
  0xea   : > { %722 = vst.msk [vmem:[#allocation3 + $0xb8] sm:$0xff] %vm698_vm4, %v637_v52 }
  0xec   : > { %v852_v57 = vpop.permute.xlu0 %851  ;;  %v9909_v59 = vld [vmem:[#allocation3 + $0xa0] sm:$0xff] }
  0xed   : > { %v854_v58 = vpop.permute.xlu1 %853  ;;  %v9911_v26 = vld [vmem:[#allocation3 + $0xa8] sm:$0xff]  ;;  %938 = vst.msk [vmem:[#allocation3 + $0xb0] sm:$0xff] %vm915_vm5, %v852_v57  ;;  %8253 = vmatprep.mubr.msk.f32.mxu0 %vm1024_vm6, %v9909_v59 }
  0xee   : > { %939 = vst.msk [vmem:[#allocation3 + $0xb8] sm:$0xff] %vm915_vm5, %v854_v58  ;;  %8254 = vmatmul.mubr.msk.f32.gmra.mrb[18].mxu0 %vm1024_vm6, %v9911_v26 }
  0xf0   : > { %v639_v29 = vpop.permute.xlu0 %638 }
  0xf1   : > { %v641_v30 = vpop.permute.xlu1 %640  ;;  %723 = vst.msk [vmem:[#allocation3 + $0xc0] sm:$0xff] %vm698_vm4, %v639_v29 }
  0xf2   : > { %724 = vst.msk [vmem:[#allocation3 + $0xc8] sm:$0xff] %vm698_vm4, %v641_v30 }
  0xf4   : > { %v856_v34 = vpop.permute.xlu0 %855  ;;  %v9921_v52 = vld [vmem:[#allocation3 + $0xb0] sm:$0xff] }
  0xf5   : > { %v858_v47 = vpop.permute.xlu1 %857  ;;  %v9923_v46 = vld [vmem:[#allocation3 + $0xb8] sm:$0xff]  ;;  %940 = vst.msk [vmem:[#allocation3 + $0xc0] sm:$0xff] %vm915_vm5, %v856_v34  ;;  %8256 = vmatprep.mubr.msk.f32.mxu0 %vm1024_vm6, %v9921_v52 }
  0xf6   : > { %941 = vst.msk [vmem:[#allocation3 + $0xc8] sm:$0xff] %vm915_vm5, %v858_v47  ;;  %8257 = vmatmul.mubr.msk.f32.gmra.mrb[20].mxu0 %vm1024_vm6, %v9923_v46 }
  0xf8   : > { %v643_v57 = vpop.permute.xlu0 %642 }
  0xf9   : > { %v645_v58 = vpop.permute.xlu1 %644  ;;  %725 = vst.msk [vmem:[#allocation3 + $0xd0] sm:$0xff] %vm698_vm4, %v643_v57 }
  0xfa   : > { %726 = vst.msk [vmem:[#allocation3 + $0xd8] sm:$0xff] %vm698_vm4, %v645_v58 }
  0xfc   : > { %v860_v29 = vpop.permute.xlu0 %859  ;;  %v9933_v45 = vld [vmem:[#allocation3 + $0xc0] sm:$0xff] }
  0xfd   : > { %v862_v30 = vpop.permute.xlu1 %861  ;;  %v9935_v43 = vld [vmem:[#allocation3 + $0xc8] sm:$0xff]  ;;  %942 = vst.msk [vmem:[#allocation3 + $0xd0] sm:$0xff] %vm915_vm5, %v860_v29  ;;  %8259 = vmatprep.mubr.msk.f32.mxu0 %vm1024_vm6, %v9933_v45 }
  0xfe   : > { %943 = vst.msk [vmem:[#allocation3 + $0xd8] sm:$0xff] %vm915_vm5, %v862_v30  ;;  %8260 = vmatmul.mubr.msk.f32.gmra.mrb[22].mxu0 %vm1024_vm6, %v9935_v43 }
 0x100   : > { %v647_v34 = vpop.permute.xlu0 %646 }
 0x101   : > { %v649_v47 = vpop.permute.xlu1 %648  ;;  %727 = vst.msk [vmem:[#allocation3 + $0xe0] sm:$0xff] %vm698_vm4, %v647_v34 }
 0x102   : > { %728 = vst.msk [vmem:[#allocation3 + $0xe8] sm:$0xff] %vm698_vm4, %v649_v47 }
 0x104   : > { %v864_v57 = vpop.permute.xlu0 %863  ;;  %v9945_v41 = vld [vmem:[#allocation3 + $0xd0] sm:$0xff] }
 0x105   : > { %v866_v58 = vpop.permute.xlu1 %865  ;;  %v9947_v40 = vld [vmem:[#allocation3 + $0xd8] sm:$0xff]  ;;  %944 = vst.msk [vmem:[#allocation3 + $0xe0] sm:$0xff] %vm915_vm5, %v864_v57  ;;  %8262 = vmatprep.mubr.msk.f32.mxu0 %vm1024_vm6, %v9945_v41 }
 0x106   : > { %945 = vst.msk [vmem:[#allocation3 + $0xe8] sm:$0xff] %vm915_vm5, %v866_v58  ;;  %8263 = vmatmul.mubr.msk.f32.gmra.mrb[24].mxu0 %vm1024_vm6, %v9947_v40 }
 0x108   : > { %v651_v29 = vpop.permute.xlu0 %650 }
 0x109   : > { %v653_v30 = vpop.permute.xlu1 %652  ;;  %729 = vst.msk [vmem:[#allocation3 + $0xf0] sm:$0xff] %vm698_vm4, %v651_v29  ;;  %v480_v29 = vld [vmem:[#allocation2 + $0x198] sm:$0xff] }
 0x10a   : > { %730 = vst.msk [vmem:[#allocation3 + $0xf8] sm:$0xff] %vm698_vm4, %v653_v30  ;;  %v481_v30 = vld [vmem:[#allocation2 + $0x1a0] sm:$0xff] }
 0x10b   : > { %516 = vst.msk [vmem:[#allocation3 + $0x110] sm:$0xff] %vm412_vm1, %v480_v29  ;;  %517 = vst.msk [vmem:[#allocation3 + $0x118] sm:$0xff] %vm412_vm1, %v481_v30 }
 0x10c   : > { %v868_v34 = vpop.permute.xlu0 %867  ;;  %v9957_v39 = vld [vmem:[#allocation3 + $0xe0] sm:$0xff] }
 0x10d   : > { %v870_v47 = vpop.permute.xlu1 %869  ;;  %v9959_v38 = vld [vmem:[#allocation3 + $0xe8] sm:$0xff]  ;;  %946 = vst.msk [vmem:[#allocation3 + $0xf0] sm:$0xff] %vm915_vm5, %v868_v34  ;;  %8265 = vmatprep.mubr.msk.f32.mxu0 %vm1024_vm6, %v9957_v39 }
 0x10e   : > { %947 = vst.msk [vmem:[#allocation3 + $0xf8] sm:$0xff] %vm915_vm5, %v870_v47  ;;  %8266 = vmatmul.mubr.msk.f32.gmra.mrb[26].mxu0 %vm1024_vm6, %v9959_v38 }
 0x110   : > { %v655_v57 = vpop.permute.xlu0 %654 }
 0x111   : > { %v657_v58 = vpop.permute.xlu1 %656  ;;  %731 = vst.msk [vmem:[#allocation3 + $0x100] sm:$0xff] %vm698_vm4, %v655_v57 }
 0x112   : > { %732 = vst.msk [vmem:[#allocation3 + $0x108] sm:$0xff] %vm698_vm4, %v657_v58 }
 0x114   : > { %v872_v37 = vpop.permute.xlu0 %871  ;;  %v9969_v24 = vld [vmem:[#allocation3 + $0xf0] sm:$0xff] }
 0x115   : > { %v9971_v34 = vld [vmem:[#allocation3 + $0xf8] sm:$0xff]  ;;  %948 = vst.msk [vmem:[#allocation3 + $0x100] sm:$0xff] %vm915_vm5, %v872_v37  ;;  %v874_v47 = vpop.permute.xlu1 %873  ;;  %8268 = vmatprep.mubr.msk.f32.mxu0 %vm1024_vm6, %v9969_v24 }
 0x116   : > { %949 = vst.msk [vmem:[#allocation3 + $0x108] sm:$0xff] %vm915_vm5, %v874_v47  ;;  %8269 = vmatmul.mubr.msk.f32.gmra.mrb[28].mxu0 %vm1024_vm6, %v9971_v34 }
 0x118   : > { %v591_v57 = vpop.permute.xlu0 %590 }
 0x119   : > { %699 = vst.msk [vmem:[#allocation3] sm:$0xff] %vm698_vm4, %v591_v57  ;;  %v593_v58 = vpop.permute.xlu1 %592 }
 0x11a   : > { %700 = vst.msk [vmem:[#allocation3 + $0x8] sm:$0xff] %vm698_vm4, %v593_v58 }
 0x11c   : > { %v808_v29 = vpop.permute.xlu0 %807  ;;  %v9983_v23 = vld [vmem:[#allocation3 + $0x100] sm:$0xff] }
 0x11d   : > { %916 = vst.msk [vmem:[#allocation3] sm:$0xff] %vm915_vm5, %v808_v29  ;;  %v810_v37 = vpop.permute.xlu1 %809  ;;  %8271 = vmatprep.mubr.msk.f32.mxu0 %vm1024_vm6, %v9983_v23  ;;  %v9988_v30 = vld [vmem:[#allocation3 + $0x108] sm:$0xff] }
 0x11e   : > { %917 = vst.msk [vmem:[#allocation3 + $0x8] sm:$0xff] %vm915_vm5, %v810_v37  ;;  %8272 = vmatmul.mubr.msk.f32.gmra.mrb[30].mxu0 %vm1024_vm6, %v9988_v30 }
 0x120   : > { %v659_v47 = vpop.permute.xlu0 %658 }
 0x121   : > { %733 = vst.msk [vmem:[#allocation3 + $0x110] sm:$0xff] %vm698_vm4, %v659_v47  ;;  %v661_v57 = vpop.permute.xlu1 %660 }
 0x122   : > { %734 = vst.msk [vmem:[#allocation3 + $0x118] sm:$0xff] %vm698_vm4, %v661_v57 }
 0x124   : > { %v952_v58 = vld [vmem:[#allocation3] sm:$0xff]  ;;  %v876_v22 = vpop.permute.xlu0 %875 }
 0x125   : > { %8280 = vmatprep.mubr.msk.f32.mxu0 %vm1024_vm6, %v952_v58  ;;  %v953_v29 = vld [vmem:[#allocation3 + $0x8] sm:$0xff]  ;;  %950 = vst.msk [vmem:[#allocation3 + $0x110] sm:$0xff] %vm915_vm5, %v876_v22  ;;  %v878_v37 = vpop.permute.xlu1 %877 }
 0x126   : > { %8281 = vmatmul.mubr.msk.f32.vlgmr.msra.gmra.mrb[0].mxu0 %vm1024_vm6, %v953_v29  ;;  %951 = vst.msk [vmem:[#allocation3 + $0x118] sm:$0xff] %vm915_vm5, %v878_v37 }
 0x127   : > { %8947 = vmatpush3.bf16.msra.mxu0 %v9802_v63  ;;  %8283 = vmatprep.mubr.msk.f32.mxu0 %vm1024_vm6, %v9772_v49  ;;  %2943 = vst.msk [vmem:[#allocation3 + $0x8] sm:$0xff] %vm2941_vm8, %v9758_v32  ;;  %2942 = vst.msk [vmem:[#allocation3] sm:$0xff] %vm2941_vm8, %v9754_v27 }
 0x128   : > { %8332 = vmatprep.subr.mxu0 %v7369_v21 }
 0x12a   : > { %8284 = vmatmul.mubr.msk.f32.gmra.mrb[2].mxu0 %vm1024_vm6, %v9787_v55 }
 0x12b   : > { %8286 = vmatprep.mubr.msk.f32.mxu0 %vm1024_vm6, %v9808_v28  ;;  %8333 = vmatpush3.msra.mxu0 %v7369_v21 }
 0x12c   : > { %v1698_v21 = vld [vmem:[#allocation3 + $0x110] sm:$0xff] }
 0x12d   : > { %v1699_v22 = vld [vmem:[#allocation3 + $0x118] sm:$0xff] }
 0x12e   : > { %8287 = vmatmul.mubr.msk.f32.gmra.mrb[4].mxu0 %vm1024_vm6, %v9810_v61 }
 0x12f   : > { %8289 = vmatprep.mubr.msk.f32.mxu0 %vm1024_vm6, %v9825_v42 }
 0x132   : > { %8290 = vmatmul.mubr.msk.f32.gmra.mrb[6].mxu0 %vm1024_vm6, %v9827_v44 }
 0x133   : > { %8292 = vmatprep.mubr.msk.f32.mxu0 %vm1024_vm6, %v9837_v54 }
 0x136   : > { %8293 = vmatmul.mubr.msk.f32.gmra.mrb[8].mxu0 %vm1024_vm6, %v9839_v56 }
 0x137   : > { %8295 = vmatprep.mubr.msk.f32.mxu0 %vm1024_vm6, %v9849_v62 }
 0x13a   : > { %8296 = vmatmul.mubr.msk.f32.gmra.mrb[10].mxu0 %vm1024_vm6, %v9851_v0 }
 0x13b   : > { %8298 = vmatprep.mubr.msk.f32.mxu0 %vm1024_vm6, %v9861_v31 }
 0x13e   : > { %8299 = vmatmul.mubr.msk.f32.gmra.mrb[12].mxu0 %vm1024_vm6, %v9863_v33 }
 0x13f   : > { %8301 = vmatprep.mubr.msk.f32.mxu0 %vm1024_vm6, %v9873_v48 }
 0x142   : > { %8302 = vmatmul.mubr.msk.f32.gmra.mrb[14].mxu0 %vm1024_vm6, %v9875_v51 }
 0x143   : > { %8304 = vmatprep.mubr.msk.f32.mxu0 %vm1024_vm6, %v9885_v60 }
 0x146   : > { %8305 = vmatmul.mubr.msk.f32.gmra.mrb[16].mxu0 %vm1024_vm6, %v9887_v25 }
 0x147   : > { %8307 = vmatprep.mubr.msk.f32.mxu0 %vm1024_vm6, %v9897_v35 }
 0x14a   : > { %8308 = vmatmul.mubr.msk.f32.gmra.mrb[18].mxu0 %vm1024_vm6, %v9899_v36 }
 0x14b   : > { %8310 = vmatprep.mubr.msk.f32.mxu0 %vm1024_vm6, %v9909_v59 }
 0x14e   : > { %8311 = vmatmul.mubr.msk.f32.gmra.mrb[20].mxu0 %vm1024_vm6, %v9911_v26 }
 0x14f   : > { %8313 = vmatprep.mubr.msk.f32.mxu0 %vm1024_vm6, %v9921_v52 }
 0x152   : > { %8314 = vmatmul.mubr.msk.f32.gmra.mrb[22].mxu0 %vm1024_vm6, %v9923_v46 }
 0x153   : > { %8316 = vmatprep.mubr.msk.f32.mxu0 %vm1024_vm6, %v9933_v45 }
 0x156   : > { %8317 = vmatmul.mubr.msk.f32.gmra.mrb[24].mxu0 %vm1024_vm6, %v9935_v43 }
 0x157   : > { %8319 = vmatprep.mubr.msk.f32.mxu0 %vm1024_vm6, %v9945_v41 }
 0x15a   : > { %8320 = vmatmul.mubr.msk.f32.gmra.mrb[26].mxu0 %vm1024_vm6, %v9947_v40 }
 0x15b   : > { %8322 = vmatprep.mubr.msk.f32.mxu0 %vm1024_vm6, %v9957_v39 }
 0x15e   : > { %8323 = vmatmul.mubr.msk.f32.gmra.mrb[28].mxu0 %vm1024_vm6, %v9959_v38 }
 0x15f   : > { %8325 = vmatprep.mubr.msk.f32.mxu0 %vm1024_vm6, %v9969_v24 }
 0x162   : > { %8326 = vmatmul.mubr.msk.f32.gmra.mrb[30].mxu0 %vm1024_vm6, %v9971_v34 }
 0x163   : > { %8334 = vmatprep.mubr.msk.f32.mxu0 %vm1024_vm6, %v9808_v28 }
 0x166   : > { %8335 = vmatmul.mubr.msk.f32.vlgmr.msra.gmra.mrb[0].mxu0 %vm1024_vm6, %v9810_v61 }
 0x167   : > { %8337 = vmatprep.mubr.msk.f32.mxu0 %vm1024_vm6, %v9825_v42 }
 0x16a   : > { %8338 = vmatmul.mubr.msk.f32.gmra.mrb[2].mxu0 %vm1024_vm6, %v9827_v44 }
 0x16b   : > { %8340 = vmatprep.mubr.msk.f32.mxu0 %vm1024_vm6, %v9837_v54 }
 0x16e   : > { %8341 = vmatmul.mubr.msk.f32.gmra.mrb[4].mxu0 %vm1024_vm6, %v9839_v56 }
 0x16f   : > { %8343 = vmatprep.mubr.msk.f32.mxu0 %vm1024_vm6, %v9849_v62 }
 0x172   : > { %8344 = vmatmul.mubr.msk.f32.gmra.mrb[6].mxu0 %vm1024_vm6, %v9851_v0 }
 0x173   : > { %8346 = vmatprep.mubr.msk.f32.mxu0 %vm1024_vm6, %v9861_v31 }
 0x176   : > { %8347 = vmatmul.mubr.msk.f32.gmra.mrb[8].mxu0 %vm1024_vm6, %v9863_v33 }
 0x177   : > { %8349 = vmatprep.mubr.msk.f32.mxu0 %vm1024_vm6, %v9873_v48 }
 0x17a   : > { %8350 = vmatmul.mubr.msk.f32.gmra.mrb[10].mxu0 %vm1024_vm6, %v9875_v51 }
 0x17b   : > { %8352 = vmatprep.mubr.msk.f32.mxu0 %vm1024_vm6, %v9885_v60 }
 0x17e   : > { %8353 = vmatmul.mubr.msk.f32.gmra.mrb[12].mxu0 %vm1024_vm6, %v9887_v25 }
 0x17f   : > { %8355 = vmatprep.mubr.msk.f32.mxu0 %vm1024_vm6, %v9897_v35 }
 0x182   : > { %8356 = vmatmul.mubr.msk.f32.gmra.mrb[14].mxu0 %vm1024_vm6, %v9899_v36 }
 0x183   : > { %8358 = vmatprep.mubr.msk.f32.mxu0 %vm1024_vm6, %v9909_v59 }
 0x186   : > { %8359 = vmatmul.mubr.msk.f32.gmra.mrb[16].mxu0 %vm1024_vm6, %v9911_v26 }
 0x187   : > { %8361 = vmatprep.mubr.msk.f32.mxu0 %vm1024_vm6, %v9921_v52 }
 0x18a   : > { %8362 = vmatmul.mubr.msk.f32.gmra.mrb[18].mxu0 %vm1024_vm6, %v9923_v46 }
 0x18b   : > { %8364 = vmatprep.mubr.msk.f32.mxu0 %vm1024_vm6, %v9933_v45 }
 0x18e   : > { %8365 = vmatmul.mubr.msk.f32.gmra.mrb[20].mxu0 %vm1024_vm6, %v9935_v43 }
 0x18f   : > { %8367 = vmatprep.mubr.msk.f32.mxu0 %vm1024_vm6, %v9945_v41 }
 0x192   : > { %8368 = vmatmul.mubr.msk.f32.gmra.mrb[22].mxu0 %vm1024_vm6, %v9947_v40 }
 0x193   : > { %8370 = vmatprep.mubr.msk.f32.mxu0 %vm1024_vm6, %v9957_v39  ;;  %v10145_v39 = vld [vmem:[%s11720_s2] ss:$0 sm:$0xff] }
 0x196   : > { %8371 = vmatmul.mubr.msk.f32.gmra.mrb[24].mxu0 %vm1024_vm6, %v9959_v38  ;;  %v3051_v38 = vpop.permute.xlu0 %3050 }
 0x197   : > { %8373 = vmatprep.mubr.msk.f32.mxu0 %vm1024_vm6, %v9969_v24  ;;  %v3053_v24 = vpop.permute.xlu1 %3052  ;;  %3159 = vst.msk [vmem:[#allocation3] sm:$0xff] %vm3158_vm9, %v3051_v38 }
 0x198   : > { %3160 = vst.msk [vmem:[#allocation3 + $0x8] sm:$0xff] %vm3158_vm9, %v3053_v24 }
 0x19a   : > { %8374 = vmatmul.mubr.msk.f32.gmra.mrb[26].mxu0 %vm1024_vm6, %v9971_v34 }
 0x19b   : > { %8376 = vmatprep.mubr.msk.f32.mxu0 %vm1024_vm6, %v9983_v23  ;;  %v2289_v23 = vld [vmem:[%s11725_s7 + $0x8] sm:$0xf] }
 0x19c   : > { %8382 = vmatprep.subr.msk.mxu0 %vm2355_vm7, %v2289_v23  ;;  %9008 = vmatprep.subr.msk.mxu1 %vm2355_vm7, %v2289_v23 }
 0x19d   : > { %8383 = vmatpush3.msk.msra.mxu0 %vm2355_vm7, %v2289_v23  ;;  %9009 = vmatpush3.msk.msra.mxu1 %vm2355_vm7, %v2289_v23 }
 0x19e   : > { %8377 = vmatmul.mubr.msk.f32.gmra.mrb[28].mxu0 %vm1024_vm6, %v9988_v30 }
 0x19f   : > { %8379 = vmatprep.mubr.msk.f32.mxu0 %vm1024_vm6, %v1698_v21 }
 0x1a2   : > { %8380 = vmatmul.mubr.msk.f32.gmra.mrb[30].mxu0 %vm1024_vm6, %v1699_v22 }
 0x239   : > { %v8336_v40 = vpop.f32.mrb[0].mxu0 }
 0x23a   : > { %v2065_v41 = vadd.f32 %v8336_v40, %v10145_v39  ;;  %v1866_v43 = vpop.f32.mrb[1].mxu0 }
 0x23b   : > { %v2064_v45 = vadd.f32 %v10145_v39, %v1866_v43 }
 0x23c   : > { %v2097_v46 = vmax.f32 %v2065_v41, 0.0 }
 0x23d   : > { %v2096_v27 = vmax.f32 %v2064_v45, 0.0  ;;  %v8339_v32 = vpop.f32.mrb[2].mxu0 }
 0x23e   : > { %v2067_v49 = vadd.f32 %v8339_v32, %v10145_v39  ;;  %2162 = vrot.lane.b32.xlu1 %v2097_v46, %s9321_s16  ;;  %v1876_v50 = vpop.f32.mrb[3].mxu0 }
 0x23f   : > { %v2066_v53 = vadd.f32 %v10145_v39, %v1876_v50  ;;  %2160 = vrot.lane.b32.xlu0 %v2096_v27, %s9321_s16  ;;  %8384 = vmatprep.mubr.msk.f32.mxu0 %vm2290_vm10, %v2096_v27 }
 0x240   : > { %v2099_v55 = vmax.f32 %v2067_v49, 0.0  ;;  %8385 = vmatmul.mubr.msk.f32.vlgmr.msra.gmra.mrb[32].mxu0 %vm2290_vm10, %v2097_v46 }
 0x241   : > { %v2098_v63 = vmax.f32 %v2066_v53, 0.0  ;;  %v8342_v28 = vpop.f32.mrb[4].mxu0 }
 0x242   : > { %v2069_v61 = vadd.f32 %v8342_v28, %v10145_v39  ;;  %2166 = vrot.lane.b32.xlu1 %v2099_v55, %s9321_s16  ;;  %v1886_v42 = vpop.f32.mrb[5].mxu0 }
 0x243   : > { %v2068_v44 = vadd.f32 %v10145_v39, %v1886_v42  ;;  %2164 = vrot.lane.b32.xlu0 %v2098_v63, %s9321_s16  ;;  %8387 = vmatprep.mubr.msk.f32.mxu0 %vm2290_vm10, %v2098_v63 }
 0x244   : > { %v2101_v54 = vmax.f32 %v2069_v61, 0.0  ;;  %8388 = vmatmul.mubr.msk.f32.gmra.mrb[34].mxu0 %vm2290_vm10, %v2099_v55 }
 0x245   : > { %v2100_v56 = vmax.f32 %v2068_v44, 0.0  ;;  %v8345_v62 = vpop.f32.mrb[6].mxu0 }
 0x246   : > { %v2071_v0 = vadd.f32 %v8345_v62, %v10145_v39  ;;  %2170 = vrot.lane.b32.xlu1 %v2101_v54, %s9321_s16  ;;  %v1896_v31 = vpop.f32.mrb[7].mxu0 }
 0x247   : > { %v2070_v33 = vadd.f32 %v10145_v39, %v1896_v31  ;;  %2168 = vrot.lane.b32.xlu0 %v2100_v56, %s9321_s16  ;;  %8390 = vmatprep.mubr.msk.f32.mxu0 %vm2290_vm10, %v2100_v56 }
 0x248   : > { %v2103_v48 = vmax.f32 %v2071_v0, 0.0  ;;  %8391 = vmatmul.mubr.msk.f32.gmra.mrb[36].mxu0 %vm2290_vm10, %v2101_v54 }
 0x249   : > { %v2102_v51 = vmax.f32 %v2070_v33, 0.0  ;;  %v8348_v60 = vpop.f32.mrb[8].mxu0 }
 0x24a   : > { %v2073_v25 = vadd.f32 %v8348_v60, %v10145_v39  ;;  %2174 = vrot.lane.b32.xlu1 %v2103_v48, %s9321_s16  ;;  %v1906_v35 = vpop.f32.mrb[9].mxu0 }
 0x24b   : > { %v2072_v36 = vadd.f32 %v10145_v39, %v1906_v35  ;;  %2172 = vrot.lane.b32.xlu0 %v2102_v51, %s9321_s16  ;;  %8393 = vmatprep.mubr.msk.f32.mxu0 %vm2290_vm10, %v2102_v51 }
 0x24c   : > { %v2105_v59 = vmax.f32 %v2073_v25, 0.0  ;;  %8394 = vmatmul.mubr.msk.f32.gmra.mrb[38].mxu0 %vm2290_vm10, %v2103_v48 }
 0x24d   : > { %v2104_v26 = vmax.f32 %v2072_v36, 0.0  ;;  %v8351_v52 = vpop.f32.mrb[10].mxu0 }
 0x24e   : > { %v2075_v34 = vadd.f32 %v8351_v52, %v10145_v39  ;;  %2178 = vrot.lane.b32.xlu1 %v2105_v59, %s9321_s16  ;;  %v1916_v30 = vpop.f32.mrb[11].mxu0 }
 0x24f   : > { %v2074_v47 = vadd.f32 %v10145_v39, %v1916_v30  ;;  %2176 = vrot.lane.b32.xlu0 %v2104_v26, %s9321_s16  ;;  %8396 = vmatprep.mubr.msk.f32.mxu0 %vm2290_vm10, %v2104_v26 }
 0x250   : > { %v2107_v57 = vmax.f32 %v2075_v34, 0.0  ;;  %8397 = vmatmul.mubr.msk.f32.gmra.mrb[40].mxu0 %vm2290_vm10, %v2105_v59 }
 0x251   : > { %v2106_v58 = vmax.f32 %v2074_v47, 0.0  ;;  %v8354_v29 = vpop.f32.mrb[12].mxu0 }
 0x252   : > { %v2077_v37 = vadd.f32 %v8354_v29, %v10145_v39  ;;  %2182 = vrot.lane.b32.xlu1 %v2107_v57, %s9321_s16  ;;  %v1926_v21 = vpop.f32.mrb[13].mxu0 }
 0x253   : > { %v2076_v22 = vadd.f32 %v10145_v39, %v1926_v21  ;;  %2180 = vrot.lane.b32.xlu0 %v2106_v58, %s9321_s16  ;;  %8399 = vmatprep.mubr.msk.f32.mxu0 %vm2290_vm10, %v2106_v58 }
 0x254   : > { %v2109_v23 = vmax.f32 %v2077_v37, 0.0  ;;  %8400 = vmatmul.mubr.msk.f32.gmra.mrb[42].mxu0 %vm2290_vm10, %v2107_v57 }
 0x255   : > { %v2108_v24 = vmax.f32 %v2076_v22, 0.0  ;;  %v8357_v38 = vpop.f32.mrb[14].mxu0 }
 0x256   : > { %v2079_v40 = vadd.f32 %v8357_v38, %v10145_v39  ;;  %2186 = vrot.lane.b32.xlu1 %v2109_v23, %s9321_s16  ;;  %v1936_v41 = vpop.f32.mrb[15].mxu0 }
 0x257   : > { %v2078_v43 = vadd.f32 %v10145_v39, %v1936_v41  ;;  %2184 = vrot.lane.b32.xlu0 %v2108_v24, %s9321_s16  ;;  %8402 = vmatprep.mubr.msk.f32.mxu0 %vm2290_vm10, %v2108_v24 }
 0x258   : > { %v2111_v45 = vmax.f32 %v2079_v40, 0.0  ;;  %8403 = vmatmul.mubr.msk.f32.gmra.mrb[44].mxu0 %vm2290_vm10, %v2109_v23 }
 0x259   : > { %v2110_v46 = vmax.f32 %v2078_v43, 0.0  ;;  %v8360_v27 = vpop.f32.mrb[16].mxu0 }
 0x25a   : > { %v2081_v32 = vadd.f32 %v8360_v27, %v10145_v39  ;;  %2190 = vrot.lane.b32.xlu1 %v2111_v45, %s9321_s16  ;;  %v1946_v49 = vpop.f32.mrb[17].mxu0 }
 0x25b   : > { %v2080_v50 = vadd.f32 %v10145_v39, %v1946_v49  ;;  %2188 = vrot.lane.b32.xlu0 %v2110_v46, %s9321_s16  ;;  %8405 = vmatprep.mubr.msk.f32.mxu1 %vm2290_vm10, %v2110_v46  ;;  %v445_v49 = vld [vmem:[%s11725_s7] sm:$0xff] }
 0x25c   : > { %v2113_v53 = vmax.f32 %v2081_v32, 0.0  ;;  %8406 = vmatmul.mubr.msk.f32.vlgmr.msra.gmra.mrb[0].mxu1 %vm2290_vm10, %v2111_v45  ;;  %8432 = vmatprep.subr.mxu1 %v445_v49 }
 0x25d   : > { %v2112_v55 = vmax.f32 %v2080_v50, 0.0  ;;  %v8363_v63 = vpop.f32.mrb[18].mxu0  ;;  %8433 = vmatpush3.msra.mxu1 %v445_v49 }
 0x25e   : > { %v2083_v28 = vadd.f32 %v8363_v63, %v10145_v39  ;;  %2194 = vrot.lane.b32.xlu1 %v2113_v53, %s9321_s16  ;;  %v1956_v61 = vpop.f32.mrb[19].mxu0  ;;  %v11786_v63 = vld [vmem:[#allocation15_spill] sm:$0xff] }
 0x25f   : > { %v2082_v42 = vadd.f32 %v10145_v39, %v1956_v61  ;;  %2192 = vrot.lane.b32.xlu0 %v2112_v55, %s9321_s16  ;;  %8408 = vmatprep.mubr.msk.f32.mxu1 %vm2290_vm10, %v2112_v55  ;;  %v11788_v61 = vld [vmem:[#allocation17_spill] sm:$0xff] }
 0x260   : > { %v2115_v44 = vmax.f32 %v2083_v28, 0.0  ;;  %8409 = vmatmul.mubr.msk.f32.gmra.mrb[2].mxu1 %vm2290_vm10, %v2113_v53  ;;  %v11787_v28 = vld [vmem:[#allocation16_spill] sm:$0xff] }
 0x261   : > { %v2114_v54 = vmax.f32 %v2082_v42, 0.0  ;;  %v8366_v56 = vpop.f32.mrb[20].mxu0  ;;  %v11789_v42 = vld [vmem:[#allocation18_spill] sm:$0xff] }
 0x262   : > { %v2085_v62 = vadd.f32 %v8366_v56, %v10145_v39  ;;  %2198 = vrot.lane.b32.xlu1 %v2115_v44, %s9321_s16  ;;  %v1966_v0 = vpop.f32.mrb[21].mxu0 }
 0x263   : > { %v2084_v31 = vadd.f32 %v10145_v39, %v1966_v0  ;;  %2196 = vrot.lane.b32.xlu0 %v2114_v54, %s9321_s16  ;;  %8411 = vmatprep.mubr.msk.f32.mxu1 %vm2290_vm10, %v2114_v54  ;;  %v7469_v54 = vld [vmem:[%s11721_s3 + $0x30] sm:$0xff]  ;;  %v11790_v0 = vld [vmem:[#allocation19_spill] sm:$0xff] }
 0x264   : > { %v2117_v33 = vmax.f32 %v2085_v62, 0.0  ;;  %8412 = vmatmul.mubr.msk.f32.gmra.mrb[4].mxu1 %vm2290_vm10, %v2115_v44  ;;  %v7468_v44 = vld [vmem:[%s11721_s3 + $0x28] sm:$0xff] }
 0x265   : > { %v2116_v48 = vmax.f32 %v2084_v31, 0.0  ;;  %v8369_v51 = vpop.f32.mrb[22].mxu0  ;;  %v8948_v56 = vpack.c.bf16 %v7469_v54, %v7468_v44 }
 0x266   : > { %v2087_v60 = vadd.f32 %v8369_v51, %v10145_v39  ;;  %2202 = vrot.lane.b32.xlu1 %v2117_v33, %s9321_s16  ;;  %v1976_v25 = vpop.f32.mrb[23].mxu0  ;;  %v7471_v51 = vld [vmem:[%s11721_s3 + $0x40] sm:$0xff] }
 0x267   : > { %v2086_v35 = vadd.f32 %v10145_v39, %v1976_v25  ;;  %2200 = vrot.lane.b32.xlu0 %v2116_v48, %s9321_s16  ;;  %8414 = vmatprep.mubr.msk.f32.mxu1 %vm2290_vm10, %v2116_v48  ;;  %v7470_v48 = vld [vmem:[%s11721_s3 + $0x38] sm:$0xff] }
 0x268   : > { %v2119_v36 = vmax.f32 %v2087_v60, 0.0  ;;  %8415 = vmatmul.mubr.msk.f32.gmra.mrb[6].mxu1 %vm2290_vm10, %v2117_v33  ;;  %v11791_v33 = vld [vmem:[#allocation20_spill] sm:$0xff]  ;;  %8949 = vmatprep.subr.bf16.mxu1 %v8948_v56  ;;  %v8952_v60 = vpack.c.bf16 %v7471_v51, %v7470_v48 }
 0x269   : > { %v2118_v59 = vmax.f32 %v2086_v35, 0.0  ;;  %v8372_v26 = vpop.f32.mrb[24].mxu0  ;;  %v11792_v35 = vld [vmem:[#allocation21_spill] sm:$0xff] }
 0x26a   : > { %v2089_v52 = vadd.f32 %v8372_v26, %v10145_v39  ;;  %2206 = vrot.lane.b32.xlu1 %v2119_v36, %s9321_s16  ;;  %v1986_v34 = vpop.f32.mrb[25].mxu0 }
 0x26b   : > { %v2088_v30 = vadd.f32 %v10145_v39, %v1986_v34  ;;  %2204 = vrot.lane.b32.xlu0 %v2118_v59, %s9321_s16  ;;  %8417 = vmatprep.mubr.msk.f32.mxu1 %vm2290_vm10, %v2118_v59  ;;  %v11793_v59 = vld [vmem:[#allocation22_spill] sm:$0xff]  ;;  %v11794_v34 = vld [vmem:[#allocation23_spill] sm:$0xff] }
 0x26c   : > { %v2121_v47 = vmax.f32 %v2089_v52, 0.0  ;;  %8418 = vmatmul.mubr.msk.f32.gmra.mrb[8].mxu1 %vm2290_vm10, %v2119_v36 }
 0x26d   : > { %v2120_v57 = vmax.f32 %v2088_v30, 0.0  ;;  %v8375_v58 = vpop.f32.mrb[26].mxu0  ;;  %v7472_v30 = vld [vmem:[%s11721_s3 + $0x48] sm:$0xf] }
 0x26e   : > { %v2091_v29 = vadd.f32 %v8375_v58, %v10145_v39  ;;  %2210 = vrot.lane.b32.xlu1 %v2121_v47, %s9321_s16  ;;  %v1996_v37 = vpop.f32.mrb[27].mxu0 }
 0x26f   : > { %v2090_v21 = vadd.f32 %v10145_v39, %v1996_v37  ;;  %2208 = vrot.lane.b32.xlu0 %v2120_v57, %s9321_s16  ;;  %8420 = vmatprep.mubr.msk.f32.mxu1 %vm2290_vm10, %v2120_v57 }
 0x270   : > { %v2123_v22 = vmax.f32 %v2091_v29, 0.0  ;;  %8421 = vmatmul.mubr.msk.f32.gmra.mrb[10].mxu1 %vm2290_vm10, %v2121_v47  ;;  %v11795_v29 = vld [vmem:[#allocation24_spill] sm:$0xff] }
 0x271   : > { %v2122_v23 = vmax.f32 %v2090_v21, 0.0  ;;  %v8378_v24 = vpop.f32.mrb[28].mxu0 }
 0x272   : > { %v2093_v38 = vadd.f32 %v8378_v24, %v10145_v39  ;;  %2214 = vrot.lane.b32.xlu1 %v2123_v22, %s9321_s16  ;;  %v2006_v40 = vpop.f32.mrb[29].mxu0 }
 0x273   : > { %v2092_v41 = vadd.f32 %v10145_v39, %v2006_v40  ;;  %2212 = vrot.lane.b32.xlu0 %v2122_v23, %s9321_s16  ;;  %8423 = vmatprep.mubr.msk.f32.mxu1 %vm2290_vm10, %v2122_v23  ;;  %v11796_v23 = vld [vmem:[#allocation25_spill] sm:$0xff] }
 0x274   : > { %v2125_v43 = vmax.f32 %v2093_v38, 0.0  ;;  %8424 = vmatmul.mubr.msk.f32.gmra.mrb[12].mxu1 %vm2290_vm10, %v2123_v22 }
 0x275   : > { %v2124_v45 = vmax.f32 %v2092_v41, 0.0  ;;  %v8381_v46 = vpop.f32.mrb[30].mxu0 }
 0x276   : > { %v2095_v27 = vadd.f32 %v8381_v46, %v10145_v39  ;;  %2218 = vrot.lane.b32.xlu1 %v2125_v43, %s9321_s16  ;;  %v2016_v32 = vpop.f32.mrb[31].mxu0 }
 0x277   : > { %v2094_v50 = vadd.f32 %v10145_v39, %v2016_v32  ;;  %2216 = vrot.lane.b32.xlu0 %v2124_v45, %s9321_s16  ;;  %8426 = vmatprep.mubr.msk.f32.mxu1 %vm2290_vm10, %v2124_v45  ;;  %v11785_v39 = vld [vmem:[#allocation14_spill] sm:$0xff] }
 0x278   : > { %v2127_v53 = vmax.f32 %v2095_v27, 0.0  ;;  %8427 = vmatmul.mubr.msk.f32.gmra.mrb[14].mxu1 %vm2290_vm10, %v2125_v43 }
 0x279   : > { %v2126_v55 = vmax.f32 %v2094_v50, 0.0 }
 0x27a   : > { %2222 = vrot.lane.b32.xlu1 %v2127_v53, %s9321_s16 }
 0x27b   : > { %2220 = vrot.lane.b32.xlu0 %v2126_v55, %s9321_s16  ;;  %8429 = vmatprep.mubr.msk.f32.mxu1 %vm2290_vm10, %v2126_v55 }
 0x27c   : > { %8430 = vmatmul.mubr.msk.f32.gmra.mrb[16].mxu1 %vm2290_vm10, %v2127_v53 }
 0x27d   : > { %8434 = vmatprep.mubr.msk.f32.mxu1 %vm412_vm1, %v9469_v1 }
 0x280   : > { %8435 = vmatmul.mubr.msk.f32.vlgmr.msra.gmra.mrb[18].mxu1 %vm412_vm1, %v9472_v2 }
 0x281   : > { %8437 = vmatprep.mubr.msk.f32.mxu1 %vm412_vm1, %v9475_v3  ;;  %8951 = vmatpush3.bf16.msra.mxu1 %v8948_v56 }
 0x282   : > { %8953 = vmatprep.subr.bf16.mxu1 %v8952_v60 }
 0x284   : > { %8438 = vmatmul.mubr.msk.f32.gmra.mrb[20].mxu1 %vm412_vm1, %v9484_v4 }
 0x285   : > { %8440 = vmatprep.mubr.msk.f32.mxu1 %vm412_vm1, %v9487_v5  ;;  %8955 = vmatpush3.bf16.msra.mxu1 %v8952_v60 }
 0x286   : > { %8490 = vmatprep.subr.msk.mxu1 %vm2355_vm7, %v7472_v30 }
 0x288   : > { %8441 = vmatmul.mubr.msk.f32.gmra.mrb[22].mxu1 %vm412_vm1, %v9490_v6 }
 0x289   : > { %8443 = vmatprep.mubr.msk.f32.mxu1 %vm412_vm1, %v9507_v7  ;;  %8491 = vmatpush3.msk.msra.mxu1 %vm2355_vm7, %v7472_v30 }
 0x28c   : > { %8444 = vmatmul.mubr.msk.f32.gmra.mrb[24].mxu1 %vm412_vm1, %v9510_v8 }
 0x28d   : > { %8446 = vmatprep.mubr.msk.f32.mxu1 %vm412_vm1, %v9513_v9 }
 0x290   : > { %8447 = vmatmul.mubr.msk.f32.gmra.mrb[26].mxu1 %vm412_vm1, %v9528_v10 }
 0x291   : > { %8449 = vmatprep.mubr.msk.f32.mxu1 %vm412_vm1, %v9531_v11 }
 0x294   : > { %8450 = vmatmul.mubr.msk.f32.gmra.mrb[28].mxu1 %vm412_vm1, %v9534_v12 }
 0x295   : > { %8452 = vmatprep.mubr.msk.f32.mxu1 %vm412_vm1, %v9547_v13 }
 0x298   : > { %8453 = vmatmul.mubr.msk.f32.gmra.mrb[30].mxu1 %vm412_vm1, %v9550_v14  ;;  %v7541_v14 = vld [vmem:[%s11721_s3 + $0x60] sm:$0xff] }
 0x299   : > { %8455 = vmatprep.mubr.msk.f32.mxu1 %vm412_vm1, %v9553_v15  ;;  %v2940_v15 = vld [vmem:[#allocation2 + $0x1a0] sm:$0xff] }
 0x29a   : > { %2977 = vst.msk [vmem:[#allocation3 + $0x118] sm:$0xff] %vm2941_vm8, %v2940_v15 }
 0x29c   : > { %8456 = vmatmul.mubr.msk.f32.gmra.mrb[0].mxu1 %vm412_vm1, %v9562_v16 }
 0x29d   : > { %8458 = vmatprep.mubr.msk.f32.mxu1 %vm412_vm1, %v9565_v17 }
 0x2a0   : > { %8459 = vmatmul.mubr.msk.f32.gmra.mrb[2].mxu1 %vm412_vm1, %v9568_v18  ;;  %v2939_v18 = vld [vmem:[#allocation2 + $0x198] sm:$0xff] }
 0x2a1   : > { %8461 = vmatprep.mubr.msk.f32.mxu1 %vm412_vm1, %v9577_v19  ;;  %2976 = vst.msk [vmem:[#allocation3 + $0x110] sm:$0xff] %vm2941_vm8, %v2939_v18 }
 0x2a4   : > { %8462 = vmatmul.mubr.msk.f32.gmra.mrb[4].mxu1 %vm412_vm1, %v9580_v20 }
 0x2a5   : > { %8464 = vmatprep.mubr.msk.f32.mxu1 %vm412_vm1, %v11785_v39 }
 0x2a8   : > { %8465 = vmatmul.mubr.msk.f32.gmra.mrb[6].mxu1 %vm412_vm1, %v11786_v63 }
 0x2a9   : > { %8467 = vmatprep.mubr.msk.f32.mxu1 %vm412_vm1, %v11787_v28 }
 0x2ac   : > { %8468 = vmatmul.mubr.msk.f32.gmra.mrb[8].mxu1 %vm412_vm1, %v11788_v61 }
 0x2ad   : > { %8470 = vmatprep.mubr.msk.f32.mxu1 %vm412_vm1, %v11789_v42 }
 0x2b0   : > { %v2163_v62 = vpop.permute.xlu1 %2162  ;;  %8471 = vmatmul.mubr.msk.f32.gmra.mrb[10].mxu1 %vm412_vm1, %v11790_v0 }
 0x2b1   : > { %2258 = vst.msk [vmem:[#allocation2 + $0x21] sm:$0xff] %vm2256_vm11, %v2163_v62  ;;  %v2161_v31 = vpop.permute.xlu0 %2160  ;;  %8473 = vmatprep.mubr.msk.f32.mxu1 %vm412_vm1, %v11791_v33 }
 0x2b2   : > { %2257 = vst.msk [vmem:[#allocation2 + $0x19] sm:$0xff] %vm2256_vm11, %v2161_v31 }
 0x2b4   : > { %v2167_v25 = vpop.permute.xlu1 %2166  ;;  %8474 = vmatmul.mubr.msk.f32.gmra.mrb[12].mxu1 %vm412_vm1, %v11792_v35 }
 0x2b5   : > { %2260 = vst.msk [vmem:[#allocation2 + $0x39] sm:$0xff] %vm2256_vm11, %v2167_v25  ;;  %v2165_v36 = vpop.permute.xlu0 %2164  ;;  %8476 = vmatprep.mubr.msk.f32.mxu1 %vm412_vm1, %v11793_v59 }
 0x2b6   : > { %2259 = vst.msk [vmem:[#allocation2 + $0x31] sm:$0xff] %vm2256_vm11, %v2165_v36 }
 0x2b8   : > { %v2171_v26 = vpop.permute.xlu1 %2170  ;;  %v2981_v52 = vld [vmem:[#allocation2 + $0x21] sm:$0xff]  ;;  %8477 = vmatmul.mubr.msk.f32.gmra.mrb[14].mxu1 %vm412_vm1, %v11794_v34 }
 0x2b9   : > { %2262 = vst.msk [vmem:[#allocation2 + $0x51] sm:$0xff] %vm2256_vm11, %v2171_v26  ;;  %v2169_v47 = vpop.permute.xlu0 %2168  ;;  %3056 = vrot.lane.b32.xlu1 %v2981_v52, %s9323_s20  ;;  %v2980_v57 = vld [vmem:[#allocation2 + $0x19] sm:$0xff]  ;;  %8479 = vmatprep.mubr.msk.f32.mxu1 %vm412_vm1, %v11795_v29  ;;  %v3198_v22 = vld [vmem:[#allocation2 + $0x22] sm:$0xff] }
 0x2ba   : > { %v2908_v58 = vld [vmem:[#allocation2 + $0x20] sm:$0xff]  ;;  %2261 = vst.msk [vmem:[#allocation2 + $0x49] sm:$0xff] %vm2256_vm11, %v2169_v47  ;;  %3054 = vrot.lane.b32.xlu0 %v2980_v57, %s9323_s20  ;;  %v2907_v37 = vld [vmem:[#allocation2 + $0x18] sm:$0xff] }
 0x2bb   : > { %2945 = vst.msk [vmem:[#allocation3 + $0x18] sm:$0xff] %vm2941_vm8, %v2908_v58  ;;  %2944 = vst.msk [vmem:[#allocation3 + $0x10] sm:$0xff] %vm2941_vm8, %v2907_v37  ;;  %v3197_v38 = vld [vmem:[#allocation2 + $0x1a] sm:$0xff] }
 0x2bc   : > { %v2175_v21 = vpop.permute.xlu1 %2174  ;;  %8480 = vmatmul.mubr.msk.f32.gmra.mrb[16].mxu1 %vm412_vm1, %v11796_v23  ;;  %v2983_v45 = vld [vmem:[#allocation2 + $0x39] sm:$0xff] }
 0x2bd   : > { %2264 = vst.msk [vmem:[#allocation2 + $0x69] sm:$0xff] %vm2256_vm11, %v2175_v21  ;;  %v2173_v24 = vpop.permute.xlu0 %2172  ;;  %3273 = vrot.lane.b32.xlu1 %v3198_v22, %s9324_s21  ;;  %v2910_v40 = vld [vmem:[#allocation2 + $0x38] sm:$0xff]  ;;  %v2909_v41 = vld [vmem:[#allocation2 + $0x30] sm:$0xff] }
 0x2be   : > { %2263 = vst.msk [vmem:[#allocation2 + $0x61] sm:$0xff] %vm2256_vm11, %v2173_v24  ;;  %3271 = vrot.lane.b32.xlu0 %v3197_v38, %s9324_s21  ;;  %v2982_v27 = vld [vmem:[#allocation2 + $0x31] sm:$0xff]  ;;  %v3200_v53 = vld [vmem:[#allocation2 + $0x3a] sm:$0xff] }
 0x2bf   : > { %2947 = vst.msk [vmem:[#allocation3 + $0x28] sm:$0xff] %vm2941_vm8, %v2910_v40  ;;  %2946 = vst.msk [vmem:[#allocation3 + $0x20] sm:$0xff] %vm2941_vm8, %v2909_v41  ;;  %v3199_v44 = vld [vmem:[#allocation2 + $0x32] sm:$0xff] }
 0x2c0   : > { %v2179_v43 = vpop.permute.xlu1 %2178  ;;  %v2985_v31 = vld [vmem:[#allocation2 + $0x51] sm:$0xff] }
 0x2c1   : > { %2266 = vst.msk [vmem:[#allocation2 + $0x81] sm:$0xff] %vm2256_vm11, %v2179_v43  ;;  %v2177_v46 = vpop.permute.xlu0 %2176  ;;  %3060 = vrot.lane.b32.xlu1 %v2983_v45, %s9323_s20  ;;  %v2912_v32 = vld [vmem:[#allocation2 + $0x50] sm:$0xff]  ;;  %v2911_v49 = vld [vmem:[#allocation2 + $0x48] sm:$0xff] }
 0x2c2   : > { %2265 = vst.msk [vmem:[#allocation2 + $0x79] sm:$0xff] %vm2256_vm11, %v2177_v46  ;;  %3058 = vrot.lane.b32.xlu0 %v2982_v27, %s9323_s20  ;;  %v2984_v51 = vld [vmem:[#allocation2 + $0x49] sm:$0xff]  ;;  %v3202_v26 = vld [vmem:[#allocation2 + $0x52] sm:$0xff] }
 0x2c3   : > { %2949 = vst.msk [vmem:[#allocation3 + $0x38] sm:$0xff] %vm2941_vm8, %v2912_v32  ;;  %2948 = vst.msk [vmem:[#allocation3 + $0x30] sm:$0xff] %vm2941_vm8, %v2911_v49  ;;  %v3201_v30 = vld [vmem:[#allocation2 + $0x4a] sm:$0xff] }
 0x2c4   : > { %v2183_v50 = vpop.permute.xlu1 %2182  ;;  %v2987_v37 = vld [vmem:[#allocation2 + $0x69] sm:$0xff] }
 0x2c5   : > { %2268 = vst.msk [vmem:[#allocation2 + $0x99] sm:$0xff] %vm2256_vm11, %v2183_v50  ;;  %v2181_v55 = vpop.permute.xlu0 %2180  ;;  %3277 = vrot.lane.b32.xlu1 %v3200_v53, %s9324_s21  ;;  %v2914_v54 = vld [vmem:[#allocation2 + $0x68] sm:$0xff]  ;;  %v2913_v56 = vld [vmem:[#allocation2 + $0x60] sm:$0xff] }
 0x2c6   : > { %2267 = vst.msk [vmem:[#allocation2 + $0x91] sm:$0xff] %vm2256_vm11, %v2181_v55  ;;  %3275 = vrot.lane.b32.xlu0 %v3199_v44, %s9324_s21  ;;  %v2986_v22 = vld [vmem:[#allocation2 + $0x61] sm:$0xff]  ;;  %v3204_v41 = vld [vmem:[#allocation2 + $0x6a] sm:$0xff] }
 0x2c7   : > { %2951 = vst.msk [vmem:[#allocation3 + $0x48] sm:$0xff] %vm2941_vm8, %v2914_v54  ;;  %2950 = vst.msk [vmem:[#allocation3 + $0x40] sm:$0xff] %vm2941_vm8, %v2913_v56  ;;  %v3203_v45 = vld [vmem:[#allocation2 + $0x62] sm:$0xff] }
 0x2c8   : > { %v2187_v62 = vpop.permute.xlu1 %2186  ;;  %v2989_v49 = vld [vmem:[#allocation2 + $0x81] sm:$0xff] }
 0x2c9   : > { %2270 = vst.msk [vmem:[#allocation2 + $0xb1] sm:$0xff] %vm2256_vm11, %v2187_v62  ;;  %v2185_v48 = vpop.permute.xlu0 %2184  ;;  %3064 = vrot.lane.b32.xlu1 %v2985_v31, %s9323_s20  ;;  %v2916_v60 = vld [vmem:[#allocation2 + $0x80] sm:$0xff]  ;;  %v2915_v25 = vld [vmem:[#allocation2 + $0x78] sm:$0xff] }
 0x2ca   : > { %2269 = vst.msk [vmem:[#allocation2 + $0xa9] sm:$0xff] %vm2256_vm11, %v2185_v48  ;;  %3062 = vrot.lane.b32.xlu0 %v2984_v51, %s9323_s20  ;;  %v2988_v53 = vld [vmem:[#allocation2 + $0x79] sm:$0xff]  ;;  %v3206_v56 = vld [vmem:[#allocation2 + $0x82] sm:$0xff] }
 0x2cb   : > { %2953 = vst.msk [vmem:[#allocation3 + $0x58] sm:$0xff] %vm2941_vm8, %v2916_v60  ;;  %2952 = vst.msk [vmem:[#allocation3 + $0x50] sm:$0xff] %vm2941_vm8, %v2915_v25  ;;  %v3205_v31 = vld [vmem:[#allocation2 + $0x7a] sm:$0xff] }
 0x2cc   : > { %v2191_v36 = vpop.permute.xlu1 %2190  ;;  %v2991_v25 = vld [vmem:[#allocation2 + $0x99] sm:$0xff] }
 0x2cd   : > { %2272 = vst.msk [vmem:[#allocation2 + $0xc9] sm:$0xff] %vm2256_vm11, %v2191_v36  ;;  %v2189_v52 = vpop.permute.xlu0 %2188  ;;  %3281 = vrot.lane.b32.xlu1 %v3202_v26, %s9324_s21  ;;  %v2918_v47 = vld [vmem:[#allocation2 + $0x98] sm:$0xff]  ;;  %v2917_v57 = vld [vmem:[#allocation2 + $0x90] sm:$0xff] }
 0x2ce   : > { %2271 = vst.msk [vmem:[#allocation2 + $0xc1] sm:$0xff] %vm2256_vm11, %v2189_v52  ;;  %3279 = vrot.lane.b32.xlu0 %v3201_v30, %s9324_s21  ;;  %v2990_v26 = vld [vmem:[#allocation2 + $0x91] sm:$0xff] }
 0x2cf   : > { %2955 = vst.msk [vmem:[#allocation3 + $0x68] sm:$0xff] %vm2941_vm8, %v2918_v47  ;;  %2954 = vst.msk [vmem:[#allocation3 + $0x60] sm:$0xff] %vm2941_vm8, %v2917_v57  ;;  %v3208_v57 = vld [vmem:[#allocation2 + $0x9a] sm:$0xff] }
 0x2d0   : > { %v2195_v58 = vpop.permute.xlu1 %2194 }
 0x2d1   : > { %2274 = vst.msk [vmem:[#allocation2 + $0xe1] sm:$0xff] %vm2256_vm11, %v2195_v58  ;;  %v2193_v21 = vpop.permute.xlu0 %2192  ;;  %3068 = vrot.lane.b32.xlu1 %v2987_v37, %s9323_s20  ;;  %v2920_v24 = vld [vmem:[#allocation2 + $0xb0] sm:$0xff]  ;;  %v2919_v38 = vld [vmem:[#allocation2 + $0xa8] sm:$0xff] }
 0x2d2   : > { %2273 = vst.msk [vmem:[#allocation2 + $0xd9] sm:$0xff] %vm2256_vm11, %v2193_v21  ;;  %3066 = vrot.lane.b32.xlu0 %v2986_v22, %s9323_s20  ;;  %v3207_v37 = vld [vmem:[#allocation2 + $0x92] sm:$0xff] }
 0x2d3   : > { %2957 = vst.msk [vmem:[#allocation3 + $0x78] sm:$0xff] %vm2941_vm8, %v2920_v24  ;;  %2956 = vst.msk [vmem:[#allocation3 + $0x70] sm:$0xff] %vm2941_vm8, %v2919_v38  ;;  %v2993_v38 = vld [vmem:[#allocation2 + $0xb1] sm:$0xff] }
 0x2d4   : > { %v2199_v40 = vpop.permute.xlu1 %2198 }
 0x2d5   : > { %2276 = vst.msk [vmem:[#allocation2 + $0xf9] sm:$0xff] %vm2256_vm11, %v2199_v40  ;;  %v2197_v43 = vpop.permute.xlu0 %2196  ;;  %3285 = vrot.lane.b32.xlu1 %v3204_v41, %s9324_s21  ;;  %v2922_v46 = vld [vmem:[#allocation2 + $0xc8] sm:$0xff]  ;;  %v2921_v27 = vld [vmem:[#allocation2 + $0xc0] sm:$0xff] }
 0x2d6   : > { %2275 = vst.msk [vmem:[#allocation2 + $0xf1] sm:$0xff] %vm2256_vm11, %v2197_v43  ;;  %3283 = vrot.lane.b32.xlu0 %v3203_v45, %s9324_s21  ;;  %v2992_v41 = vld [vmem:[#allocation2 + $0xa9] sm:$0xff] }
 0x2d7   : > { %2959 = vst.msk [vmem:[#allocation3 + $0x88] sm:$0xff] %vm2941_vm8, %v2922_v46  ;;  %2958 = vst.msk [vmem:[#allocation3 + $0x80] sm:$0xff] %vm2941_vm8, %v2921_v27  ;;  %v3210_v27 = vld [vmem:[#allocation2 + $0xb2] sm:$0xff] }
 0x2d8   : > { %v2203_v32 = vpop.permute.xlu1 %2202 }
 0x2d9   : > { %2278 = vst.msk [vmem:[#allocation2 + $0x111] sm:$0xff] %vm2256_vm11, %v2203_v32  ;;  %v2201_v50 = vpop.permute.xlu0 %2200  ;;  %3072 = vrot.lane.b32.xlu1 %v2989_v49, %s9323_s20  ;;  %v2924_v55 = vld [vmem:[#allocation2 + $0xe0] sm:$0xff]  ;;  %v2923_v44 = vld [vmem:[#allocation2 + $0xd8] sm:$0xff]  ;;  %v3209_v49 = vld [vmem:[#allocation2 + $0xaa] sm:$0xff] }
 0x2da   : > { %2277 = vst.msk [vmem:[#allocation2 + $0x109] sm:$0xff] %vm2256_vm11, %v2201_v50  ;;  %3070 = vrot.lane.b32.xlu0 %v2988_v53, %s9323_s20 }
 0x2db   : > { %2961 = vst.msk [vmem:[#allocation3 + $0x98] sm:$0xff] %vm2941_vm8, %v2924_v55  ;;  %2960 = vst.msk [vmem:[#allocation3 + $0x90] sm:$0xff] %vm2941_vm8, %v2923_v44  ;;  %v2995_v55 = vld [vmem:[#allocation2 + $0xc9] sm:$0xff]  ;;  %v2994_v44 = vld [vmem:[#allocation2 + $0xc1] sm:$0xff] }
 0x2dc   : > { %v2207_v54 = vpop.permute.xlu1 %2206 }
 0x2dd   : > { %2280 = vst.msk [vmem:[#allocation2 + $0x129] sm:$0xff] %vm2256_vm11, %v2207_v54  ;;  %v2205_v62 = vpop.permute.xlu0 %2204  ;;  %3289 = vrot.lane.b32.xlu1 %v3206_v56, %s9324_s21  ;;  %v2926_v48 = vld [vmem:[#allocation2 + $0xf8] sm:$0xff]  ;;  %v2925_v51 = vld [vmem:[#allocation2 + $0xf0] sm:$0xff] }
 0x2de   : > { %2279 = vst.msk [vmem:[#allocation2 + $0x121] sm:$0xff] %vm2256_vm11, %v2205_v62  ;;  %3287 = vrot.lane.b32.xlu0 %v3205_v31, %s9324_s21  ;;  %v3212_v62 = vld [vmem:[#allocation2 + $0xca] sm:$0xff]  ;;  %v3211_v31 = vld [vmem:[#allocation2 + $0xc2] sm:$0xff] }
 0x2df   : > { %2963 = vst.msk [vmem:[#allocation3 + $0xa8] sm:$0xff] %vm2941_vm8, %v2926_v48  ;;  %2962 = vst.msk [vmem:[#allocation3 + $0xa0] sm:$0xff] %vm2941_vm8, %v2925_v51  ;;  %v3444_v48 = vld [vmem:[%s11721_s3] sm:$0xff]  ;;  %v3445_v51 = vld [vmem:[%s11721_s3 + $0x8] sm:$0xff] }
 0x2e0   : > { %v2211_v60 = vpop.permute.xlu1 %2210 }
 0x2e1   : > { %2282 = vst.msk [vmem:[#allocation2 + $0x141] sm:$0xff] %vm2256_vm11, %v2211_v60  ;;  %v2209_v36 = vpop.permute.xlu0 %2208  ;;  %3076 = vrot.lane.b32.xlu1 %v2991_v25, %s9323_s20  ;;  %v2928_v52 = vld [vmem:[#allocation2 + $0x110] sm:$0xff]  ;;  %v2927_v30 = vld [vmem:[#allocation2 + $0x108] sm:$0xff] }
 0x2e2   : > { %2281 = vst.msk [vmem:[#allocation2 + $0x139] sm:$0xff] %vm2256_vm11, %v2209_v36  ;;  %3074 = vrot.lane.b32.xlu0 %v2990_v26, %s9323_s20  ;;  %v10427_v36 = vpack.c.bf16 %v3445_v51, %v3444_v48  ;;  %v2997_v26 = vld [vmem:[#allocation2 + $0xe1] sm:$0xff] }
 0x2e3   : > { %2965 = vst.msk [vmem:[#allocation3 + $0xb8] sm:$0xff] %vm2941_vm8, %v2928_v52  ;;  %2964 = vst.msk [vmem:[#allocation3 + $0xb0] sm:$0xff] %vm2941_vm8, %v2927_v30  ;;  %v2996_v52 = vld [vmem:[#allocation2 + $0xd9] sm:$0xff]  ;;  %v3214_v30 = vld [vmem:[#allocation2 + $0xe2] sm:$0xff] }
 0x2e4   : > { %v2215_v47 = vpop.permute.xlu1 %2214  ;;  %8957 = vmatprep.subr.bf16.mxu1 %v10427_v36 }
 0x2e5   : > { %2284 = vst.msk [vmem:[#allocation2 + $0x159] sm:$0xff] %vm2256_vm11, %v2215_v47  ;;  %v2213_v58 = vpop.permute.xlu0 %2212  ;;  %3293 = vrot.lane.b32.xlu1 %v3208_v57, %s9324_s21  ;;  %v2930_v21 = vld [vmem:[#allocation2 + $0x128] sm:$0xff]  ;;  %v2929_v22 = vld [vmem:[#allocation2 + $0x120] sm:$0xff] }
 0x2e6   : > { %2283 = vst.msk [vmem:[#allocation2 + $0x151] sm:$0xff] %vm2256_vm11, %v2213_v58  ;;  %3291 = vrot.lane.b32.xlu0 %v3207_v37, %s9324_s21  ;;  %v3213_v47 = vld [vmem:[#allocation2 + $0xda] sm:$0xff]  ;;  %v2998_v58 = vld [vmem:[#allocation2 + $0xf1] sm:$0xff] }
 0x2e7   : > { %2967 = vst.msk [vmem:[#allocation3 + $0xc8] sm:$0xff] %vm2941_vm8, %v2930_v21  ;;  %2966 = vst.msk [vmem:[#allocation3 + $0xc0] sm:$0xff] %vm2941_vm8, %v2929_v22  ;;  %v2999_v57 = vld [vmem:[#allocation2 + $0xf9] sm:$0xff]  ;;  %v3001_v22 = vld [vmem:[#allocation2 + $0x111] sm:$0xff] }
 0x2e8   : > { %v2219_v24 = vpop.permute.xlu1 %2218  ;;  %v3216_v37 = vld [vmem:[#allocation2 + $0xfa] sm:$0xff]  ;;  %v3215_v21 = vld [vmem:[#allocation2 + $0xf2] sm:$0xff] }
 0x2e9   : > { %2286 = vst.msk [vmem:[#allocation2 + $0x171] sm:$0xff] %vm2256_vm11, %v2219_v24  ;;  %v2217_v40 = vpop.permute.xlu0 %2216  ;;  %3080 = vrot.lane.b32.xlu1 %v2993_v38, %s9323_s20  ;;  %v2932_v43 = vld [vmem:[#allocation2 + $0x140] sm:$0xff]  ;;  %v2931_v45 = vld [vmem:[#allocation2 + $0x138] sm:$0xff]  ;;  %v3000_v24 = vld [vmem:[#allocation2 + $0x109] sm:$0xff] }
 0x2ea   : > { %2285 = vst.msk [vmem:[#allocation2 + $0x169] sm:$0xff] %vm2256_vm11, %v2217_v40  ;;  %3078 = vrot.lane.b32.xlu0 %v2992_v41, %s9323_s20  ;;  %v3218_v38 = vld [vmem:[#allocation2 + $0x112] sm:$0xff]  ;;  %v3217_v40 = vld [vmem:[#allocation2 + $0x10a] sm:$0xff] }
 0x2eb   : > { %2969 = vst.msk [vmem:[#allocation3 + $0xd8] sm:$0xff] %vm2941_vm8, %v2932_v43  ;;  %2968 = vst.msk [vmem:[#allocation3 + $0xd0] sm:$0xff] %vm2941_vm8, %v2931_v45  ;;  %v3003_v41 = vld [vmem:[#allocation2 + $0x129] sm:$0xff]  ;;  %v3002_v43 = vld [vmem:[#allocation2 + $0x121] sm:$0xff] }
 0x2ec   : > { %v2223_v46 = vpop.permute.xlu1 %2222  ;;  %v3007_v51 = vld [vmem:[#allocation2 + $0x159] sm:$0xff] }
 0x2ed   : > { %2288 = vst.msk [vmem:[#allocation2 + $0x189] sm:$0xff] %vm2256_vm11, %v2223_v46  ;;  %3297 = vrot.lane.b32.xlu1 %v3210_v27, %s9324_s21  ;;  %v2221_v32 = vpop.permute.xlu0 %2220  ;;  %v2934_v50 = vld [vmem:[#allocation2 + $0x158] sm:$0xff]  ;;  %v2933_v53 = vld [vmem:[#allocation2 + $0x150] sm:$0xff] }
 0x2ee   : > { %2287 = vst.msk [vmem:[#allocation2 + $0x181] sm:$0xff] %vm2256_vm11, %v2221_v32  ;;  %3295 = vrot.lane.b32.xlu0 %v3209_v49, %s9324_s21  ;;  %v3220_v27 = vld [vmem:[#allocation2 + $0x12a] sm:$0xff]  ;;  %v3219_v32 = vld [vmem:[#allocation2 + $0x122] sm:$0xff] }
 0x2ef   : > { %2971 = vst.msk [vmem:[#allocation3 + $0xe8] sm:$0xff] %vm2941_vm8, %v2934_v50  ;;  %2970 = vst.msk [vmem:[#allocation3 + $0xe0] sm:$0xff] %vm2941_vm8, %v2933_v53  ;;  %v3005_v53 = vld [vmem:[#allocation2 + $0x141] sm:$0xff] }
 0x2f1   : > { %3084 = vrot.lane.b32.xlu1 %v2995_v55, %s9323_s20  ;;  %v2936_v54 = vld [vmem:[#allocation2 + $0x170] sm:$0xff]  ;;  %v2935_v56 = vld [vmem:[#allocation2 + $0x168] sm:$0xff]  ;;  %v3004_v55 = vld [vmem:[#allocation2 + $0x139] sm:$0xff] }
 0x2f2   : > { %3082 = vrot.lane.b32.xlu0 %v2994_v44, %s9323_s20  ;;  %2973 = vst.msk [vmem:[#allocation3 + $0xf8] sm:$0xff] %vm2941_vm8, %v2936_v54  ;;  %2972 = vst.msk [vmem:[#allocation3 + $0xf0] sm:$0xff] %vm2941_vm8, %v2935_v56  ;;  %v3222_v56 = vld [vmem:[#allocation2 + $0x142] sm:$0xff] }
 0x2f5   : > { %3301 = vrot.lane.b32.xlu1 %v3212_v62, %s9324_s21  ;;  %v2938_v60 = vld [vmem:[#allocation2 + $0x188] sm:$0xff]  ;;  %v2937_v25 = vld [vmem:[#allocation2 + $0x180] sm:$0xff] }
 0x2f6   : > { %3299 = vrot.lane.b32.xlu0 %v3211_v31, %s9324_s21  ;;  %2975 = vst.msk [vmem:[#allocation3 + $0x108] sm:$0xff] %vm2941_vm8, %v2938_v60  ;;  %2974 = vst.msk [vmem:[#allocation3 + $0x100] sm:$0xff] %vm2941_vm8, %v2937_v25  ;;  %v3221_v62 = vld [vmem:[#allocation2 + $0x13a] sm:$0xff]  ;;  %v3006_v60 = vld [vmem:[#allocation2 + $0x151] sm:$0xff] }
 0x2f9   : > { %3088 = vrot.lane.b32.xlu1 %v2997_v26, %s9323_s20 }
 0x2fa   : > { %3086 = vrot.lane.b32.xlu0 %v2996_v52, %s9323_s20  ;;  %v3224_v52 = vld [vmem:[#allocation2 + $0x15a] sm:$0xff] }
 0x2fd   : > { %3305 = vrot.lane.b32.xlu1 %v3214_v30, %s9324_s21  ;;  %v3223_v30 = vld [vmem:[#allocation2 + $0x152] sm:$0xff] }
 0x2fe   : > { %3303 = vrot.lane.b32.xlu0 %v3213_v47, %s9324_s21 }
 0x301   : > { %3092 = vrot.lane.b32.xlu1 %v2999_v57, %s9323_s20 }
 0x302   : > { %3090 = vrot.lane.b32.xlu0 %v2998_v58, %s9323_s20  ;;  %v3009_v58 = vld [vmem:[#allocation2 + $0x171] sm:$0xff] }
 0x305   : > { %3309 = vrot.lane.b32.xlu1 %v3216_v37, %s9324_s21  ;;  %v3008_v37 = vld [vmem:[#allocation2 + $0x169] sm:$0xff] }
 0x306   : > { %3307 = vrot.lane.b32.xlu0 %v3215_v21, %s9324_s21 }
 0x309   : > { %3096 = vrot.lane.b32.xlu1 %v3001_v22, %s9323_s20 }
 0x30a   : > { %3094 = vrot.lane.b32.xlu0 %v3000_v24, %s9323_s20 }
 0x30d   : > { %3313 = vrot.lane.b32.xlu1 %v3218_v38, %s9324_s21 }
 0x30e   : > { %3311 = vrot.lane.b32.xlu0 %v3217_v40, %s9324_s21  ;;  %v3226_v40 = vld [vmem:[#allocation2 + $0x172] sm:$0xff] }
 0x311   : > { %3100 = vrot.lane.b32.xlu1 %v3003_v41, %s9323_s20  ;;  %v3225_v41 = vld [vmem:[#allocation2 + $0x16a] sm:$0xff] }
 0x312   : > { %3098 = vrot.lane.b32.xlu0 %v3002_v43, %s9323_s20 }
 0x313   : > { %v10446_v45 = vpop.f32.mrb[32].mxu0 }
 0x314   : > { %v10448_v46 = vpop.f32.mrb[33].mxu0 }
 0x315   : > { %3317 = vrot.lane.b32.xlu1 %v3220_v27, %s9324_s21 }
 0x316   : > { %3315 = vrot.lane.b32.xlu0 %v3219_v32, %s9324_s21  ;;  %v3011_v32 = vld [vmem:[#allocation2 + $0x189] sm:$0xff] }
 0x317   : > { %v10452_v49 = vpop.f32.mrb[34].mxu0 }
 0x318   : > { %v10454_v50 = vpop.f32.mrb[35].mxu0 }
 0x319   : > { %3104 = vrot.lane.b32.xlu1 %v3005_v53, %s9323_s20  ;;  %v3010_v53 = vld [vmem:[#allocation2 + $0x181] sm:$0xff] }
 0x31a   : > { %3102 = vrot.lane.b32.xlu0 %v3004_v55, %s9323_s20 }
 0x31b   : > { %v10458_v44 = vpop.f32.mrb[36].mxu0 }
 0x31c   : > { %v10460_v54 = vpop.f32.mrb[37].mxu0 }
 0x31d   : > { %3321 = vrot.lane.b32.xlu1 %v3222_v56, %s9324_s21 }
 0x31e   : > { %3319 = vrot.lane.b32.xlu0 %v3221_v62, %s9324_s21  ;;  %v3228_v62 = vld [vmem:[#allocation2 + $0x18a] sm:$0xff] }
 0x31f   : > { %v10464_v31 = vpop.f32.mrb[38].mxu0 }
 0x320   : > { %v10466_v48 = vpop.f32.mrb[39].mxu0 }
 0x321   : > { %3108 = vrot.lane.b32.xlu1 %v3007_v51, %s9323_s20  ;;  %v3227_v51 = vld [vmem:[#allocation2 + $0x182] sm:$0xff] }
 0x322   : > { %3106 = vrot.lane.b32.xlu0 %v3006_v60, %s9323_s20  ;;  %v3446_v60 = vld [vmem:[%s11721_s3 + $0x10] sm:$0xff] }
 0x323   : > { %v10470_v25 = vpop.f32.mrb[40].mxu0 }
 0x324   : > { %v10472_v26 = vpop.f32.mrb[41].mxu0 }
 0x325   : > { %3325 = vrot.lane.b32.xlu1 %v3224_v52, %s9324_s21  ;;  %v3447_v52 = vld [vmem:[%s11721_s3 + $0x18] sm:$0xff] }
 0x326   : > { %3323 = vrot.lane.b32.xlu0 %v3223_v30, %s9324_s21  ;;  %v3196_v30 = vld [vmem:[#allocation2 + $0xa] sm:$0xff] }
 0x327   : > { %v10476_v47 = vpop.f32.mrb[42].mxu0 }
 0x328   : > { %v10478_v57 = vpop.f32.mrb[43].mxu0 }
 0x329   : > { %11797 = vst [vmem:[#allocation26_spill] sm:$0xff] %v10478_v57  ;;  %3112 = vrot.lane.b32.xlu1 %v3009_v58, %s9323_s20  ;;  %v7686_v57 = vld [vmem:[%s11723_s5 + $0x88] sm:$0xff] }
 0x32a   : > { %3110 = vrot.lane.b32.xlu0 %v3008_v37, %s9323_s20  ;;  %v3195_v37 = vld [vmem:[#allocation2 + $0x2] sm:$0xff] }
 0x32b   : > { %v3057_v21 = vpop.permute.xlu1 %3056  ;;  %v10482_v22 = vpop.f32.mrb[44].mxu0 }
 0x32c   : > { %11798 = vst [vmem:[#allocation27_spill] sm:$0xff] %v10482_v22  ;;  %3162 = vst.msk [vmem:[#allocation3 + $0x18] sm:$0xff] %vm3158_vm9, %v3057_v21  ;;  %v10485_v24 = vpop.f32.mrb[45].mxu0  ;;  %v3055_v38 = vpop.permute.xlu0 %3054 }
 0x32d   : > { %11799 = vst [vmem:[#allocation28_spill] sm:$0xff] %v10485_v24  ;;  %3161 = vst.msk [vmem:[#allocation3 + $0x10] sm:$0xff] %vm3158_vm9, %v3055_v38  ;;  %3329 = vrot.lane.b32.xlu1 %v3226_v40, %s9324_s21  ;;  %v8960_v40 = vpack.c.bf16 %v3447_v52, %v3446_v60  ;;  %v3229_v60 = vld [vmem:[#allocation2 + $0x19a] sm:$0xff] }
 0x32e   : > { %3327 = vrot.lane.b32.xlu0 %v3225_v41, %s9324_s21 }
 0x32f   : > { %v3274_v43 = vpop.permute.xlu1 %3273 }
 0x330   : > { %3379 = vst.msk [vmem:[#allocation3 + $0x18] sm:$0xff] %vm3375_vm12, %v3274_v43  ;;  %v3272_v27 = vpop.permute.xlu0 %3271  ;;  %v3013_v43 = vld [vmem:[#allocation2 + $0x1a1] sm:$0xff] }
 0x331   : > { %3378 = vst.msk [vmem:[#allocation3 + $0x10] sm:$0xff] %vm3375_vm12, %v3272_v27  ;;  %3116 = vrot.lane.b32.xlu1 %v3011_v32, %s9323_s20  ;;  %v3012_v32 = vld [vmem:[#allocation2 + $0x199] sm:$0xff] }
 0x332   : > { %3114 = vrot.lane.b32.xlu0 %v3010_v53, %s9323_s20 }
 0x333   : > { %v3061_v55 = vpop.permute.xlu1 %3060 }
 0x334   : > { %3164 = vst.msk [vmem:[#allocation3 + $0x28] sm:$0xff] %vm3158_vm9, %v3061_v55  ;;  %v3059_v56 = vpop.permute.xlu0 %3058  ;;  %v3448_v55 = vld [vmem:[%s11721_s3 + $0x20] sm:$0xf] }
 0x335   : > { %3163 = vst.msk [vmem:[#allocation3 + $0x20] sm:$0xff] %vm3158_vm9, %v3059_v56  ;;  %3333 = vrot.lane.b32.xlu1 %v3228_v62, %s9324_s21  ;;  %v7539_v56 = vld [vmem:[%s11721_s3 + $0x50] sm:$0xff]  ;;  %v3230_v62 = vld [vmem:[#allocation2 + $0x1a2] sm:$0xff] }
 0x336   : > { %3331 = vrot.lane.b32.xlu0 %v3227_v51, %s9324_s21 }
 0x337   : > { %v3278_v58 = vpop.permute.xlu1 %3277  ;;  %v10510_v41 = vld [vmem:[#allocation3 + $0x18] sm:$0xff] }
 0x338   : > { %3381 = vst.msk [vmem:[#allocation3 + $0x28] sm:$0xff] %vm3375_vm12, %v3278_v58  ;;  %v3276_v21 = vpop.permute.xlu0 %3275  ;;  %v10505_v38 = vld [vmem:[#allocation3 + $0x10] sm:$0xff] }
 0x339   : > { %3380 = vst.msk [vmem:[#allocation3 + $0x20] sm:$0xff] %vm3375_vm12, %v3276_v21  ;;  %8492 = vmatprep.mubr.msk.f32.mxu1 %vm3487_vm13, %v10505_v38  ;;  %3269 = vrot.lane.b32.xlu1 %v3196_v30, %s9324_s21 }
 0x33a   : > { %3267 = vrot.lane.b32.xlu0 %v3195_v37, %s9324_s21  ;;  %8493 = vmatmul.mubr.msk.f32.vlgmr.msra.gmra.mrb[32].mxu1 %vm3487_vm13, %v10510_v41 }
 0x33b   : > { %v3065_v27 = vpop.permute.xlu1 %3064  ;;  %8959 = vmatpush3.bf16.msra.mxu1 %v10427_v36  ;;  %v7540_v36 = vld [vmem:[%s11721_s3 + $0x58] sm:$0xff] }
 0x33c   : > { %3166 = vst.msk [vmem:[#allocation3 + $0x38] sm:$0xff] %vm3158_vm9, %v3065_v27  ;;  %v3063_v53 = vpop.permute.xlu0 %3062  ;;  %8961 = vmatprep.subr.bf16.mxu1 %v8960_v40  ;;  %v10534_v58 = vpack.c.bf16 %v7540_v36, %v7539_v56 }
 0x33d   : > { %3165 = vst.msk [vmem:[#allocation3 + $0x30] sm:$0xff] %vm3158_vm9, %v3063_v53  ;;  %3120 = vrot.lane.b32.xlu1 %v3013_v43, %s9323_s20 }
 0x33e   : > { %3118 = vrot.lane.b32.xlu0 %v3012_v32, %s9323_s20 }
 0x33f   : > { %v3282_v51 = vpop.permute.xlu1 %3281  ;;  %8963 = vmatpush3.bf16.msra.mxu1 %v8960_v40  ;;  %v10539_v37 = vld [vmem:[#allocation3 + $0x28] sm:$0xff] }
 0x340   : > { %3383 = vst.msk [vmem:[#allocation3 + $0x38] sm:$0xff] %vm3375_vm12, %v3282_v51  ;;  %v3280_v52 = vpop.permute.xlu0 %3279  ;;  %v10531_v30 = vld [vmem:[#allocation3 + $0x20] sm:$0xff]  ;;  %8548 = vmatprep.subr.msk.mxu1 %vm2355_vm7, %v3448_v55 }
 0x341   : > { %3382 = vst.msk [vmem:[#allocation3 + $0x30] sm:$0xff] %vm3375_vm12, %v3280_v52  ;;  %8495 = vmatprep.mubr.msk.f32.mxu1 %vm3487_vm13, %v10531_v30  ;;  %3337 = vrot.lane.b32.xlu1 %v3230_v62, %s9324_s21 }
 0x342   : > { %8496 = vmatmul.mubr.msk.f32.gmra.mrb[34].mxu1 %vm3487_vm13, %v10539_v37  ;;  %3335 = vrot.lane.b32.xlu0 %v3229_v60, %s9324_s21 }
 0x343   : > { %v3069_v21 = vpop.permute.xlu1 %3068  ;;  %8549 = vmatpush3.msk.msra.mxu1 %vm2355_vm7, %v3448_v55 }
 0x344   : > { %3168 = vst.msk [vmem:[#allocation3 + $0x48] sm:$0xff] %vm3158_vm9, %v3069_v21  ;;  %v3067_v40 = vpop.permute.xlu0 %3066  ;;  %8965 = vmatprep.subr.bf16.mxu1 %v10534_v58 }
 0x345   : > { %3167 = vst.msk [vmem:[#allocation3 + $0x40] sm:$0xff] %vm3158_vm9, %v3067_v40 }
 0x347   : > { %v3286_v43 = vpop.permute.xlu1 %3285  ;;  %v10555_v53 = vld [vmem:[#allocation3 + $0x38] sm:$0xff] }
 0x348   : > { %3385 = vst.msk [vmem:[#allocation3 + $0x48] sm:$0xff] %vm3375_vm12, %v3286_v43  ;;  %v3284_v27 = vpop.permute.xlu0 %3283  ;;  %v10550_v32 = vld [vmem:[#allocation3 + $0x30] sm:$0xff] }
 0x349   : > { %3384 = vst.msk [vmem:[#allocation3 + $0x40] sm:$0xff] %vm3375_vm12, %v3284_v27  ;;  %8498 = vmatprep.mubr.msk.f32.mxu1 %vm3487_vm13, %v10550_v32 }
 0x34a   : > { %8499 = vmatmul.mubr.msk.f32.gmra.mrb[36].mxu1 %vm3487_vm13, %v10555_v53 }
 0x34b   : > { %v3073_v55 = vpop.permute.xlu1 %3072 }
 0x34c   : > { %3170 = vst.msk [vmem:[#allocation3 + $0x58] sm:$0xff] %vm3158_vm9, %v3073_v55  ;;  %v3071_v56 = vpop.permute.xlu0 %3070 }
 0x34d   : > { %3169 = vst.msk [vmem:[#allocation3 + $0x50] sm:$0xff] %vm3158_vm9, %v3071_v56 }
 0x34f   : > { %v3290_v36 = vpop.permute.xlu1 %3289  ;;  %v10567_v60 = vld [vmem:[#allocation3 + $0x48] sm:$0xff] }
 0x350   : > { %3387 = vst.msk [vmem:[#allocation3 + $0x58] sm:$0xff] %vm3375_vm12, %v3290_v36  ;;  %v3288_v62 = vpop.permute.xlu0 %3287  ;;  %v10562_v51 = vld [vmem:[#allocation3 + $0x40] sm:$0xff] }
 0x351   : > { %3386 = vst.msk [vmem:[#allocation3 + $0x50] sm:$0xff] %vm3375_vm12, %v3288_v62  ;;  %8501 = vmatprep.mubr.msk.f32.mxu1 %vm3487_vm13, %v10562_v51 }
 0x352   : > { %8502 = vmatmul.mubr.msk.f32.gmra.mrb[38].mxu1 %vm3487_vm13, %v10567_v60 }
 0x353   : > { %v3077_v52 = vpop.permute.xlu1 %3076 }
 0x354   : > { %3172 = vst.msk [vmem:[#allocation3 + $0x68] sm:$0xff] %vm3158_vm9, %v3077_v52  ;;  %v3075_v21 = vpop.permute.xlu0 %3074 }
 0x355   : > { %3171 = vst.msk [vmem:[#allocation3 + $0x60] sm:$0xff] %vm3158_vm9, %v3075_v21 }
 0x357   : > { %v3294_v40 = vpop.permute.xlu1 %3293  ;;  %v10579_v55 = vld [vmem:[#allocation3 + $0x58] sm:$0xff] }
 0x358   : > { %3389 = vst.msk [vmem:[#allocation3 + $0x68] sm:$0xff] %vm3375_vm12, %v3294_v40  ;;  %v3292_v43 = vpop.permute.xlu0 %3291  ;;  %v10574_v27 = vld [vmem:[#allocation3 + $0x50] sm:$0xff] }
 0x359   : > { %3388 = vst.msk [vmem:[#allocation3 + $0x60] sm:$0xff] %vm3375_vm12, %v3292_v43  ;;  %8504 = vmatprep.mubr.msk.f32.mxu1 %vm3487_vm13, %v10574_v27 }
 0x35a   : > { %8505 = vmatmul.mubr.msk.f32.gmra.mrb[40].mxu1 %vm3487_vm13, %v10579_v55 }
 0x35b   : > { %v3081_v56 = vpop.permute.xlu1 %3080 }
 0x35c   : > { %3174 = vst.msk [vmem:[#allocation3 + $0x78] sm:$0xff] %vm3158_vm9, %v3081_v56  ;;  %v3079_v36 = vpop.permute.xlu0 %3078 }
 0x35d   : > { %3173 = vst.msk [vmem:[#allocation3 + $0x70] sm:$0xff] %vm3158_vm9, %v3079_v36 }
 0x35f   : > { %v3298_v62 = vpop.permute.xlu1 %3297  ;;  %v10591_v40 = vld [vmem:[#allocation3 + $0x68] sm:$0xff] }
 0x360   : > { %3391 = vst.msk [vmem:[#allocation3 + $0x78] sm:$0xff] %vm3375_vm12, %v3298_v62  ;;  %v3296_v52 = vpop.permute.xlu0 %3295  ;;  %v10586_v21 = vld [vmem:[#allocation3 + $0x60] sm:$0xff] }
 0x361   : > { %3390 = vst.msk [vmem:[#allocation3 + $0x70] sm:$0xff] %vm3375_vm12, %v3296_v52  ;;  %8507 = vmatprep.mubr.msk.f32.mxu1 %vm3487_vm13, %v10586_v21 }
 0x362   : > { %8508 = vmatmul.mubr.msk.f32.gmra.mrb[42].mxu1 %vm3487_vm13, %v10591_v40 }
 0x363   : > { %v3085_v43 = vpop.permute.xlu1 %3084 }
 0x364   : > { %3176 = vst.msk [vmem:[#allocation3 + $0x88] sm:$0xff] %vm3158_vm9, %v3085_v43  ;;  %v3083_v56 = vpop.permute.xlu0 %3082 }
 0x365   : > { %3175 = vst.msk [vmem:[#allocation3 + $0x80] sm:$0xff] %vm3158_vm9, %v3083_v56 }
 0x367   : > { %v3302_v36 = vpop.permute.xlu1 %3301  ;;  %v10603_v52 = vld [vmem:[#allocation3 + $0x78] sm:$0xff] }
 0x368   : > { %3393 = vst.msk [vmem:[#allocation3 + $0x88] sm:$0xff] %vm3375_vm12, %v3302_v36  ;;  %v3300_v62 = vpop.permute.xlu0 %3299  ;;  %v10598_v29 = vld [vmem:[#allocation3 + $0x70] sm:$0xff] }
 0x369   : > { %3392 = vst.msk [vmem:[#allocation3 + $0x80] sm:$0xff] %vm3375_vm12, %v3300_v62  ;;  %8510 = vmatprep.mubr.msk.f32.mxu1 %vm3487_vm13, %v10598_v29 }
 0x36a   : > { %8511 = vmatmul.mubr.msk.f32.gmra.mrb[44].mxu1 %vm3487_vm13, %v10603_v52 }
 0x36b   : > { %v3089_v43 = vpop.permute.xlu1 %3088 }
 0x36c   : > { %3178 = vst.msk [vmem:[#allocation3 + $0x98] sm:$0xff] %vm3158_vm9, %v3089_v43  ;;  %v3087_v56 = vpop.permute.xlu0 %3086 }
 0x36d   : > { %3177 = vst.msk [vmem:[#allocation3 + $0x90] sm:$0xff] %vm3158_vm9, %v3087_v56 }
 0x36f   : > { %v3306_v36 = vpop.permute.xlu1 %3305  ;;  %v10615_v62 = vld [vmem:[#allocation3 + $0x88] sm:$0xff] }
 0x370   : > { %3395 = vst.msk [vmem:[#allocation3 + $0x98] sm:$0xff] %vm3375_vm12, %v3306_v36  ;;  %v3304_v23 = vpop.permute.xlu0 %3303  ;;  %v10610_v59 = vld [vmem:[#allocation3 + $0x80] sm:$0xff] }
 0x371   : > { %3394 = vst.msk [vmem:[#allocation3 + $0x90] sm:$0xff] %vm3375_vm12, %v3304_v23  ;;  %8513 = vmatprep.mubr.msk.f32.mxu1 %vm3487_vm13, %v10610_v59 }
 0x372   : > { %8514 = vmatmul.mubr.msk.f32.gmra.mrb[46].mxu1 %vm3487_vm13, %v10615_v62 }
 0x373   : > { %v3093_v43 = vpop.permute.xlu1 %3092 }
 0x374   : > { %3180 = vst.msk [vmem:[#allocation3 + $0xa8] sm:$0xff] %vm3158_vm9, %v3093_v43  ;;  %v3091_v56 = vpop.permute.xlu0 %3090 }
 0x375   : > { %3179 = vst.msk [vmem:[#allocation3 + $0xa0] sm:$0xff] %vm3158_vm9, %v3091_v56 }
 0x377   : > { %v3310_v36 = vpop.permute.xlu1 %3309  ;;  %v10627_v23 = vld [vmem:[#allocation3 + $0x98] sm:$0xff] }
 0x378   : > { %3397 = vst.msk [vmem:[#allocation3 + $0xa8] sm:$0xff] %vm3375_vm12, %v3310_v36  ;;  %v3308_v34 = vpop.permute.xlu0 %3307  ;;  %v10622_v33 = vld [vmem:[#allocation3 + $0x90] sm:$0xff] }
 0x379   : > { %3396 = vst.msk [vmem:[#allocation3 + $0xa0] sm:$0xff] %vm3375_vm12, %v3308_v34  ;;  %8516 = vmatprep.mubr.msk.f32.mxu1 %vm3487_vm13, %v10622_v33 }
 0x37a   : > { %8517 = vmatmul.mubr.msk.f32.gmra.mrb[48].mxu1 %vm3487_vm13, %v10627_v23 }
 0x37b   : > { %v3097_v43 = vpop.permute.xlu1 %3096 }
 0x37c   : > { %3182 = vst.msk [vmem:[#allocation3 + $0xb8] sm:$0xff] %vm3158_vm9, %v3097_v43  ;;  %v3095_v56 = vpop.permute.xlu0 %3094 }
 0x37d   : > { %3181 = vst.msk [vmem:[#allocation3 + $0xb0] sm:$0xff] %vm3158_vm9, %v3095_v56 }
 0x37f   : > { %v3314_v36 = vpop.permute.xlu1 %3313  ;;  %v10639_v34 = vld [vmem:[#allocation3 + $0xa8] sm:$0xff] }
 0x380   : > { %3399 = vst.msk [vmem:[#allocation3 + $0xb8] sm:$0xff] %vm3375_vm12, %v3314_v36  ;;  %v3312_v35 = vpop.permute.xlu0 %3311  ;;  %v10634_v42 = vld [vmem:[#allocation3 + $0xa0] sm:$0xff] }
 0x381   : > { %3398 = vst.msk [vmem:[#allocation3 + $0xb0] sm:$0xff] %vm3375_vm12, %v3312_v35  ;;  %8519 = vmatprep.mubr.msk.f32.mxu1 %vm3487_vm13, %v10634_v42 }
 0x382   : > { %8520 = vmatmul.mubr.msk.f32.gmra.mrb[50].mxu1 %vm3487_vm13, %v10639_v34 }
 0x383   : > { %v3101_v43 = vpop.permute.xlu1 %3100 }
 0x384   : > { %3184 = vst.msk [vmem:[#allocation3 + $0xc8] sm:$0xff] %vm3158_vm9, %v3101_v43  ;;  %v3099_v56 = vpop.permute.xlu0 %3098 }
 0x385   : > { %3183 = vst.msk [vmem:[#allocation3 + $0xc0] sm:$0xff] %vm3158_vm9, %v3099_v56 }
 0x387   : > { %v3318_v36 = vpop.permute.xlu1 %3317  ;;  %v10651_v35 = vld [vmem:[#allocation3 + $0xb8] sm:$0xff] }
 0x388   : > { %3401 = vst.msk [vmem:[#allocation3 + $0xc8] sm:$0xff] %vm3375_vm12, %v3318_v36  ;;  %v3316_v0 = vpop.permute.xlu0 %3315  ;;  %v10646_v28 = vld [vmem:[#allocation3 + $0xb0] sm:$0xff] }
 0x389   : > { %3400 = vst.msk [vmem:[#allocation3 + $0xc0] sm:$0xff] %vm3375_vm12, %v3316_v0  ;;  %8522 = vmatprep.mubr.msk.f32.mxu1 %vm3487_vm13, %v10646_v28 }
 0x38a   : > { %8523 = vmatmul.mubr.msk.f32.gmra.mrb[52].mxu1 %vm3487_vm13, %v10651_v35 }
 0x38b   : > { %v3105_v43 = vpop.permute.xlu1 %3104 }
 0x38c   : > { %3186 = vst.msk [vmem:[#allocation3 + $0xd8] sm:$0xff] %vm3158_vm9, %v3105_v43  ;;  %v3103_v56 = vpop.permute.xlu0 %3102 }
 0x38d   : > { %3185 = vst.msk [vmem:[#allocation3 + $0xd0] sm:$0xff] %vm3158_vm9, %v3103_v56 }
 0x38f   : > { %v3322_v36 = vpop.permute.xlu1 %3321  ;;  %v10663_v0 = vld [vmem:[#allocation3 + $0xc8] sm:$0xff] }
 0x390   : > { %3403 = vst.msk [vmem:[#allocation3 + $0xd8] sm:$0xff] %vm3375_vm12, %v3322_v36  ;;  %v3320_v61 = vpop.permute.xlu0 %3319  ;;  %v10658_v39 = vld [vmem:[#allocation3 + $0xc0] sm:$0xff] }
 0x391   : > { %3402 = vst.msk [vmem:[#allocation3 + $0xd0] sm:$0xff] %vm3375_vm12, %v3320_v61  ;;  %8525 = vmatprep.mubr.msk.f32.mxu1 %vm3487_vm13, %v10658_v39 }
 0x392   : > { %8526 = vmatmul.mubr.msk.f32.gmra.mrb[54].mxu1 %vm3487_vm13, %v10663_v0 }
 0x393   : > { %v3109_v43 = vpop.permute.xlu1 %3108 }
 0x394   : > { %3188 = vst.msk [vmem:[#allocation3 + $0xe8] sm:$0xff] %vm3158_vm9, %v3109_v43  ;;  %v3107_v56 = vpop.permute.xlu0 %3106 }
 0x395   : > { %3187 = vst.msk [vmem:[#allocation3 + $0xe0] sm:$0xff] %vm3158_vm9, %v3107_v56 }
 0x397   : > { %v3326_v36 = vpop.permute.xlu1 %3325  ;;  %v10675_v61 = vld [vmem:[#allocation3 + $0xd8] sm:$0xff] }
 0x398   : > { %3405 = vst.msk [vmem:[#allocation3 + $0xe8] sm:$0xff] %vm3375_vm12, %v3326_v36  ;;  %v3324_v63 = vpop.permute.xlu0 %3323  ;;  %v10670_v19 = vld [vmem:[#allocation3 + $0xd0] sm:$0xff] }
 0x399   : > { %3404 = vst.msk [vmem:[#allocation3 + $0xe0] sm:$0xff] %vm3375_vm12, %v3324_v63  ;;  %8528 = vmatprep.mubr.msk.f32.mxu1 %vm3487_vm13, %v10670_v19 }
 0x39a   : > { %8529 = vmatmul.mubr.msk.f32.gmra.mrb[56].mxu1 %vm3487_vm13, %v10675_v61 }
 0x39b   : > { %v3113_v43 = vpop.permute.xlu1 %3112 }
 0x39c   : > { %3190 = vst.msk [vmem:[#allocation3 + $0xf8] sm:$0xff] %vm3158_vm9, %v3113_v43  ;;  %v3111_v56 = vpop.permute.xlu0 %3110 }
 0x39d   : > { %3189 = vst.msk [vmem:[#allocation3 + $0xf0] sm:$0xff] %vm3158_vm9, %v3111_v56 }
 0x39f   : > { %v3330_v36 = vpop.permute.xlu1 %3329  ;;  %v10687_v63 = vld [vmem:[#allocation3 + $0xe8] sm:$0xff] }
 0x3a0   : > { %3407 = vst.msk [vmem:[#allocation3 + $0xf8] sm:$0xff] %vm3375_vm12, %v3330_v36  ;;  %v3328_v20 = vpop.permute.xlu0 %3327  ;;  %v10682_v17 = vld [vmem:[#allocation3 + $0xe0] sm:$0xff] }
 0x3a1   : > { %3406 = vst.msk [vmem:[#allocation3 + $0xf0] sm:$0xff] %vm3375_vm12, %v3328_v20  ;;  %8531 = vmatprep.mubr.msk.f32.mxu1 %vm3487_vm13, %v10682_v17 }
 0x3a2   : > { %8532 = vmatmul.mubr.msk.f32.gmra.mrb[58].mxu1 %vm3487_vm13, %v10687_v63 }
 0x3a3   : > { %v3117_v43 = vpop.permute.xlu1 %3116 }
 0x3a4   : > { %3192 = vst.msk [vmem:[#allocation3 + $0x108] sm:$0xff] %vm3158_vm9, %v3117_v43  ;;  %v3115_v56 = vpop.permute.xlu0 %3114 }
 0x3a5   : > { %3191 = vst.msk [vmem:[#allocation3 + $0x100] sm:$0xff] %vm3158_vm9, %v3115_v56 }
 0x3a7   : > { %v3334_v20 = vpop.permute.xlu1 %3333  ;;  %v10701_v13 = vld [vmem:[#allocation3 + $0xf8] sm:$0xff] }
 0x3a8   : > { %3409 = vst.msk [vmem:[#allocation3 + $0x108] sm:$0xff] %vm3375_vm12, %v3334_v20  ;;  %v3332_v36 = vpop.permute.xlu0 %3331  ;;  %v10696_v16 = vld [vmem:[#allocation3 + $0xf0] sm:$0xff] }
 0x3a9   : > { %3408 = vst.msk [vmem:[#allocation3 + $0x100] sm:$0xff] %vm3375_vm12, %v3332_v36  ;;  %8534 = vmatprep.mubr.msk.f32.mxu1 %vm3487_vm13, %v10696_v16 }
 0x3aa   : > { %8535 = vmatmul.mubr.msk.f32.gmra.mrb[60].mxu1 %vm3487_vm13, %v10701_v13 }
 0x3ab   : > { %v3270_v18 = vpop.permute.xlu1 %3269 }
 0x3ac   : > { %v3268_v15 = vpop.permute.xlu0 %3267  ;;  %3377 = vst.msk [vmem:[#allocation3 + $0x8] sm:$0xff] %vm3375_vm12, %v3270_v18  ;;  %v7542_v18 = vld [vmem:[%s11721_s3 + $0x68] sm:$0xff] }
 0x3ad   : > { %3376 = vst.msk [vmem:[#allocation3] sm:$0xff] %vm3375_vm12, %v3268_v15  ;;  %v8968_v11 = vpack.c.bf16 %v7542_v18, %v7541_v14 }
 0x3af   : > { %v3121_v43 = vpop.permute.xlu1 %3120  ;;  %v10712_v36 = vld [vmem:[#allocation3 + $0x108] sm:$0xff] }
 0x3b0   : > { %v10707_v56 = vld [vmem:[#allocation3 + $0x100] sm:$0xff]  ;;  %v3119_v20 = vpop.permute.xlu0 %3118  ;;  %3194 = vst.msk [vmem:[#allocation3 + $0x118] sm:$0xff] %vm3158_vm9, %v3121_v43 }
 0x3b1   : > { %8537 = vmatprep.mubr.msk.f32.mxu1 %vm3487_vm13, %v10707_v56  ;;  %3193 = vst.msk [vmem:[#allocation3 + $0x110] sm:$0xff] %vm3158_vm9, %v3119_v20  ;;  %v7543_v20 = vld [vmem:[%s11721_s3 + $0x70] sm:$0xf] }
 0x3b2   : > { %8538 = vmatmul.mubr.msk.f32.gmra.mrb[62].mxu1 %vm3487_vm13, %v10712_v36 }
 0x3b3   : > { %v3413_v15 = vld [vmem:[#allocation3 + $0x8] sm:$0xff]  ;;  %v3338_v43 = vpop.permute.xlu1 %3337 }
 0x3b4   : > { %v3412_v24 = vld [vmem:[#allocation3] sm:$0xff]  ;;  %v3336_v22 = vpop.permute.xlu0 %3335  ;;  %3411 = vst.msk [vmem:[#allocation3 + $0x118] sm:$0xff] %vm3375_vm12, %v3338_v43 }
 0x3b5   : > { %8550 = vmatprep.mubr.msk.f32.mxu1 %vm3487_vm13, %v3412_v24  ;;  %3410 = vst.msk [vmem:[#allocation3 + $0x110] sm:$0xff] %vm3375_vm12, %v3336_v22 }
 0x3b6   : > { %8551 = vmatmul.mubr.msk.f32.vlgmr.msra.gmra.mrb[32].mxu1 %vm3487_vm13, %v3413_v15 }
 0x3b7   : > { %8967 = vmatpush3.bf16.msra.mxu1 %v10534_v58  ;;  %8553 = vmatprep.mubr.msk.f32.mxu1 %vm3487_vm13, %v10505_v38 }
 0x3b8   : > { %8969 = vmatprep.subr.bf16.mxu1 %v8968_v11 }
 0x3ba   : > { %8554 = vmatmul.mubr.msk.f32.gmra.mrb[34].mxu1 %vm3487_vm13, %v10510_v41 }
 0x3bb   : > { %8556 = vmatprep.mubr.msk.f32.mxu1 %vm3487_vm13, %v10531_v30  ;;  %8971 = vmatpush3.bf16.msra.mxu1 %v8968_v11  ;;  %v4167_v14 = vld [vmem:[#allocation3 + $0x118] sm:$0xff] }
 0x3bc   : > { %8606 = vmatprep.subr.msk.mxu1 %vm2355_vm7, %v7543_v20  ;;  %v4166_v11 = vld [vmem:[#allocation3 + $0x110] sm:$0xff] }
 0x3be   : > { %8557 = vmatmul.mubr.msk.f32.gmra.mrb[36].mxu1 %vm3487_vm13, %v10539_v37 }
 0x3bf   : > { %8559 = vmatprep.mubr.msk.f32.mxu1 %vm3487_vm13, %v10550_v32  ;;  %8607 = vmatpush3.msk.msra.mxu1 %vm2355_vm7, %v7543_v20 }
 0x3c2   : > { %8560 = vmatmul.mubr.msk.f32.gmra.mrb[38].mxu1 %vm3487_vm13, %v10555_v53 }
 0x3c3   : > { %8562 = vmatprep.mubr.msk.f32.mxu1 %vm3487_vm13, %v10562_v51 }
 0x3c6   : > { %8563 = vmatmul.mubr.msk.f32.gmra.mrb[40].mxu1 %vm3487_vm13, %v10567_v60 }
 0x3c7   : > { %8565 = vmatprep.mubr.msk.f32.mxu1 %vm3487_vm13, %v10574_v27 }
 0x3ca   : > { %8566 = vmatmul.mubr.msk.f32.gmra.mrb[42].mxu1 %vm3487_vm13, %v10579_v55 }
 0x3cb   : > { %8568 = vmatprep.mubr.msk.f32.mxu1 %vm3487_vm13, %v10586_v21 }
 0x3ce   : > { %8569 = vmatmul.mubr.msk.f32.gmra.mrb[44].mxu1 %vm3487_vm13, %v10591_v40 }
 0x3cf   : > { %8571 = vmatprep.mubr.msk.f32.mxu1 %vm3487_vm13, %v10598_v29 }
 0x3d2   : > { %8572 = vmatmul.mubr.msk.f32.gmra.mrb[46].mxu1 %vm3487_vm13, %v10603_v52 }
 0x3d3   : > { %8574 = vmatprep.mubr.msk.f32.mxu1 %vm3487_vm13, %v10610_v59 }
 0x3d6   : > { %8575 = vmatmul.mubr.msk.f32.gmra.mrb[48].mxu1 %vm3487_vm13, %v10615_v62 }
 0x3d7   : > { %8577 = vmatprep.mubr.msk.f32.mxu1 %vm3487_vm13, %v10622_v33 }
 0x3da   : > { %8578 = vmatmul.mubr.msk.f32.gmra.mrb[50].mxu1 %vm3487_vm13, %v10627_v23 }
 0x3db   : > { %8580 = vmatprep.mubr.msk.f32.mxu1 %vm3487_vm13, %v10634_v42 }
 0x3de   : > { %8581 = vmatmul.mubr.msk.f32.gmra.mrb[52].mxu1 %vm3487_vm13, %v10639_v34 }
 0x3df   : > { %8583 = vmatprep.mubr.msk.f32.mxu1 %vm3487_vm13, %v10646_v28 }
 0x3e2   : > { %8584 = vmatmul.mubr.msk.f32.gmra.mrb[54].mxu1 %vm3487_vm13, %v10651_v35 }
 0x3e3   : > { %8586 = vmatprep.mubr.msk.f32.mxu1 %vm3487_vm13, %v10658_v39 }
 0x3e6   : > { %8587 = vmatmul.mubr.msk.f32.gmra.mrb[56].mxu1 %vm3487_vm13, %v10663_v0 }
 0x3e7   : > { %8589 = vmatprep.mubr.msk.f32.mxu1 %vm3487_vm13, %v10670_v19 }
 0x3ea   : > { %8590 = vmatmul.mubr.msk.f32.gmra.mrb[58].mxu1 %vm3487_vm13, %v10675_v61 }
 0x3eb   : > { %8592 = vmatprep.mubr.msk.f32.mxu1 %vm3487_vm13, %v10682_v17 }
 0x3ee   : > { %8593 = vmatmul.mubr.msk.f32.gmra.mrb[60].mxu1 %vm3487_vm13, %v10687_v63 }
 0x3ef   : > { %8595 = vmatprep.mubr.msk.f32.mxu1 %vm3487_vm13, %v10696_v16 }
 0x3f2   : > { %8596 = vmatmul.mubr.msk.f32.gmra.mrb[62].mxu1 %vm3487_vm13, %v10701_v13 }
 0x3f3   : > { %8608 = vmatprep.mubr.msk.f32.mxu1 %vm3487_vm13, %v10531_v30 }
 0x3f6   : > { %8609 = vmatmul.mubr.msk.f32.vlgmr.msra.gmra.mrb[32].mxu1 %vm3487_vm13, %v10539_v37 }
 0x3f7   : > { %8611 = vmatprep.mubr.msk.f32.mxu1 %vm3487_vm13, %v10550_v32 }
 0x3fa   : > { %8612 = vmatmul.mubr.msk.f32.gmra.mrb[34].mxu1 %vm3487_vm13, %v10555_v53 }
 0x3fb   : > { %8614 = vmatprep.mubr.msk.f32.mxu1 %vm3487_vm13, %v10562_v51 }
 0x3fe   : > { %8615 = vmatmul.mubr.msk.f32.gmra.mrb[36].mxu1 %vm3487_vm13, %v10567_v60 }
 0x3ff   : > { %8617 = vmatprep.mubr.msk.f32.mxu1 %vm3487_vm13, %v10574_v27 }
 0x402   : > { %8618 = vmatmul.mubr.msk.f32.gmra.mrb[38].mxu1 %vm3487_vm13, %v10579_v55 }
 0x403   : > { %8620 = vmatprep.mubr.msk.f32.mxu1 %vm3487_vm13, %v10586_v21 }
 0x406   : > { %8621 = vmatmul.mubr.msk.f32.gmra.mrb[40].mxu1 %vm3487_vm13, %v10591_v40 }
 0x407   : > { %8623 = vmatprep.mubr.msk.f32.mxu1 %vm3487_vm13, %v10598_v29 }
 0x40a   : > { %8624 = vmatmul.mubr.msk.f32.gmra.mrb[42].mxu1 %vm3487_vm13, %v10603_v52 }
 0x40b   : > { %8626 = vmatprep.mubr.msk.f32.mxu1 %vm3487_vm13, %v10610_v59 }
 0x40e   : > { %8627 = vmatmul.mubr.msk.f32.gmra.mrb[44].mxu1 %vm3487_vm13, %v10615_v62 }
 0x40f   : > { %8629 = vmatprep.mubr.msk.f32.mxu1 %vm3487_vm13, %v10622_v33  ;;  %v10869_v33 = vld [vmem:[%s11722_s4] ss:$0 sm:$0xff] }
 0x412   : > { %8630 = vmatmul.mubr.msk.f32.gmra.mrb[46].mxu1 %vm3487_vm13, %v10627_v23 }
 0x413   : > { %8632 = vmatprep.mubr.msk.f32.mxu1 %vm3487_vm13, %v10634_v42 }
 0x416   : > { %8633 = vmatmul.mubr.msk.f32.gmra.mrb[48].mxu1 %vm3487_vm13, %v10639_v34 }
 0x417   : > { %8635 = vmatprep.mubr.msk.f32.mxu1 %vm3487_vm13, %v10646_v28 }
 0x41a   : > { %8636 = vmatmul.mubr.msk.f32.gmra.mrb[50].mxu1 %vm3487_vm13, %v10651_v35 }
 0x41b   : > { %8638 = vmatprep.mubr.msk.f32.mxu1 %vm3487_vm13, %v10658_v39  ;;  %v5087_v39 = vld [vmem:[#allocation2] sm:$0xff] }
 0x41c   : > { %5123 = vst.msk [vmem:[#allocation3] sm:$0xff] %vm365_vm2, %v5087_v39 }
 0x41e   : > { %8639 = vmatmul.mubr.msk.f32.gmra.mrb[52].mxu1 %vm3487_vm13, %v10663_v0 }
 0x41f   : > { %8641 = vmatprep.mubr.msk.f32.mxu1 %vm3487_vm13, %v10670_v19  ;;  %v5159_v19 = vld [vmem:[#allocation2 + $0x1] sm:$0xff] }
 0x420   : > { %5231 = vrot.lane.b32.xlu0 %v5159_v19, %s9322_s17 }
 0x422   : > { %8642 = vmatmul.mubr.msk.f32.gmra.mrb[54].mxu1 %vm3487_vm13, %v10675_v61 }
 0x423   : > { %8644 = vmatprep.mubr.msk.f32.mxu1 %vm3487_vm13, %v10682_v17  ;;  %v5160_v17 = vld [vmem:[#allocation2 + $0x9] sm:$0xff] }
 0x424   : > { %5233 = vrot.lane.b32.xlu1 %v5160_v17, %s9322_s17 }
 0x426   : > { %8645 = vmatmul.mubr.msk.f32.gmra.mrb[56].mxu1 %vm3487_vm13, %v10687_v63 }
 0x427   : > { %8647 = vmatprep.mubr.msk.f32.mxu1 %vm3487_vm13, %v10696_v16  ;;  %v5088_v16 = vld [vmem:[#allocation2 + $0x8] sm:$0xff] }
 0x428   : > { %5124 = vst.msk [vmem:[#allocation3 + $0x8] sm:$0xff] %vm365_vm2, %v5088_v16 }
 0x42a   : > { %8648 = vmatmul.mubr.msk.f32.gmra.mrb[58].mxu1 %vm3487_vm13, %v10701_v13  ;;  %v4762_v13 = vld [vmem:[%s11725_s7 + $0xc] sm:$0xf] }
 0x42b   : > { %8650 = vmatprep.mubr.msk.f32.mxu1 %vm3487_vm13, %v10707_v56  ;;  %8656 = vmatprep.subr.msk.mxu1 %vm2355_vm7, %v4762_v13 }
 0x42c   : > { %8657 = vmatpush3.msk.msra.mxu1 %vm2355_vm7, %v4762_v13 }
 0x42e   : > { %8651 = vmatmul.mubr.msk.f32.gmra.mrb[60].mxu1 %vm3487_vm13, %v10712_v36 }
 0x42f   : > { %8653 = vmatprep.mubr.msk.f32.mxu1 %vm3487_vm13, %v4166_v11 }
 0x432   : > { %8654 = vmatmul.mubr.msk.f32.gmra.mrb[62].mxu1 %vm3487_vm13, %v4167_v14 }
 0x492   : > { %v5232_v42 = vpop.permute.xlu0 %5231 }
 0x493   : > { %5340 = vst.msk [vmem:[#allocation3] sm:$0xff] %vm5339_vm14, %v5232_v42 }
 0x496   : > { %v5234_v28 = vpop.permute.xlu1 %5233 }
 0x497   : > { %5341 = vst.msk [vmem:[#allocation3 + $0x8] sm:$0xff] %vm5339_vm14, %v5234_v28 }
 0x4c9   : > { %v8610_v59 = vpop.f32.mrb[32].mxu1 }
 0x4ca   : > { %v4538_v29 = vadd.f32 %v8610_v59, %v10869_v33  ;;  %v4339_v22 = vpop.f32.mrb[33].mxu1 }
 0x4cb   : > { %v4537_v24 = vadd.f32 %v10869_v33, %v4339_v22 }
 0x4cc   : > { %v4570_v38 = vmax.f32 %v4538_v29, 0.0 }
 0x4cd   : > { %v4569_v41 = vmax.f32 %v4537_v24, 0.0  ;;  %v8613_v30 = vpop.f32.mrb[34].mxu1 }
 0x4ce   : > { %v4540_v58 = vadd.f32 %v8613_v30, %v10869_v33  ;;  %4635 = vrot.lane.b32.xlu1 %v4570_v38, %s9323_s20  ;;  %v4349_v37 = vpop.f32.mrb[35].mxu1 }
 0x4cf   : > { %v4539_v32 = vadd.f32 %v10869_v33, %v4349_v37  ;;  %4633 = vrot.lane.b32.xlu0 %v4569_v41, %s9323_s20  ;;  %8658 = vmatprep.mubr.msk.f32.mxu1 %vm2290_vm10, %v4569_v41 }
 0x4d0   : > { %v4572_v53 = vmax.f32 %v4540_v58, 0.0  ;;  %8659 = vmatmul.mubr.msk.f32.vlgmr.msra.gmra.mrb[18].mxu1 %vm2290_vm10, %v4570_v38 }
 0x4d1   : > { %v4571_v51 = vmax.f32 %v4539_v32, 0.0  ;;  %v8616_v60 = vpop.f32.mrb[36].mxu1 }
 0x4d2   : > { %v4542_v27 = vadd.f32 %v8616_v60, %v10869_v33  ;;  %4639 = vrot.lane.b32.xlu1 %v4572_v53, %s9323_s20  ;;  %v4359_v55 = vpop.f32.mrb[37].mxu1 }
 0x4d3   : > { %v4541_v21 = vadd.f32 %v10869_v33, %v4359_v55  ;;  %4637 = vrot.lane.b32.xlu0 %v4571_v51, %s9323_s20  ;;  %8661 = vmatprep.mubr.msk.f32.mxu1 %vm2290_vm10, %v4571_v51 }
 0x4d4   : > { %v4574_v40 = vmax.f32 %v4542_v27, 0.0  ;;  %8662 = vmatmul.mubr.msk.f32.gmra.mrb[20].mxu1 %vm2290_vm10, %v4572_v53 }
 0x4d5   : > { %v4573_v52 = vmax.f32 %v4541_v21, 0.0  ;;  %v8619_v62 = vpop.f32.mrb[38].mxu1 }
 0x4d6   : > { %v4544_v23 = vadd.f32 %v8619_v62, %v10869_v33  ;;  %4643 = vrot.lane.b32.xlu1 %v4574_v40, %s9323_s20  ;;  %v4369_v34 = vpop.f32.mrb[39].mxu1 }
 0x4d7   : > { %v4543_v35 = vadd.f32 %v10869_v33, %v4369_v34  ;;  %4641 = vrot.lane.b32.xlu0 %v4573_v52, %s9323_s20  ;;  %8664 = vmatprep.mubr.msk.f32.mxu1 %vm2290_vm10, %v4573_v52 }
 0x4d8   : > { %v4576_v0 = vmax.f32 %v4544_v23, 0.0  ;;  %8665 = vmatmul.mubr.msk.f32.gmra.mrb[22].mxu1 %vm2290_vm10, %v4574_v40 }
 0x4d9   : > { %v4575_v61 = vmax.f32 %v4543_v35, 0.0  ;;  %v8622_v63 = vpop.f32.mrb[40].mxu1 }
 0x4da   : > { %v4546_v56 = vadd.f32 %v8622_v63, %v10869_v33  ;;  %4647 = vrot.lane.b32.xlu1 %v4576_v0, %s9323_s20  ;;  %v4379_v36 = vpop.f32.mrb[41].mxu1 }
 0x4db   : > { %v4545_v18 = vadd.f32 %v10869_v33, %v4379_v36  ;;  %4645 = vrot.lane.b32.xlu0 %v4575_v61, %s9323_s20  ;;  %8667 = vmatprep.mubr.msk.f32.mxu1 %vm2290_vm10, %v4575_v61 }
 0x4dc   : > { %v4578_v15 = vmax.f32 %v4546_v56, 0.0  ;;  %8668 = vmatmul.mubr.msk.f32.gmra.mrb[24].mxu1 %vm2290_vm10, %v4576_v0 }
 0x4dd   : > { %v4577_v43 = vmax.f32 %v4545_v18, 0.0  ;;  %v8625_v20 = vpop.f32.mrb[42].mxu1 }
 0x4de   : > { %v4548_v11 = vadd.f32 %v8625_v20, %v10869_v33  ;;  %4651 = vrot.lane.b32.xlu1 %v4578_v15, %s9323_s20  ;;  %v4389_v14 = vpop.f32.mrb[43].mxu1 }
 0x4df   : > { %v4547_v17 = vadd.f32 %v10869_v33, %v4389_v14  ;;  %4649 = vrot.lane.b32.xlu0 %v4577_v43, %s9323_s20  ;;  %8670 = vmatprep.mubr.msk.f32.mxu1 %vm2290_vm10, %v4577_v43 }
 0x4e0   : > { %v4580_v19 = vmax.f32 %v4548_v11, 0.0  ;;  %8671 = vmatmul.mubr.msk.f32.gmra.mrb[26].mxu1 %vm2290_vm10, %v4578_v15 }
 0x4e1   : > { %v4579_v13 = vmax.f32 %v4547_v17, 0.0  ;;  %v8628_v16 = vpop.f32.mrb[44].mxu1 }
 0x4e2   : > { %v4550_v39 = vadd.f32 %v8628_v16, %v10869_v33  ;;  %4655 = vrot.lane.b32.xlu1 %v4580_v19, %s9323_s20  ;;  %v4399_v28 = vpop.f32.mrb[45].mxu1 }
 0x4e3   : > { %v4549_v42 = vadd.f32 %v10869_v33, %v4399_v28  ;;  %4653 = vrot.lane.b32.xlu0 %v4579_v13, %s9323_s20  ;;  %8673 = vmatprep.mubr.msk.f32.mxu1 %vm2290_vm10, %v4579_v13 }
 0x4e4   : > { %v4582_v59 = vmax.f32 %v4550_v39, 0.0  ;;  %8674 = vmatmul.mubr.msk.f32.gmra.mrb[28].mxu1 %vm2290_vm10, %v4580_v19 }
 0x4e5   : > { %v4581_v29 = vmax.f32 %v4549_v42, 0.0  ;;  %v8631_v22 = vpop.f32.mrb[46].mxu1 }
 0x4e6   : > { %v4552_v24 = vadd.f32 %v8631_v22, %v10869_v33  ;;  %4659 = vrot.lane.b32.xlu1 %v4582_v59, %s9323_s20  ;;  %v4409_v38 = vpop.f32.mrb[47].mxu1 }
 0x4e7   : > { %v4551_v41 = vadd.f32 %v10869_v33, %v4409_v38  ;;  %4657 = vrot.lane.b32.xlu0 %v4581_v29, %s9323_s20  ;;  %8676 = vmatprep.mubr.msk.f32.mxu1 %vm2290_vm10, %v4581_v29 }
 0x4e8   : > { %v4584_v30 = vmax.f32 %v4552_v24, 0.0  ;;  %8677 = vmatmul.mubr.msk.f32.gmra.mrb[30].mxu1 %vm2290_vm10, %v4582_v59 }
 0x4e9   : > { %v4583_v58 = vmax.f32 %v4551_v41, 0.0  ;;  %v8634_v37 = vpop.f32.mrb[48].mxu1 }
 0x4ea   : > { %v4554_v32 = vadd.f32 %v8634_v37, %v10869_v33  ;;  %4663 = vrot.lane.b32.xlu1 %v4584_v30, %s9323_s20  ;;  %v4419_v53 = vpop.f32.mrb[49].mxu1 }
 0x4eb   : > { %v4553_v51 = vadd.f32 %v10869_v33, %v4419_v53  ;;  %4661 = vrot.lane.b32.xlu0 %v4583_v58, %s9323_s20  ;;  %8679 = vmatprep.mubr.msk.f32.mxu1 %vm2290_vm10, %v4583_v58 }
 0x4ec   : > { %v4586_v60 = vmax.f32 %v4554_v32, 0.0  ;;  %8680 = vmatmul.mubr.msk.f32.gmra.mrb[0].mxu1 %vm2290_vm10, %v4584_v30 }
 0x4ed   : > { %v4585_v27 = vmax.f32 %v4553_v51, 0.0  ;;  %v8637_v55 = vpop.f32.mrb[50].mxu1 }
 0x4ee   : > { %v4556_v21 = vadd.f32 %v8637_v55, %v10869_v33  ;;  %4667 = vrot.lane.b32.xlu1 %v4586_v60, %s9323_s20  ;;  %v4429_v40 = vpop.f32.mrb[51].mxu1 }
 0x4ef   : > { %v4555_v52 = vadd.f32 %v10869_v33, %v4429_v40  ;;  %4665 = vrot.lane.b32.xlu0 %v4585_v27, %s9323_s20  ;;  %8682 = vmatprep.mubr.msk.f32.mxu1 %vm2290_vm10, %v4585_v27  ;;  %v7612_v40 = vld [vmem:[%s11723_s5 + $0x38] sm:$0xff] }
 0x4f0   : > { %v4588_v62 = vmax.f32 %v4556_v21, 0.0  ;;  %8683 = vmatmul.mubr.msk.f32.gmra.mrb[2].mxu1 %vm2290_vm10, %v4586_v60 }
 0x4f1   : > { %v4587_v23 = vmax.f32 %v4555_v52, 0.0  ;;  %v8640_v34 = vpop.f32.mrb[52].mxu1 }
 0x4f2   : > { %v4558_v35 = vadd.f32 %v8640_v34, %v10869_v33  ;;  %4671 = vrot.lane.b32.xlu1 %v4588_v62, %s9323_s20  ;;  %v4439_v0 = vpop.f32.mrb[53].mxu1  ;;  %v7614_v34 = vld [vmem:[%s11723_s5 + $0x48] sm:$0xff] }
 0x4f3   : > { %v4557_v61 = vadd.f32 %v10869_v33, %v4439_v0  ;;  %4669 = vrot.lane.b32.xlu0 %v4587_v23, %s9323_s20  ;;  %8685 = vmatprep.mubr.msk.f32.mxu1 %vm2290_vm10, %v4587_v23  ;;  %v7613_v23 = vld [vmem:[%s11723_s5 + $0x40] sm:$0xff] }
 0x4f4   : > { %v4590_v63 = vmax.f32 %v4558_v35, 0.0  ;;  %8686 = vmatmul.mubr.msk.f32.gmra.mrb[4].mxu1 %vm2290_vm10, %v4588_v62  ;;  %v8976_v0 = vpack.c.bf16 %v7614_v34, %v7613_v23 }
 0x4f5   : > { %v4589_v56 = vmax.f32 %v4557_v61, 0.0  ;;  %v8643_v36 = vpop.f32.mrb[54].mxu1 }
 0x4f6   : > { %v4560_v18 = vadd.f32 %v8643_v36, %v10869_v33  ;;  %4675 = vrot.lane.b32.xlu1 %v4590_v63, %s9323_s20  ;;  %v4449_v15 = vpop.f32.mrb[55].mxu1 }
 0x4f7   : > { %v4559_v43 = vadd.f32 %v10869_v33, %v4449_v15  ;;  %4673 = vrot.lane.b32.xlu0 %v4589_v56, %s9323_s20  ;;  %8688 = vmatprep.mubr.msk.f32.mxu1 %vm2290_vm10, %v4589_v56  ;;  %v7616_v56 = vld [vmem:[%s11723_s5 + $0x58] sm:$0xff] }
 0x4f8   : > { %v4592_v20 = vmax.f32 %v4560_v18, 0.0  ;;  %8689 = vmatmul.mubr.msk.f32.gmra.mrb[6].mxu1 %vm2290_vm10, %v4590_v63  ;;  %v7615_v63 = vld [vmem:[%s11723_s5 + $0x50] sm:$0xff] }
 0x4f9   : > { %v4591_v11 = vmax.f32 %v4559_v43, 0.0  ;;  %v8646_v14 = vpop.f32.mrb[56].mxu1  ;;  %v8980_v18 = vpack.c.bf16 %v7616_v56, %v7615_v63 }
 0x4fa   : > { %v4562_v17 = vadd.f32 %v8646_v14, %v10869_v33  ;;  %4679 = vrot.lane.b32.xlu1 %v4592_v20, %s9323_s20  ;;  %v4459_v19 = vpop.f32.mrb[57].mxu1 }
 0x4fb   : > { %v4561_v13 = vadd.f32 %v10869_v33, %v4459_v19  ;;  %4677 = vrot.lane.b32.xlu0 %v4591_v11, %s9323_s20  ;;  %8691 = vmatprep.mubr.msk.f32.mxu1 %vm2290_vm10, %v4591_v11 }
 0x4fc   : > { %v4594_v16 = vmax.f32 %v4562_v17, 0.0  ;;  %8692 = vmatmul.mubr.msk.f32.gmra.mrb[8].mxu1 %vm2290_vm10, %v4592_v20 }
 0x4fd   : > { %v4593_v39 = vmax.f32 %v4561_v13, 0.0  ;;  %v8649_v28 = vpop.f32.mrb[58].mxu1 }
 0x4fe   : > { %v4564_v42 = vadd.f32 %v8649_v28, %v10869_v33  ;;  %4683 = vrot.lane.b32.xlu1 %v4594_v16, %s9323_s20  ;;  %v4469_v59 = vpop.f32.mrb[59].mxu1 }
 0x4ff   : > { %v4563_v29 = vadd.f32 %v10869_v33, %v4469_v59  ;;  %4681 = vrot.lane.b32.xlu0 %v4593_v39, %s9323_s20  ;;  %8694 = vmatprep.mubr.msk.f32.mxu1 %vm2290_vm10, %v4593_v39 }
 0x500   : > { %v4596_v22 = vmax.f32 %v4564_v42, 0.0  ;;  %8695 = vmatmul.mubr.msk.f32.gmra.mrb[10].mxu1 %vm2290_vm10, %v4594_v16 }
 0x501   : > { %v4595_v24 = vmax.f32 %v4563_v29, 0.0  ;;  %v8652_v38 = vpop.f32.mrb[60].mxu1 }
 0x502   : > { %v4566_v41 = vadd.f32 %v8652_v38, %v10869_v33  ;;  %4687 = vrot.lane.b32.xlu1 %v4596_v22, %s9323_s20  ;;  %v4479_v30 = vpop.f32.mrb[61].mxu1 }
 0x503   : > { %v4565_v58 = vadd.f32 %v10869_v33, %v4479_v30  ;;  %4685 = vrot.lane.b32.xlu0 %v4595_v24, %s9323_s20  ;;  %8697 = vmatprep.mubr.msk.f32.mxu1 %vm2290_vm10, %v4595_v24 }
 0x504   : > { %v4598_v37 = vmax.f32 %v4566_v41, 0.0  ;;  %8698 = vmatmul.mubr.msk.f32.gmra.mrb[12].mxu1 %vm2290_vm10, %v4596_v22 }
 0x505   : > { %v4597_v32 = vmax.f32 %v4565_v58, 0.0  ;;  %v8655_v53 = vpop.f32.mrb[62].mxu1 }
 0x506   : > { %v4568_v51 = vadd.f32 %v8655_v53, %v10869_v33  ;;  %4691 = vrot.lane.b32.xlu1 %v4598_v37, %s9323_s20  ;;  %v4489_v60 = vpop.f32.mrb[63].mxu1 }
 0x507   : > { %v4567_v27 = vadd.f32 %v10869_v33, %v4489_v60  ;;  %4689 = vrot.lane.b32.xlu0 %v4597_v32, %s9323_s20  ;;  %8700 = vmatprep.mubr.msk.f32.mxu1 %vm2290_vm10, %v4597_v32  ;;  %v7611_v33 = vld [vmem:[%s11723_s5 + $0x30] sm:$0xff] }
 0x508   : > { %v4600_v55 = vmax.f32 %v4568_v51, 0.0  ;;  %8701 = vmatmul.mubr.msk.f32.gmra.mrb[14].mxu1 %vm2290_vm10, %v4598_v37  ;;  %v8972_v52 = vpack.c.bf16 %v7612_v40, %v7611_v33 }
 0x509   : > { %v4599_v21 = vmax.f32 %v4567_v27, 0.0 }
 0x50a   : > { %4695 = vrot.lane.b32.xlu1 %v4600_v55, %s9323_s20  ;;  %8973 = vmatprep.subr.bf16.mxu0 %v8972_v52 }
 0x50b   : > { %4693 = vrot.lane.b32.xlu0 %v4599_v21, %s9323_s20  ;;  %8703 = vmatprep.mubr.msk.f32.mxu1 %vm2290_vm10, %v4599_v21 }
 0x50c   : > { %8704 = vmatmul.mubr.msk.f32.gmra.mrb[16].mxu1 %vm2290_vm10, %v4600_v55  ;;  %8975 = vmatpush3.bf16.msra.mxu0 %v8972_v52 }
 0x50d   : > { %8977 = vmatprep.subr.bf16.mxu0 %v8976_v0 }
 0x510   : > { %8979 = vmatpush3.bf16.msra.mxu0 %v8976_v0 }
 0x511   : > { %8981 = vmatprep.subr.bf16.mxu0 %v8980_v18 }
 0x514   : > { %8983 = vmatpush3.bf16.msra.mxu0 %v8980_v18 }
 0x540   : > { %v4636_v62 = vpop.permute.xlu1 %4635 }
 0x541   : > { %4731 = vst.msk [vmem:[#allocation2 + $0x21] sm:$0xff] %vm4729_vm15, %v4636_v62  ;;  %v4634_v35 = vpop.permute.xlu0 %4633 }
 0x542   : > { %4730 = vst.msk [vmem:[#allocation2 + $0x19] sm:$0xff] %vm4729_vm15, %v4634_v35 }
 0x544   : > { %v4640_v61 = vpop.permute.xlu1 %4639 }
 0x545   : > { %4733 = vst.msk [vmem:[#allocation2 + $0x39] sm:$0xff] %vm4729_vm15, %v4640_v61  ;;  %v4638_v36 = vpop.permute.xlu0 %4637 }
 0x546   : > { %4732 = vst.msk [vmem:[#allocation2 + $0x31] sm:$0xff] %vm4729_vm15, %v4638_v36 }
 0x548   : > { %v4644_v15 = vpop.permute.xlu1 %4643  ;;  %v5162_v43 = vld [vmem:[#allocation2 + $0x21] sm:$0xff] }
 0x549   : > { %4735 = vst.msk [vmem:[#allocation2 + $0x51] sm:$0xff] %vm4729_vm15, %v4644_v15  ;;  %v4642_v20 = vpop.permute.xlu0 %4641  ;;  %5237 = vrot.lane.b32.xlu1 %v5162_v43, %s9322_s17  ;;  %v5161_v11 = vld [vmem:[#allocation2 + $0x19] sm:$0xff]  ;;  %v5379_v13 = vld [vmem:[#allocation2 + $0x22] sm:$0xff] }
 0x54a   : > { %v5090_v14 = vld [vmem:[#allocation2 + $0x20] sm:$0xff]  ;;  %4734 = vst.msk [vmem:[#allocation2 + $0x49] sm:$0xff] %vm4729_vm15, %v4642_v20  ;;  %5235 = vrot.lane.b32.xlu0 %v5161_v11, %s9322_s17  ;;  %v5089_v17 = vld [vmem:[#allocation2 + $0x18] sm:$0xff] }
 0x54b   : > { %5126 = vst.msk [vmem:[#allocation3 + $0x18] sm:$0xff] %vm365_vm2, %v5090_v14  ;;  %5125 = vst.msk [vmem:[#allocation3 + $0x10] sm:$0xff] %vm365_vm2, %v5089_v17  ;;  %v5378_v39 = vld [vmem:[#allocation2 + $0x1a] sm:$0xff] }
 0x54c   : > { %v4648_v19 = vpop.permute.xlu1 %4647  ;;  %v5164_v29 = vld [vmem:[#allocation2 + $0x39] sm:$0xff] }
 0x54d   : > { %4737 = vst.msk [vmem:[#allocation2 + $0x69] sm:$0xff] %vm4729_vm15, %v4648_v19  ;;  %v4646_v16 = vpop.permute.xlu0 %4645  ;;  %5454 = vrot.lane.b32.xlu1 %v5379_v13, %s9325_s25  ;;  %v5092_v28 = vld [vmem:[#allocation2 + $0x38] sm:$0xff]  ;;  %v5091_v42 = vld [vmem:[#allocation2 + $0x30] sm:$0xff] }
 0x54e   : > { %4736 = vst.msk [vmem:[#allocation2 + $0x61] sm:$0xff] %vm4729_vm15, %v4646_v16  ;;  %5452 = vrot.lane.b32.xlu0 %v5378_v39, %s9325_s25  ;;  %v5163_v24 = vld [vmem:[#allocation2 + $0x31] sm:$0xff]  ;;  %v5381_v58 = vld [vmem:[#allocation2 + $0x3a] sm:$0xff] }
 0x54f   : > { %5128 = vst.msk [vmem:[#allocation3 + $0x28] sm:$0xff] %vm365_vm2, %v5092_v28  ;;  %5127 = vst.msk [vmem:[#allocation3 + $0x20] sm:$0xff] %vm365_vm2, %v5091_v42  ;;  %v5380_v32 = vld [vmem:[#allocation2 + $0x32] sm:$0xff] }
 0x550   : > { %v4652_v59 = vpop.permute.xlu1 %4651  ;;  %v5166_v27 = vld [vmem:[#allocation2 + $0x51] sm:$0xff] }
 0x551   : > { %4739 = vst.msk [vmem:[#allocation2 + $0x81] sm:$0xff] %vm4729_vm15, %v4652_v59  ;;  %v4650_v22 = vpop.permute.xlu0 %4649  ;;  %5241 = vrot.lane.b32.xlu1 %v5164_v29, %s9322_s17  ;;  %v5094_v38 = vld [vmem:[#allocation2 + $0x50] sm:$0xff]  ;;  %v5093_v41 = vld [vmem:[#allocation2 + $0x48] sm:$0xff] }
 0x552   : > { %4738 = vst.msk [vmem:[#allocation2 + $0x79] sm:$0xff] %vm4729_vm15, %v4650_v22  ;;  %5239 = vrot.lane.b32.xlu0 %v5163_v24, %s9322_s17  ;;  %v5165_v21 = vld [vmem:[#allocation2 + $0x49] sm:$0xff]  ;;  %v5383_v62 = vld [vmem:[#allocation2 + $0x52] sm:$0xff] }
 0x553   : > { %5130 = vst.msk [vmem:[#allocation3 + $0x38] sm:$0xff] %vm365_vm2, %v5094_v38  ;;  %5129 = vst.msk [vmem:[#allocation3 + $0x30] sm:$0xff] %vm365_vm2, %v5093_v41  ;;  %v5382_v34 = vld [vmem:[#allocation2 + $0x4a] sm:$0xff] }
 0x554   : > { %v4656_v30 = vpop.permute.xlu1 %4655  ;;  %v5168_v63 = vld [vmem:[#allocation2 + $0x69] sm:$0xff] }
 0x555   : > { %4741 = vst.msk [vmem:[#allocation2 + $0x99] sm:$0xff] %vm4729_vm15, %v4656_v30  ;;  %v4654_v37 = vpop.permute.xlu0 %4653  ;;  %5458 = vrot.lane.b32.xlu1 %v5381_v58, %s9325_s25  ;;  %v5096_v53 = vld [vmem:[#allocation2 + $0x68] sm:$0xff]  ;;  %v5095_v51 = vld [vmem:[#allocation2 + $0x60] sm:$0xff] }
 0x556   : > { %4740 = vst.msk [vmem:[#allocation2 + $0x91] sm:$0xff] %vm4729_vm15, %v4654_v37  ;;  %5456 = vrot.lane.b32.xlu0 %v5380_v32, %s9325_s25  ;;  %v5167_v36 = vld [vmem:[#allocation2 + $0x61] sm:$0xff]  ;;  %v5385_v20 = vld [vmem:[#allocation2 + $0x6a] sm:$0xff] }
 0x557   : > { %5132 = vst.msk [vmem:[#allocation3 + $0x48] sm:$0xff] %vm365_vm2, %v5096_v53  ;;  %5131 = vst.msk [vmem:[#allocation3 + $0x40] sm:$0xff] %vm365_vm2, %v5095_v51  ;;  %v5384_v14 = vld [vmem:[#allocation2 + $0x62] sm:$0xff] }
 0x558   : > { %v4660_v60 = vpop.permute.xlu1 %4659  ;;  %v5170_v16 = vld [vmem:[#allocation2 + $0x81] sm:$0xff] }
 0x559   : > { %4743 = vst.msk [vmem:[#allocation2 + $0xb1] sm:$0xff] %vm4729_vm15, %v4660_v60  ;;  %v4658_v55 = vpop.permute.xlu0 %4657  ;;  %5245 = vrot.lane.b32.xlu1 %v5166_v27, %s9322_s17  ;;  %v5098_v33 = vld [vmem:[#allocation2 + $0x80] sm:$0xff]  ;;  %v5097_v40 = vld [vmem:[#allocation2 + $0x78] sm:$0xff] }
 0x55a   : > { %4742 = vst.msk [vmem:[#allocation2 + $0xa9] sm:$0xff] %vm4729_vm15, %v4658_v55  ;;  %5243 = vrot.lane.b32.xlu0 %v5165_v21, %s9322_s17  ;;  %v5169_v28 = vld [vmem:[#allocation2 + $0x79] sm:$0xff]  ;;  %v5387_v22 = vld [vmem:[#allocation2 + $0x82] sm:$0xff] }
 0x55b   : > { %5134 = vst.msk [vmem:[#allocation3 + $0x58] sm:$0xff] %vm365_vm2, %v5098_v33  ;;  %5133 = vst.msk [vmem:[#allocation3 + $0x50] sm:$0xff] %vm365_vm2, %v5097_v40  ;;  %v5386_v38 = vld [vmem:[#allocation2 + $0x7a] sm:$0xff] }
 0x55c   : > { %v4664_v52 = vpop.permute.xlu1 %4663  ;;  %v5172_v37 = vld [vmem:[#allocation2 + $0x99] sm:$0xff] }
 0x55d   : > { %4745 = vst.msk [vmem:[#allocation2 + $0xc9] sm:$0xff] %vm4729_vm15, %v4664_v52  ;;  %v4662_v23 = vpop.permute.xlu0 %4661  ;;  %5462 = vrot.lane.b32.xlu1 %v5383_v62, %s9325_s25  ;;  %v5100_v35 = vld [vmem:[#allocation2 + $0x98] sm:$0xff]  ;;  %v5099_v0 = vld [vmem:[#allocation2 + $0x90] sm:$0xff] }
 0x55e   : > { %4744 = vst.msk [vmem:[#allocation2 + $0xc1] sm:$0xff] %vm4729_vm15, %v4662_v23  ;;  %5460 = vrot.lane.b32.xlu0 %v5382_v34, %s9325_s25  ;;  %v5171_v53 = vld [vmem:[#allocation2 + $0x91] sm:$0xff]  ;;  %v5389_v55 = vld [vmem:[#allocation2 + $0x9a] sm:$0xff] }
 0x55f   : > { %5136 = vst.msk [vmem:[#allocation3 + $0x68] sm:$0xff] %vm365_vm2, %v5100_v35  ;;  %5135 = vst.msk [vmem:[#allocation3 + $0x60] sm:$0xff] %vm365_vm2, %v5099_v0  ;;  %v5388_v33 = vld [vmem:[#allocation2 + $0x92] sm:$0xff] }
 0x560   : > { %v4668_v61 = vpop.permute.xlu1 %4667  ;;  %v5174_v23 = vld [vmem:[#allocation2 + $0xb1] sm:$0xff] }
 0x561   : > { %4747 = vst.msk [vmem:[#allocation2 + $0xe1] sm:$0xff] %vm4729_vm15, %v4668_v61  ;;  %v4666_v56 = vpop.permute.xlu0 %4665  ;;  %5249 = vrot.lane.b32.xlu1 %v5168_v63, %s9322_s17  ;;  %v5102_v18 = vld [vmem:[#allocation2 + $0xb0] sm:$0xff]  ;;  %v5101_v15 = vld [vmem:[#allocation2 + $0xa8] sm:$0xff] }
 0x562   : > { %4746 = vst.msk [vmem:[#allocation2 + $0xd9] sm:$0xff] %vm4729_vm15, %v4666_v56  ;;  %5247 = vrot.lane.b32.xlu0 %v5167_v36, %s9322_s17  ;;  %v5173_v35 = vld [vmem:[#allocation2 + $0xa9] sm:$0xff]  ;;  %v5391_v56 = vld [vmem:[#allocation2 + $0xb2] sm:$0xff] }
 0x563   : > { %5138 = vst.msk [vmem:[#allocation3 + $0x78] sm:$0xff] %vm365_vm2, %v5102_v18  ;;  %5137 = vst.msk [vmem:[#allocation3 + $0x70] sm:$0xff] %vm365_vm2, %v5101_v15  ;;  %v5390_v18 = vld [vmem:[#allocation2 + $0xaa] sm:$0xff] }
 0x564   : > { %v4672_v43 = vpop.permute.xlu1 %4671 }
 0x565   : > { %4749 = vst.msk [vmem:[#allocation2 + $0xf9] sm:$0xff] %vm4729_vm15, %v4672_v43  ;;  %v4670_v11 = vpop.permute.xlu0 %4669  ;;  %5466 = vrot.lane.b32.xlu1 %v5385_v20, %s9325_s25  ;;  %v5104_v17 = vld [vmem:[#allocation2 + $0xc8] sm:$0xff]  ;;  %v5103_v19 = vld [vmem:[#allocation2 + $0xc0] sm:$0xff] }
 0x566   : > { %4748 = vst.msk [vmem:[#allocation2 + $0xf1] sm:$0xff] %vm4729_vm15, %v4670_v11  ;;  %5464 = vrot.lane.b32.xlu0 %v5384_v14, %s9325_s25  ;;  %v5176_v20 = vld [vmem:[#allocation2 + $0xc9] sm:$0xff]  ;;  %v5175_v11 = vld [vmem:[#allocation2 + $0xc1] sm:$0xff] }
 0x567   : > { %5140 = vst.msk [vmem:[#allocation3 + $0x88] sm:$0xff] %vm365_vm2, %v5104_v17  ;;  %5139 = vst.msk [vmem:[#allocation3 + $0x80] sm:$0xff] %vm365_vm2, %v5103_v19  ;;  %v5393_v19 = vld [vmem:[#allocation2 + $0xca] sm:$0xff] }
 0x568   : > { %v4676_v13 = vpop.permute.xlu1 %4675 }
 0x569   : > { %4751 = vst.msk [vmem:[#allocation2 + $0x111] sm:$0xff] %vm4729_vm15, %v4676_v13  ;;  %v4674_v39 = vpop.permute.xlu0 %4673  ;;  %5253 = vrot.lane.b32.xlu1 %v5170_v16, %s9322_s17  ;;  %v5106_v42 = vld [vmem:[#allocation2 + $0xe0] sm:$0xff]  ;;  %v5105_v59 = vld [vmem:[#allocation2 + $0xd8] sm:$0xff] }
 0x56a   : > { %4750 = vst.msk [vmem:[#allocation2 + $0x109] sm:$0xff] %vm4729_vm15, %v4674_v39  ;;  %5251 = vrot.lane.b32.xlu0 %v5169_v28, %s9322_s17  ;;  %v5392_v13 = vld [vmem:[#allocation2 + $0xc2] sm:$0xff] }
 0x56b   : > { %5142 = vst.msk [vmem:[#allocation3 + $0x98] sm:$0xff] %vm365_vm2, %v5106_v42  ;;  %5141 = vst.msk [vmem:[#allocation3 + $0x90] sm:$0xff] %vm365_vm2, %v5105_v59  ;;  %v5625_v16 = vld [vmem:[%s11723_s5] sm:$0xff]  ;;  %v5626_v39 = vld [vmem:[%s11723_s5 + $0x8] sm:$0xff] }
 0x56c   : > { %v4680_v29 = vpop.permute.xlu1 %4679  ;;  %v11085_v59 = vpack.c.bf16 %v5626_v39, %v5625_v16 }
 0x56d   : > { %4753 = vst.msk [vmem:[#allocation2 + $0x129] sm:$0xff] %vm4729_vm15, %v4680_v29  ;;  %v4678_v24 = vpop.permute.xlu0 %4677  ;;  %5470 = vrot.lane.b32.xlu1 %v5387_v22, %s9325_s25  ;;  %v5108_v41 = vld [vmem:[#allocation2 + $0xf8] sm:$0xff]  ;;  %v5107_v30 = vld [vmem:[#allocation2 + $0xf0] sm:$0xff]  ;;  %v5178_v29 = vld [vmem:[#allocation2 + $0xe1] sm:$0xff] }
 0x56e   : > { %4752 = vst.msk [vmem:[#allocation2 + $0x121] sm:$0xff] %vm4729_vm15, %v4678_v24  ;;  %5468 = vrot.lane.b32.xlu0 %v5386_v38, %s9325_s25  ;;  %v5177_v22 = vld [vmem:[#allocation2 + $0xd9] sm:$0xff]  ;;  %8985 = vmatprep.subr.bf16.mxu0 %v11085_v59  ;;  %v5395_v24 = vld [vmem:[#allocation2 + $0xe2] sm:$0xff] }
 0x56f   : > { %5144 = vst.msk [vmem:[#allocation3 + $0xa8] sm:$0xff] %vm365_vm2, %v5108_v41  ;;  %5143 = vst.msk [vmem:[#allocation3 + $0xa0] sm:$0xff] %vm365_vm2, %v5107_v30  ;;  %v5394_v38 = vld [vmem:[#allocation2 + $0xda] sm:$0xff]  ;;  %v5179_v30 = vld [vmem:[#allocation2 + $0xf1] sm:$0xff] }
 0x570   : > { %v4684_v58 = vpop.permute.xlu1 %4683  ;;  %v5180_v41 = vld [vmem:[#allocation2 + $0xf9] sm:$0xff] }
 0x571   : > { %4755 = vst.msk [vmem:[#allocation2 + $0x141] sm:$0xff] %vm4729_vm15, %v4684_v58  ;;  %v4682_v32 = vpop.permute.xlu0 %4681  ;;  %5257 = vrot.lane.b32.xlu1 %v5172_v37, %s9322_s17  ;;  %v5110_v51 = vld [vmem:[#allocation2 + $0x110] sm:$0xff]  ;;  %v5109_v60 = vld [vmem:[#allocation2 + $0x108] sm:$0xff]  ;;  %v5397_v58 = vld [vmem:[#allocation2 + $0xfa] sm:$0xff] }
 0x572   : > { %4754 = vst.msk [vmem:[#allocation2 + $0x139] sm:$0xff] %vm4729_vm15, %v4682_v32  ;;  %5255 = vrot.lane.b32.xlu0 %v5171_v53, %s9322_s17  ;;  %v5396_v37 = vld [vmem:[#allocation2 + $0xf2] sm:$0xff]  ;;  %v5181_v53 = vld [vmem:[#allocation2 + $0x109] sm:$0xff] }
 0x573   : > { %5146 = vst.msk [vmem:[#allocation3 + $0xb8] sm:$0xff] %vm365_vm2, %v5110_v51  ;;  %5145 = vst.msk [vmem:[#allocation3 + $0xb0] sm:$0xff] %vm365_vm2, %v5109_v60  ;;  %v5182_v32 = vld [vmem:[#allocation2 + $0x111] sm:$0xff] }
 0x574   : > { %v4688_v27 = vpop.permute.xlu1 %4687  ;;  %v5399_v51 = vld [vmem:[#allocation2 + $0x112] sm:$0xff]  ;;  %v5398_v60 = vld [vmem:[#allocation2 + $0x10a] sm:$0xff] }
 0x575   : > { %4757 = vst.msk [vmem:[#allocation2 + $0x159] sm:$0xff] %vm4729_vm15, %v4688_v27  ;;  %v4686_v21 = vpop.permute.xlu0 %4685  ;;  %5474 = vrot.lane.b32.xlu1 %v5389_v55, %s9325_s25  ;;  %v5112_v40 = vld [vmem:[#allocation2 + $0x128] sm:$0xff]  ;;  %v5111_v52 = vld [vmem:[#allocation2 + $0x120] sm:$0xff] }
 0x576   : > { %4756 = vst.msk [vmem:[#allocation2 + $0x151] sm:$0xff] %vm4729_vm15, %v4686_v21  ;;  %5472 = vrot.lane.b32.xlu0 %v5388_v33, %s9325_s25  ;;  %v5184_v27 = vld [vmem:[#allocation2 + $0x129] sm:$0xff]  ;;  %v5183_v55 = vld [vmem:[#allocation2 + $0x121] sm:$0xff] }
 0x577   : > { %5148 = vst.msk [vmem:[#allocation3 + $0xc8] sm:$0xff] %vm365_vm2, %v5112_v40  ;;  %5147 = vst.msk [vmem:[#allocation3 + $0xc0] sm:$0xff] %vm365_vm2, %v5111_v52  ;;  %v5401_v21 = vld [vmem:[#allocation2 + $0x12a] sm:$0xff]  ;;  %v5400_v33 = vld [vmem:[#allocation2 + $0x122] sm:$0xff] }
 0x578   : > { %v4692_v62 = vpop.permute.xlu1 %4691  ;;  %v5186_v40 = vld [vmem:[#allocation2 + $0x141] sm:$0xff] }
 0x579   : > { %4759 = vst.msk [vmem:[#allocation2 + $0x171] sm:$0xff] %vm4729_vm15, %v4692_v62  ;;  %v4690_v34 = vpop.permute.xlu0 %4689  ;;  %5261 = vrot.lane.b32.xlu1 %v5174_v23, %s9322_s17  ;;  %v5114_v0 = vld [vmem:[#allocation2 + $0x140] sm:$0xff]  ;;  %v5113_v61 = vld [vmem:[#allocation2 + $0x138] sm:$0xff] }
 0x57a   : > { %4758 = vst.msk [vmem:[#allocation2 + $0x169] sm:$0xff] %vm4729_vm15, %v4690_v34  ;;  %5259 = vrot.lane.b32.xlu0 %v5173_v35, %s9322_s17  ;;  %v5185_v52 = vld [vmem:[#allocation2 + $0x139] sm:$0xff]  ;;  %v5403_v62 = vld [vmem:[#allocation2 + $0x142] sm:$0xff] }
 0x57b   : > { %5150 = vst.msk [vmem:[#allocation3 + $0xd8] sm:$0xff] %vm365_vm2, %v5114_v0  ;;  %5149 = vst.msk [vmem:[#allocation3 + $0xd0] sm:$0xff] %vm365_vm2, %v5113_v61  ;;  %v5402_v23 = vld [vmem:[#allocation2 + $0x13a] sm:$0xff] }
 0x57c   : > { %v4696_v63 = vpop.permute.xlu1 %4695  ;;  %v5188_v34 = vld [vmem:[#allocation2 + $0x159] sm:$0xff] }
 0x57d   : > { %4761 = vst.msk [vmem:[#allocation2 + $0x189] sm:$0xff] %vm4729_vm15, %v4696_v63  ;;  %5478 = vrot.lane.b32.xlu1 %v5391_v56, %s9325_s25  ;;  %v4694_v36 = vpop.permute.xlu0 %4693  ;;  %v5116_v15 = vld [vmem:[#allocation2 + $0x158] sm:$0xff]  ;;  %v5115_v43 = vld [vmem:[#allocation2 + $0x150] sm:$0xff] }
 0x57e   : > { %4760 = vst.msk [vmem:[#allocation2 + $0x181] sm:$0xff] %vm4729_vm15, %v4694_v36  ;;  %5476 = vrot.lane.b32.xlu0 %v5390_v18, %s9325_s25  ;;  %v5187_v35 = vld [vmem:[#allocation2 + $0x151] sm:$0xff]  ;;  %v5405_v0 = vld [vmem:[#allocation2 + $0x15a] sm:$0xff] }
 0x57f   : > { %5152 = vst.msk [vmem:[#allocation3 + $0xe8] sm:$0xff] %vm365_vm2, %v5116_v15  ;;  %5151 = vst.msk [vmem:[#allocation3 + $0xe0] sm:$0xff] %vm365_vm2, %v5115_v43  ;;  %v5404_v61 = vld [vmem:[#allocation2 + $0x152] sm:$0xff] }
 0x580   : > { %v5190_v63 = vld [vmem:[#allocation2 + $0x171] sm:$0xff] }
 0x581   : > { %5265 = vrot.lane.b32.xlu1 %v5176_v20, %s9322_s17  ;;  %v5118_v14 = vld [vmem:[#allocation2 + $0x170] sm:$0xff]  ;;  %v5117_v17 = vld [vmem:[#allocation2 + $0x168] sm:$0xff] }
 0x582   : > { %5263 = vrot.lane.b32.xlu0 %v5175_v11, %s9322_s17  ;;  %5154 = vst.msk [vmem:[#allocation3 + $0xf8] sm:$0xff] %vm365_vm2, %v5118_v14  ;;  %5153 = vst.msk [vmem:[#allocation3 + $0xf0] sm:$0xff] %vm365_vm2, %v5117_v17  ;;  %v5189_v56 = vld [vmem:[#allocation2 + $0x169] sm:$0xff]  ;;  %v5407_v15 = vld [vmem:[#allocation2 + $0x172] sm:$0xff] }
 0x583   : > { %v5406_v43 = vld [vmem:[#allocation2 + $0x16a] sm:$0xff] }
 0x584   : > { %v5192_v14 = vld [vmem:[#allocation2 + $0x189] sm:$0xff] }
 0x585   : > { %5482 = vrot.lane.b32.xlu1 %v5393_v19, %s9325_s25  ;;  %v5120_v28 = vld [vmem:[#allocation2 + $0x188] sm:$0xff]  ;;  %v5119_v42 = vld [vmem:[#allocation2 + $0x180] sm:$0xff] }
 0x586   : > { %5480 = vrot.lane.b32.xlu0 %v5392_v13, %s9325_s25  ;;  %5156 = vst.msk [vmem:[#allocation3 + $0x108] sm:$0xff] %vm365_vm2, %v5120_v28  ;;  %5155 = vst.msk [vmem:[#allocation3 + $0x100] sm:$0xff] %vm365_vm2, %v5119_v42  ;;  %v5191_v17 = vld [vmem:[#allocation2 + $0x181] sm:$0xff]  ;;  %v5409_v16 = vld [vmem:[#allocation2 + $0x18a] sm:$0xff] }
 0x587   : > { %v5408_v39 = vld [vmem:[#allocation2 + $0x182] sm:$0xff]  ;;  %v5627_v28 = vld [vmem:[%s11723_s5 + $0x10] sm:$0xff]  ;;  %v5628_v42 = vld [vmem:[%s11723_s5 + $0x18] sm:$0xff] }
 0x589   : > { %5269 = vrot.lane.b32.xlu1 %v5178_v29, %s9322_s17  ;;  %v5377_v29 = vld [vmem:[#allocation2 + $0xa] sm:$0xff] }
 0x58a   : > { %5267 = vrot.lane.b32.xlu0 %v5177_v22, %s9322_s17 }
 0x58d   : > { %5486 = vrot.lane.b32.xlu1 %v5395_v24, %s9325_s25  ;;  %v5376_v24 = vld [vmem:[#allocation2 + $0x2] sm:$0xff] }
 0x58e   : > { %5484 = vrot.lane.b32.xlu0 %v5394_v38, %s9325_s25 }
 0x591   : > { %5273 = vrot.lane.b32.xlu1 %v5180_v41, %s9322_s17 }
 0x592   : > { %5271 = vrot.lane.b32.xlu0 %v5179_v30, %s9322_s17  ;;  %v8988_v30 = vpack.c.bf16 %v5628_v42, %v5627_v28 }
 0x595   : > { %5490 = vrot.lane.b32.xlu1 %v5397_v58, %s9325_s25 }
 0x596   : > { %5488 = vrot.lane.b32.xlu0 %v5396_v37, %s9325_s25  ;;  %v5629_v37 = vld [vmem:[%s11723_s5 + $0x20] sm:$0xff] }
 0x599   : > { %5277 = vrot.lane.b32.xlu1 %v5182_v32, %s9322_s17  ;;  %v5630_v32 = vld [vmem:[%s11723_s5 + $0x28] sm:$0xff] }
 0x59a   : > { %5275 = vrot.lane.b32.xlu0 %v5181_v53, %s9322_s17  ;;  %v5194_v53 = vld [vmem:[#allocation2 + $0x1a1] sm:$0xff] }
 0x59d   : > { %5494 = vrot.lane.b32.xlu1 %v5399_v51, %s9325_s25 }
 0x59e   : > { %5492 = vrot.lane.b32.xlu0 %v5398_v60, %s9325_s25  ;;  %v5193_v60 = vld [vmem:[#allocation2 + $0x199] sm:$0xff] }
 0x5a1   : > { %5281 = vrot.lane.b32.xlu1 %v5184_v27, %s9322_s17 }
 0x5a2   : > { %5279 = vrot.lane.b32.xlu0 %v5183_v55, %s9322_s17  ;;  %v8992_v55 = vpack.c.bf16 %v5630_v32, %v5629_v37 }
 0x5a5   : > { %5498 = vrot.lane.b32.xlu1 %v5401_v21, %s9325_s25  ;;  %v7681_v21 = vld [vmem:[%s11723_s5 + $0x60] sm:$0xff] }
 0x5a6   : > { %5496 = vrot.lane.b32.xlu0 %v5400_v33, %s9325_s25  ;;  %v7682_v33 = vld [vmem:[%s11723_s5 + $0x68] sm:$0xff] }
 0x5a9   : > { %5285 = vrot.lane.b32.xlu1 %v5186_v40, %s9322_s17 }
 0x5aa   : > { %5283 = vrot.lane.b32.xlu0 %v5185_v52, %s9322_s17  ;;  %v5410_v52 = vld [vmem:[#allocation2 + $0x19a] sm:$0xff] }
 0x5ad   : > { %5502 = vrot.lane.b32.xlu1 %v5403_v62, %s9325_s25 }
 0x5ae   : > { %5500 = vrot.lane.b32.xlu0 %v5402_v23, %s9325_s25 }
 0x5b1   : > { %5289 = vrot.lane.b32.xlu1 %v5188_v34, %s9322_s17  ;;  %v11166_v34 = vpack.c.bf16 %v7682_v33, %v7681_v21 }
 0x5b2   : > { %5287 = vrot.lane.b32.xlu0 %v5187_v35, %s9322_s17 }
 0x5b5   : > { %5506 = vrot.lane.b32.xlu1 %v5405_v0, %s9325_s25 }
 0x5b6   : > { %5504 = vrot.lane.b32.xlu0 %v5404_v61, %s9325_s25 }
 0x5b9   : > { %5293 = vrot.lane.b32.xlu1 %v5190_v63, %s9322_s17 }
 0x5ba   : > { %5291 = vrot.lane.b32.xlu0 %v5189_v56, %s9322_s17 }
 0x5bb   : > { %v5238_v36 = vpop.permute.xlu1 %5237 }
 0x5bc   : > { %5343 = vst.msk [vmem:[#allocation3 + $0x18] sm:$0xff] %vm5339_vm14, %v5238_v36  ;;  %v5236_v18 = vpop.permute.xlu0 %5235 }
 0x5bd   : > { %5342 = vst.msk [vmem:[#allocation3 + $0x10] sm:$0xff] %vm5339_vm14, %v5236_v18  ;;  %5510 = vrot.lane.b32.xlu1 %v5407_v15, %s9325_s25 }
 0x5be   : > { %5508 = vrot.lane.b32.xlu0 %v5406_v43, %s9325_s25 }
 0x5bf   : > { %v5455_v20 = vpop.permute.xlu1 %5454 }
 0x5c0   : > { %5560 = vst.msk [vmem:[#allocation3 + $0x18] sm:$0xff] %vm5556_vm0, %v5455_v20  ;;  %v5453_v11 = vpop.permute.xlu0 %5452 }
 0x5c1   : > { %5559 = vst.msk [vmem:[#allocation3 + $0x10] sm:$0xff] %vm5556_vm0, %v5453_v11  ;;  %5297 = vrot.lane.b32.xlu1 %v5192_v14, %s9322_s17 }
 0x5c2   : > { %5295 = vrot.lane.b32.xlu0 %v5191_v17, %s9322_s17 }
 0x5c3   : > { %v5242_v19 = vpop.permute.xlu1 %5241 }
 0x5c4   : > { %5345 = vst.msk [vmem:[#allocation3 + $0x28] sm:$0xff] %vm5339_vm14, %v5242_v19  ;;  %v5240_v13 = vpop.permute.xlu0 %5239 }
 0x5c5   : > { %5344 = vst.msk [vmem:[#allocation3 + $0x20] sm:$0xff] %vm5339_vm14, %v5240_v13  ;;  %5514 = vrot.lane.b32.xlu1 %v5409_v16, %s9325_s25 }
 0x5c6   : > { %5512 = vrot.lane.b32.xlu0 %v5408_v39, %s9325_s25 }
 0x5c7   : > { %v5459_v22 = vpop.permute.xlu1 %5458  ;;  %v11140_v58 = vld [vmem:[#allocation3 + $0x18] sm:$0xff] }
 0x5c8   : > { %5562 = vst.msk [vmem:[#allocation3 + $0x28] sm:$0xff] %vm5556_vm0, %v5459_v22  ;;  %v5457_v38 = vpop.permute.xlu0 %5456  ;;  %v11135_v41 = vld [vmem:[#allocation3 + $0x10] sm:$0xff] }
 0x5c9   : > { %5561 = vst.msk [vmem:[#allocation3 + $0x20] sm:$0xff] %vm5556_vm0, %v5457_v38  ;;  %8718 = vmatprep.mubr.msk.f32.mxu0 %vm5670_vm3, %v11135_v41  ;;  %5450 = vrot.lane.b32.xlu1 %v5377_v29, %s9325_s25 }
 0x5ca   : > { %5448 = vrot.lane.b32.xlu0 %v5376_v24, %s9325_s25  ;;  %8719 = vmatmul.mubr.msk.f32.vlgmr.msra.gmra.mrb[46].mxu0 %vm5670_vm3, %v11140_v58 }
 0x5cb   : > { %v5246_v51 = vpop.permute.xlu1 %5245  ;;  %8987 = vmatpush3.bf16.msra.mxu0 %v11085_v59  ;;  %v5411_v59 = vld [vmem:[#allocation2 + $0x1a2] sm:$0xff] }
 0x5cc   : > { %5347 = vst.msk [vmem:[#allocation3 + $0x38] sm:$0xff] %vm5339_vm14, %v5246_v51  ;;  %v5244_v27 = vpop.permute.xlu0 %5243  ;;  %8989 = vmatprep.subr.bf16.mxu0 %v8988_v30 }
 0x5cd   : > { %5346 = vst.msk [vmem:[#allocation3 + $0x30] sm:$0xff] %vm5339_vm14, %v5244_v27  ;;  %5301 = vrot.lane.b32.xlu1 %v5194_v53, %s9322_s17 }
 0x5ce   : > { %5299 = vrot.lane.b32.xlu0 %v5193_v60, %s9322_s17 }
 0x5cf   : > { %v5463_v40 = vpop.permute.xlu1 %5462  ;;  %8991 = vmatpush3.bf16.msra.mxu0 %v8988_v30  ;;  %v11171_v35 = vld [vmem:[#allocation3 + $0x28] sm:$0xff] }
 0x5d0   : > { %5564 = vst.msk [vmem:[#allocation3 + $0x38] sm:$0xff] %vm5556_vm0, %v5463_v40  ;;  %v5461_v62 = vpop.permute.xlu0 %5460  ;;  %v11164_v23 = vld [vmem:[#allocation3 + $0x20] sm:$0xff]  ;;  %8993 = vmatprep.subr.bf16.mxu0 %v8992_v55 }
 0x5d1   : > { %5563 = vst.msk [vmem:[#allocation3 + $0x30] sm:$0xff] %vm5556_vm0, %v5461_v62  ;;  %8721 = vmatprep.mubr.msk.f32.mxu0 %vm5670_vm3, %v11164_v23  ;;  %5518 = vrot.lane.b32.xlu1 %v5411_v59, %s9325_s25 }
 0x5d2   : > { %8722 = vmatmul.mubr.msk.f32.gmra.mrb[48].mxu0 %vm5670_vm3, %v11171_v35  ;;  %5516 = vrot.lane.b32.xlu0 %v5410_v52, %s9325_s25 }
 0x5d3   : > { %v5250_v0 = vpop.permute.xlu1 %5249  ;;  %8995 = vmatpush3.bf16.msra.mxu0 %v8992_v55 }
 0x5d4   : > { %5349 = vst.msk [vmem:[#allocation3 + $0x48] sm:$0xff] %vm5339_vm14, %v5250_v0  ;;  %v5248_v61 = vpop.permute.xlu0 %5247  ;;  %8997 = vmatprep.subr.bf16.mxu0 %v11166_v34 }
 0x5d5   : > { %5348 = vst.msk [vmem:[#allocation3 + $0x40] sm:$0xff] %vm5339_vm14, %v5248_v61 }
 0x5d7   : > { %v5467_v63 = vpop.permute.xlu1 %5466  ;;  %v11186_v18 = vld [vmem:[#allocation3 + $0x38] sm:$0xff] }
 0x5d8   : > { %5566 = vst.msk [vmem:[#allocation3 + $0x48] sm:$0xff] %vm5556_vm0, %v5467_v63  ;;  %v5465_v56 = vpop.permute.xlu0 %5464  ;;  %v11181_v36 = vld [vmem:[#allocation3 + $0x30] sm:$0xff] }
 0x5d9   : > { %5565 = vst.msk [vmem:[#allocation3 + $0x40] sm:$0xff] %vm5556_vm0, %v5465_v56  ;;  %8724 = vmatprep.mubr.msk.f32.mxu0 %vm5670_vm3, %v11181_v36 }
 0x5da   : > { %8725 = vmatmul.mubr.msk.f32.gmra.mrb[50].mxu0 %vm5670_vm3, %v11186_v18 }
 0x5db   : > { %v5254_v15 = vpop.permute.xlu1 %5253 }
 0x5dc   : > { %5351 = vst.msk [vmem:[#allocation3 + $0x58] sm:$0xff] %vm5339_vm14, %v5254_v15  ;;  %v5252_v43 = vpop.permute.xlu0 %5251 }
 0x5dd   : > { %5350 = vst.msk [vmem:[#allocation3 + $0x50] sm:$0xff] %vm5339_vm14, %v5252_v43 }
 0x5df   : > { %v5471_v20 = vpop.permute.xlu1 %5470  ;;  %v11198_v17 = vld [vmem:[#allocation3 + $0x48] sm:$0xff] }
 0x5e0   : > { %5568 = vst.msk [vmem:[#allocation3 + $0x58] sm:$0xff] %vm5556_vm0, %v5471_v20  ;;  %v5469_v11 = vpop.permute.xlu0 %5468  ;;  %v11193_v14 = vld [vmem:[#allocation3 + $0x40] sm:$0xff] }
 0x5e1   : > { %5567 = vst.msk [vmem:[#allocation3 + $0x50] sm:$0xff] %vm5556_vm0, %v5469_v11  ;;  %8727 = vmatprep.mubr.msk.f32.mxu0 %vm5670_vm3, %v11193_v14 }
 0x5e2   : > { %8728 = vmatmul.mubr.msk.f32.gmra.mrb[52].mxu0 %vm5670_vm3, %v11198_v17 }
 0x5e3   : > { %v5258_v19 = vpop.permute.xlu1 %5257 }
 0x5e4   : > { %5353 = vst.msk [vmem:[#allocation3 + $0x68] sm:$0xff] %vm5339_vm14, %v5258_v19  ;;  %v5256_v13 = vpop.permute.xlu0 %5255 }
 0x5e5   : > { %5352 = vst.msk [vmem:[#allocation3 + $0x60] sm:$0xff] %vm5339_vm14, %v5256_v13 }
 0x5e7   : > { %v5475_v16 = vpop.permute.xlu1 %5474  ;;  %v11210_v42 = vld [vmem:[#allocation3 + $0x58] sm:$0xff] }
 0x5e8   : > { %5570 = vst.msk [vmem:[#allocation3 + $0x68] sm:$0xff] %vm5556_vm0, %v5475_v16  ;;  %v5473_v39 = vpop.permute.xlu0 %5472  ;;  %v11205_v28 = vld [vmem:[#allocation3 + $0x50] sm:$0xff] }
 0x5e9   : > { %5569 = vst.msk [vmem:[#allocation3 + $0x60] sm:$0xff] %vm5556_vm0, %v5473_v39  ;;  %8730 = vmatprep.mubr.msk.f32.mxu0 %vm5670_vm3, %v11205_v28 }
 0x5ea   : > { %8731 = vmatmul.mubr.msk.f32.gmra.mrb[54].mxu0 %vm5670_vm3, %v11210_v42 }
 0x5eb   : > { %v5262_v29 = vpop.permute.xlu1 %5261 }
 0x5ec   : > { %5355 = vst.msk [vmem:[#allocation3 + $0x78] sm:$0xff] %vm5339_vm14, %v5262_v29  ;;  %v5260_v22 = vpop.permute.xlu0 %5259 }
 0x5ed   : > { %5354 = vst.msk [vmem:[#allocation3 + $0x70] sm:$0xff] %vm5339_vm14, %v5260_v22 }
 0x5ef   : > { %v5479_v24 = vpop.permute.xlu1 %5478  ;;  %v11222_v37 = vld [vmem:[#allocation3 + $0x68] sm:$0xff] }
 0x5f0   : > { %5572 = vst.msk [vmem:[#allocation3 + $0x78] sm:$0xff] %vm5556_vm0, %v5479_v24  ;;  %v5477_v38 = vpop.permute.xlu0 %5476  ;;  %v11217_v30 = vld [vmem:[#allocation3 + $0x60] sm:$0xff] }
 0x5f1   : > { %5571 = vst.msk [vmem:[#allocation3 + $0x70] sm:$0xff] %vm5556_vm0, %v5477_v38  ;;  %8733 = vmatprep.mubr.msk.f32.mxu0 %vm5670_vm3, %v11217_v30 }
 0x5f2   : > { %8734 = vmatmul.mubr.msk.f32.gmra.mrb[56].mxu0 %vm5670_vm3, %v11222_v37 }
 0x5f3   : > { %v5266_v32 = vpop.permute.xlu1 %5265 }
 0x5f4   : > { %5357 = vst.msk [vmem:[#allocation3 + $0x88] sm:$0xff] %vm5339_vm14, %v5266_v32  ;;  %v5264_v53 = vpop.permute.xlu0 %5263 }
 0x5f5   : > { %5356 = vst.msk [vmem:[#allocation3 + $0x80] sm:$0xff] %vm5339_vm14, %v5264_v53 }
 0x5f7   : > { %v5483_v51 = vpop.permute.xlu1 %5482  ;;  %v11234_v55 = vld [vmem:[#allocation3 + $0x78] sm:$0xff] }
 0x5f8   : > { %5574 = vst.msk [vmem:[#allocation3 + $0x88] sm:$0xff] %vm5556_vm0, %v5483_v51  ;;  %v5481_v60 = vpop.permute.xlu0 %5480  ;;  %v11229_v27 = vld [vmem:[#allocation3 + $0x70] sm:$0xff] }
 0x5f9   : > { %5573 = vst.msk [vmem:[#allocation3 + $0x80] sm:$0xff] %vm5556_vm0, %v5481_v60  ;;  %8736 = vmatprep.mubr.msk.f32.mxu0 %vm5670_vm3, %v11229_v27 }
 0x5fa   : > { %8737 = vmatmul.mubr.msk.f32.gmra.mrb[58].mxu0 %vm5670_vm3, %v11234_v55 }
 0x5fb   : > { %v5270_v21 = vpop.permute.xlu1 %5269 }
 0x5fc   : > { %5359 = vst.msk [vmem:[#allocation3 + $0x98] sm:$0xff] %vm5339_vm14, %v5270_v21  ;;  %v5268_v33 = vpop.permute.xlu0 %5267 }
 0x5fd   : > { %5358 = vst.msk [vmem:[#allocation3 + $0x90] sm:$0xff] %vm5339_vm14, %v5268_v33 }
 0x5ff   : > { %v5487_v59 = vpop.permute.xlu1 %5486  ;;  %v11246_v62 = vld [vmem:[#allocation3 + $0x88] sm:$0xff] }
 0x600   : > { %5576 = vst.msk [vmem:[#allocation3 + $0x98] sm:$0xff] %vm5556_vm0, %v5487_v59  ;;  %v5485_v40 = vpop.permute.xlu0 %5484  ;;  %v11241_v52 = vld [vmem:[#allocation3 + $0x80] sm:$0xff] }
 0x601   : > { %5575 = vst.msk [vmem:[#allocation3 + $0x90] sm:$0xff] %vm5556_vm0, %v5485_v40  ;;  %8739 = vmatprep.mubr.msk.f32.mxu0 %vm5670_vm3, %v11241_v52 }
 0x602   : > { %8740 = vmatmul.mubr.msk.f32.gmra.mrb[60].mxu0 %vm5670_vm3, %v11246_v62 }
 0x603   : > { %v5274_v0 = vpop.permute.xlu1 %5273 }
 0x604   : > { %5361 = vst.msk [vmem:[#allocation3 + $0xa8] sm:$0xff] %vm5339_vm14, %v5274_v0  ;;  %v5272_v61 = vpop.permute.xlu0 %5271 }
 0x605   : > { %5360 = vst.msk [vmem:[#allocation3 + $0xa0] sm:$0xff] %vm5339_vm14, %v5272_v61 }
 0x607   : > { %v5491_v63 = vpop.permute.xlu1 %5490  ;;  %v11258_v43 = vld [vmem:[#allocation3 + $0x98] sm:$0xff] }
 0x608   : > { %5578 = vst.msk [vmem:[#allocation3 + $0xa8] sm:$0xff] %vm5556_vm0, %v5491_v63  ;;  %v5489_v56 = vpop.permute.xlu0 %5488  ;;  %v11253_v15 = vld [vmem:[#allocation3 + $0x90] sm:$0xff] }
 0x609   : > { %5577 = vst.msk [vmem:[#allocation3 + $0xa0] sm:$0xff] %vm5556_vm0, %v5489_v56  ;;  %8742 = vmatprep.mubr.msk.f32.mxu0 %vm5670_vm3, %v11253_v15 }
 0x60a   : > { %8743 = vmatmul.mubr.msk.f32.gmra.mrb[62].mxu0 %vm5670_vm3, %v11258_v43 }
 0x60b   : > { %v5278_v20 = vpop.permute.xlu1 %5277 }
 0x60c   : > { %5363 = vst.msk [vmem:[#allocation3 + $0xb8] sm:$0xff] %vm5339_vm14, %v5278_v20  ;;  %v5276_v11 = vpop.permute.xlu0 %5275 }
 0x60d   : > { %5362 = vst.msk [vmem:[#allocation3 + $0xb0] sm:$0xff] %vm5339_vm14, %v5276_v11 }
 0x60f   : > { %v5495_v19 = vpop.permute.xlu1 %5494  ;;  %v11270_v39 = vld [vmem:[#allocation3 + $0xa8] sm:$0xff] }
 0x610   : > { %5580 = vst.msk [vmem:[#allocation3 + $0xb8] sm:$0xff] %vm5556_vm0, %v5495_v19  ;;  %v5493_v13 = vpop.permute.xlu0 %5492  ;;  %v11265_v16 = vld [vmem:[#allocation3 + $0xa0] sm:$0xff] }
 0x611   : > { %5579 = vst.msk [vmem:[#allocation3 + $0xb0] sm:$0xff] %vm5556_vm0, %v5493_v13  ;;  %8745 = vmatprep.mubr.msk.f32.mxu0 %vm5670_vm3, %v11265_v16 }
 0x612   : > { %8746 = vmatmul.mubr.msk.f32.gmra.mrb[64].mxu0 %vm5670_vm3, %v11270_v39 }
 0x613   : > { %v5282_v29 = vpop.permute.xlu1 %5281 }
 0x614   : > { %5365 = vst.msk [vmem:[#allocation3 + $0xc8] sm:$0xff] %vm5339_vm14, %v5282_v29  ;;  %v5280_v22 = vpop.permute.xlu0 %5279 }
 0x615   : > { %5364 = vst.msk [vmem:[#allocation3 + $0xc0] sm:$0xff] %vm5339_vm14, %v5280_v22 }
 0x617   : > { %v5499_v24 = vpop.permute.xlu1 %5498  ;;  %v11282_v53 = vld [vmem:[#allocation3 + $0xb8] sm:$0xff] }
 0x618   : > { %5582 = vst.msk [vmem:[#allocation3 + $0xc8] sm:$0xff] %vm5556_vm0, %v5499_v24  ;;  %v5497_v38 = vpop.permute.xlu0 %5496  ;;  %v11277_v32 = vld [vmem:[#allocation3 + $0xb0] sm:$0xff] }
 0x619   : > { %5581 = vst.msk [vmem:[#allocation3 + $0xc0] sm:$0xff] %vm5556_vm0, %v5497_v38  ;;  %8748 = vmatprep.mubr.msk.f32.mxu0 %vm5670_vm3, %v11277_v32 }
 0x61a   : > { %8749 = vmatmul.mubr.msk.f32.gmra.mrb[66].mxu0 %vm5670_vm3, %v11282_v53 }
 0x61b   : > { %v5286_v51 = vpop.permute.xlu1 %5285 }
 0x61c   : > { %5367 = vst.msk [vmem:[#allocation3 + $0xd8] sm:$0xff] %vm5339_vm14, %v5286_v51  ;;  %v5284_v60 = vpop.permute.xlu0 %5283 }
 0x61d   : > { %5366 = vst.msk [vmem:[#allocation3 + $0xd0] sm:$0xff] %vm5339_vm14, %v5284_v60  ;;  %v5121_v60 = vld [vmem:[#allocation2 + $0x198] sm:$0xff] }
 0x61e   : > { %5157 = vst.msk [vmem:[#allocation3 + $0x110] sm:$0xff] %vm365_vm2, %v5121_v60 }
 0x61f   : > { %v5503_v21 = vpop.permute.xlu1 %5502  ;;  %v11294_v40 = vld [vmem:[#allocation3 + $0xc8] sm:$0xff] }
 0x620   : > { %5584 = vst.msk [vmem:[#allocation3 + $0xd8] sm:$0xff] %vm5556_vm0, %v5503_v21  ;;  %v5501_v33 = vpop.permute.xlu0 %5500  ;;  %v11289_v59 = vld [vmem:[#allocation3 + $0xc0] sm:$0xff]  ;;  %v5122_v21 = vld [vmem:[#allocation2 + $0x1a0] sm:$0xff] }
 0x621   : > { %5583 = vst.msk [vmem:[#allocation3 + $0xd0] sm:$0xff] %vm5556_vm0, %v5501_v33  ;;  %8751 = vmatprep.mubr.msk.f32.mxu0 %vm5670_vm3, %v11289_v59 }
 0x622   : > { %8752 = vmatmul.mubr.msk.f32.gmra.mrb[68].mxu0 %vm5670_vm3, %v11294_v40  ;;  %5158 = vst.msk [vmem:[#allocation3 + $0x118] sm:$0xff] %vm365_vm2, %v5122_v21  ;;  %v7683_v21 = vld [vmem:[%s11723_s5 + $0x70] sm:$0xff] }
 0x623   : > { %v5290_v0 = vpop.permute.xlu1 %5289 }
 0x624   : > { %5369 = vst.msk [vmem:[#allocation3 + $0xe8] sm:$0xff] %vm5339_vm14, %v5290_v0  ;;  %v5288_v61 = vpop.permute.xlu0 %5287 }
 0x625   : > { %5368 = vst.msk [vmem:[#allocation3 + $0xe0] sm:$0xff] %vm5339_vm14, %v5288_v61 }
 0x627   : > { %v5507_v63 = vpop.permute.xlu1 %5506  ;;  %v11306_v11 = vld [vmem:[#allocation3 + $0xd8] sm:$0xff] }
 0x628   : > { %5586 = vst.msk [vmem:[#allocation3 + $0xe8] sm:$0xff] %vm5556_vm0, %v5507_v63  ;;  %v5505_v56 = vpop.permute.xlu0 %5504  ;;  %v11301_v20 = vld [vmem:[#allocation3 + $0xd0] sm:$0xff] }
 0x629   : > { %5585 = vst.msk [vmem:[#allocation3 + $0xe0] sm:$0xff] %vm5556_vm0, %v5505_v56  ;;  %8754 = vmatprep.mubr.msk.f32.mxu0 %vm5670_vm3, %v11301_v20 }
 0x62a   : > { %8755 = vmatmul.mubr.msk.f32.gmra.mrb[70].mxu0 %vm5670_vm3, %v11306_v11 }
 0x62b   : > { %v5294_v19 = vpop.permute.xlu1 %5293 }
 0x62c   : > { %5371 = vst.msk [vmem:[#allocation3 + $0xf8] sm:$0xff] %vm5339_vm14, %v5294_v19  ;;  %v5292_v13 = vpop.permute.xlu0 %5291 }
 0x62d   : > { %5370 = vst.msk [vmem:[#allocation3 + $0xf0] sm:$0xff] %vm5339_vm14, %v5292_v13 }
 0x62f   : > { %v5511_v29 = vpop.permute.xlu1 %5510  ;;  %v11318_v38 = vld [vmem:[#allocation3 + $0xe8] sm:$0xff] }
 0x630   : > { %5588 = vst.msk [vmem:[#allocation3 + $0xf8] sm:$0xff] %vm5556_vm0, %v5511_v29  ;;  %v5509_v22 = vpop.permute.xlu0 %5508  ;;  %v11313_v24 = vld [vmem:[#allocation3 + $0xe0] sm:$0xff] }
 0x631   : > { %5587 = vst.msk [vmem:[#allocation3 + $0xf0] sm:$0xff] %vm5556_vm0, %v5509_v22  ;;  %8757 = vmatprep.mubr.msk.f32.mxu0 %vm5670_vm3, %v11313_v24 }
 0x632   : > { %8758 = vmatmul.mubr.msk.f32.gmra.mrb[72].mxu0 %vm5670_vm3, %v11318_v38 }
 0x633   : > { %v5298_v51 = vpop.permute.xlu1 %5297 }
 0x634   : > { %5373 = vst.msk [vmem:[#allocation3 + $0x108] sm:$0xff] %vm5339_vm14, %v5298_v51  ;;  %v5296_v33 = vpop.permute.xlu0 %5295 }
 0x635   : > { %5372 = vst.msk [vmem:[#allocation3 + $0x100] sm:$0xff] %vm5339_vm14, %v5296_v33  ;;  %v7684_v33 = vld [vmem:[%s11723_s5 + $0x78] sm:$0xff] }
 0x637   : > { %v5515_v0 = vpop.permute.xlu1 %5514  ;;  %v11332_v56 = vld [vmem:[#allocation3 + $0xf8] sm:$0xff] }
 0x638   : > { %5590 = vst.msk [vmem:[#allocation3 + $0x108] sm:$0xff] %vm5556_vm0, %v5515_v0  ;;  %v5513_v61 = vpop.permute.xlu0 %5512  ;;  %v11327_v63 = vld [vmem:[#allocation3 + $0xf0] sm:$0xff]  ;;  %v6776_v0 = vld [vmem:[%s11725_s7 + $0x10] sm:$0xf] }
 0x639   : > { %5589 = vst.msk [vmem:[#allocation3 + $0x100] sm:$0xff] %vm5556_vm0, %v5513_v61  ;;  %8760 = vmatprep.mubr.msk.f32.mxu0 %vm5670_vm3, %v11327_v63  ;;  %8886 = vmatprep.subr.msk.mxu1 %vm2355_vm7, %v6776_v0 }
 0x63a   : > { %8761 = vmatmul.mubr.msk.f32.gmra.mrb[74].mxu0 %vm5670_vm3, %v11332_v56  ;;  %8887 = vmatpush3.msk.msra.mxu1 %vm2355_vm7, %v6776_v0 }
 0x63b   : > { %v5451_v19 = vpop.permute.xlu1 %5450 }
 0x63c   : > { %v5449_v13 = vpop.permute.xlu0 %5448  ;;  %5558 = vst.msk [vmem:[#allocation3 + $0x8] sm:$0xff] %vm5556_vm0, %v5451_v19 }
 0x63d   : > { %5557 = vst.msk [vmem:[#allocation3] sm:$0xff] %vm5556_vm0, %v5449_v13 }
 0x63f   : > { %v5302_v29 = vpop.permute.xlu1 %5301  ;;  %v11343_v60 = vld [vmem:[#allocation3 + $0x108] sm:$0xff] }
 0x640   : > { %v11338_v22 = vld [vmem:[#allocation3 + $0x100] sm:$0xff]  ;;  %v5300_v51 = vpop.permute.xlu0 %5299  ;;  %5375 = vst.msk [vmem:[#allocation3 + $0x118] sm:$0xff] %vm5339_vm14, %v5302_v29  ;;  %v9000_v29 = vpack.c.bf16 %v7684_v33, %v7683_v21 }
 0x641   : > { %8763 = vmatprep.mubr.msk.f32.mxu0 %vm5670_vm3, %v11338_v22  ;;  %5374 = vst.msk [vmem:[#allocation3 + $0x110] sm:$0xff] %vm5339_vm14, %v5300_v51  ;;  %v7685_v51 = vld [vmem:[%s11723_s5 + $0x80] sm:$0xff] }
 0x642   : > { %8764 = vmatmul.mubr.msk.f32.gmra.mrb[76].mxu0 %vm5670_vm3, %v11343_v60  ;;  %v9004_v21 = vpack.c.bf16 %v7686_v57, %v7685_v51 }
 0x643   : > { %v5594_v61 = vld [vmem:[#allocation3 + $0x8] sm:$0xff]  ;;  %v5519_v19 = vpop.permute.xlu1 %5518 }
 0x644   : > { %v5593_v13 = vld [vmem:[#allocation3] sm:$0xff]  ;;  %v5517_v12 = vpop.permute.xlu0 %5516  ;;  %5592 = vst.msk [vmem:[#allocation3 + $0x118] sm:$0xff] %vm5556_vm0, %v5519_v19 }
 0x645   : > { %8778 = vmatprep.mubr.msk.f32.mxu0 %vm5670_vm3, %v5593_v13  ;;  %5591 = vst.msk [vmem:[#allocation3 + $0x110] sm:$0xff] %vm5556_vm0, %v5517_v12 }
 0x646   : > { %8779 = vmatmul.mubr.msk.f32.vlgmr.msra.gmra.mrb[46].mxu0 %vm5670_vm3, %v5594_v61 }
 0x647   : > { %8999 = vmatpush3.bf16.msra.mxu0 %v11166_v34  ;;  %8781 = vmatprep.mubr.msk.f32.mxu0 %vm5670_vm3, %v11135_v41  ;;  %v11495_v41 = vld [vmem:[%s11724_s6] ss:$0 sm:$0xff] }
 0x648   : > { %9001 = vmatprep.subr.bf16.mxu0 %v9000_v29 }
 0x64a   : > { %8782 = vmatmul.mubr.msk.f32.gmra.mrb[48].mxu0 %vm5670_vm3, %v11140_v58 }
 0x64b   : > { %8784 = vmatprep.mubr.msk.f32.mxu0 %vm5670_vm3, %v11164_v23  ;;  %9003 = vmatpush3.bf16.msra.mxu0 %v9000_v29  ;;  %v6344_v57 = vld [vmem:[#allocation3 + $0x118] sm:$0xff] }
 0x64c   : > { %9005 = vmatprep.subr.bf16.mxu0 %v9004_v21  ;;  %v6343_v12 = vld [vmem:[#allocation3 + $0x110] sm:$0xff] }
 0x64e   : > { %8785 = vmatmul.mubr.msk.f32.gmra.mrb[50].mxu0 %vm5670_vm3, %v11171_v35 }
 0x64f   : > { %8787 = vmatprep.mubr.msk.f32.mxu0 %vm5670_vm3, %v11181_v36  ;;  %9007 = vmatpush3.bf16.msra.mxu0 %v9004_v21 }
 0x652   : > { %8788 = vmatmul.mubr.msk.f32.gmra.mrb[52].mxu0 %vm5670_vm3, %v11186_v18 }
 0x653   : > { %8790 = vmatprep.mubr.msk.f32.mxu0 %vm5670_vm3, %v11193_v14 }
 0x656   : > { %8791 = vmatmul.mubr.msk.f32.gmra.mrb[54].mxu0 %vm5670_vm3, %v11198_v17 }
 0x657   : > { %8793 = vmatprep.mubr.msk.f32.mxu0 %vm5670_vm3, %v11205_v28 }
 0x65a   : > { %8794 = vmatmul.mubr.msk.f32.gmra.mrb[56].mxu0 %vm5670_vm3, %v11210_v42 }
 0x65b   : > { %8796 = vmatprep.mubr.msk.f32.mxu0 %vm5670_vm3, %v11217_v30 }
 0x65e   : > { %8797 = vmatmul.mubr.msk.f32.gmra.mrb[58].mxu0 %vm5670_vm3, %v11222_v37 }
 0x65f   : > { %8799 = vmatprep.mubr.msk.f32.mxu0 %vm5670_vm3, %v11229_v27 }
 0x662   : > { %8800 = vmatmul.mubr.msk.f32.gmra.mrb[60].mxu0 %vm5670_vm3, %v11234_v55 }
 0x663   : > { %8802 = vmatprep.mubr.msk.f32.mxu0 %vm5670_vm3, %v11241_v52 }
 0x666   : > { %8803 = vmatmul.mubr.msk.f32.gmra.mrb[62].mxu0 %vm5670_vm3, %v11246_v62 }
 0x667   : > { %8805 = vmatprep.mubr.msk.f32.mxu0 %vm5670_vm3, %v11253_v15 }
 0x66a   : > { %8806 = vmatmul.mubr.msk.f32.gmra.mrb[64].mxu0 %vm5670_vm3, %v11258_v43 }
 0x66b   : > { %8808 = vmatprep.mubr.msk.f32.mxu0 %vm5670_vm3, %v11265_v16 }
 0x66e   : > { %8809 = vmatmul.mubr.msk.f32.gmra.mrb[66].mxu0 %vm5670_vm3, %v11270_v39 }
 0x66f   : > { %8811 = vmatprep.mubr.msk.f32.mxu0 %vm5670_vm3, %v11277_v32 }
 0x672   : > { %8812 = vmatmul.mubr.msk.f32.gmra.mrb[68].mxu0 %vm5670_vm3, %v11282_v53 }
 0x673   : > { %8814 = vmatprep.mubr.msk.f32.mxu0 %vm5670_vm3, %v11289_v59 }
 0x676   : > { %8815 = vmatmul.mubr.msk.f32.gmra.mrb[70].mxu0 %vm5670_vm3, %v11294_v40 }
 0x677   : > { %8817 = vmatprep.mubr.msk.f32.mxu0 %vm5670_vm3, %v11301_v20 }
 0x67a   : > { %8818 = vmatmul.mubr.msk.f32.gmra.mrb[72].mxu0 %vm5670_vm3, %v11306_v11 }
 0x67b   : > { %8820 = vmatprep.mubr.msk.f32.mxu0 %vm5670_vm3, %v11313_v24 }
 0x67e   : > { %8821 = vmatmul.mubr.msk.f32.gmra.mrb[74].mxu0 %vm5670_vm3, %v11318_v38 }
 0x67f   : > { %8823 = vmatprep.mubr.msk.f32.mxu0 %vm5670_vm3, %v11327_v63 }
 0x682   : > { %8824 = vmatmul.mubr.msk.f32.gmra.mrb[76].mxu0 %vm5670_vm3, %v11332_v56 }
 0x683   : > { %8838 = vmatprep.mubr.msk.f32.mxu0 %vm5670_vm3, %v11164_v23 }
 0x686   : > { %8839 = vmatmul.mubr.msk.f32.vlgmr.msra.gmra.mrb[46].mxu0 %vm5670_vm3, %v11171_v35 }
 0x687   : > { %8841 = vmatprep.mubr.msk.f32.mxu0 %vm5670_vm3, %v11181_v36 }
 0x68a   : > { %8842 = vmatmul.mubr.msk.f32.gmra.mrb[48].mxu0 %vm5670_vm3, %v11186_v18 }
 0x68b   : > { %8844 = vmatprep.mubr.msk.f32.mxu0 %vm5670_vm3, %v11193_v14 }
 0x68e   : > { %8845 = vmatmul.mubr.msk.f32.gmra.mrb[50].mxu0 %vm5670_vm3, %v11198_v17 }
 0x68f   : > { %8847 = vmatprep.mubr.msk.f32.mxu0 %vm5670_vm3, %v11205_v28 }
 0x692   : > { %8848 = vmatmul.mubr.msk.f32.gmra.mrb[52].mxu0 %vm5670_vm3, %v11210_v42 }
 0x693   : > { %8850 = vmatprep.mubr.msk.f32.mxu0 %vm5670_vm3, %v11217_v30 }
 0x696   : > { %8851 = vmatmul.mubr.msk.f32.gmra.mrb[54].mxu0 %vm5670_vm3, %v11222_v37 }
 0x697   : > { %8853 = vmatprep.mubr.msk.f32.mxu0 %vm5670_vm3, %v11229_v27 }
 0x69a   : > { %8854 = vmatmul.mubr.msk.f32.gmra.mrb[56].mxu0 %vm5670_vm3, %v11234_v55 }
 0x69b   : > { %8856 = vmatprep.mubr.msk.f32.mxu0 %vm5670_vm3, %v11241_v52 }
 0x69e   : > { %8857 = vmatmul.mubr.msk.f32.gmra.mrb[58].mxu0 %vm5670_vm3, %v11246_v62 }
 0x69f   : > { %8859 = vmatprep.mubr.msk.f32.mxu0 %vm5670_vm3, %v11253_v15 }
 0x6a2   : > { %8860 = vmatmul.mubr.msk.f32.gmra.mrb[60].mxu0 %vm5670_vm3, %v11258_v43 }
 0x6a3   : > { %8862 = vmatprep.mubr.msk.f32.mxu0 %vm5670_vm3, %v11265_v16 }
 0x6a6   : > { %8863 = vmatmul.mubr.msk.f32.gmra.mrb[62].mxu0 %vm5670_vm3, %v11270_v39 }
 0x6a7   : > { %8865 = vmatprep.mubr.msk.f32.mxu0 %vm5670_vm3, %v11277_v32 }
 0x6aa   : > { %8866 = vmatmul.mubr.msk.f32.gmra.mrb[64].mxu0 %vm5670_vm3, %v11282_v53 }
 0x6ab   : > { %8868 = vmatprep.mubr.msk.f32.mxu0 %vm5670_vm3, %v11289_v59 }
 0x6ae   : > { %8869 = vmatmul.mubr.msk.f32.gmra.mrb[66].mxu0 %vm5670_vm3, %v11294_v40 }
 0x6af   : > { %8871 = vmatprep.mubr.msk.f32.mxu0 %vm5670_vm3, %v11301_v20 }
 0x6b2   : > { %8872 = vmatmul.mubr.msk.f32.gmra.mrb[68].mxu0 %vm5670_vm3, %v11306_v11 }
 0x6b3   : > { %8874 = vmatprep.mubr.msk.f32.mxu0 %vm5670_vm3, %v11313_v24 }
 0x6b6   : > { %8875 = vmatmul.mubr.msk.f32.gmra.mrb[70].mxu0 %vm5670_vm3, %v11318_v38 }
 0x6b7   : > { %8877 = vmatprep.mubr.msk.f32.mxu0 %vm5670_vm3, %v11327_v63 }
 0x6ba   : > { %8878 = vmatmul.mubr.msk.f32.gmra.mrb[72].mxu0 %vm5670_vm3, %v11332_v56 }
 0x6bb   : > { %8880 = vmatprep.mubr.msk.f32.mxu0 %vm5670_vm3, %v11338_v22 }
 0x6be   : > { %8881 = vmatmul.mubr.msk.f32.gmra.mrb[74].mxu0 %vm5670_vm3, %v11343_v60 }
 0x6bf   : > { %8883 = vmatprep.mubr.msk.f32.mxu0 %vm5670_vm3, %v6343_v12 }
 0x6c2   : > { %8884 = vmatmul.mubr.msk.f32.gmra.mrb[76].mxu0 %vm5670_vm3, %v6344_v57 }
 0x759   : > { %v8840_v58 = vpop.f32.mrb[46].mxu0 }
 0x75a   : > { %v6713_v23 = vadd.f32 %v8840_v58, %v11495_v41  ;;  %v6514_v34 = vpop.f32.mrb[47].mxu0 }
 0x75b   : > { %v6712_v35 = vadd.f32 %v11495_v41, %v6514_v34 }
 0x75c   : > { %v6745_v14 = vmax.f32 %v6713_v23, 0.0 }
 0x75d   : > { %v6744_v36 = vmax.f32 %v6712_v35, 0.0  ;;  %v8843_v18 = vpop.f32.mrb[48].mxu0 }
 0x75e   : > { %v6715_v17 = vadd.f32 %v8843_v18, %v11495_v41  ;;  %v6524_v28 = vpop.f32.mrb[49].mxu0 }
 0x75f   : > { %v6714_v42 = vadd.f32 %v11495_v41, %v6524_v28  ;;  %8888 = vmatprep.mubr.msk.f32.mxu1 %vm2290_vm10, %v6744_v36 }
 0x760   : > { %8889 = vmatmul.mubr.msk.f32.vlgmr.msra.gmra.mrb[18].mxu1 %vm2290_vm10, %v6745_v14  ;;  %v6747_v27 = vmax.f32 %v6715_v17, 0.0 }
 0x761   : > { %v6746_v30 = vmax.f32 %v6714_v42, 0.0  ;;  %v8846_v37 = vpop.f32.mrb[50].mxu0 }
 0x762   : > { %v6717_v55 = vadd.f32 %v8846_v37, %v11495_v41  ;;  %v6534_v52 = vpop.f32.mrb[51].mxu0 }
 0x763   : > { %v6716_v62 = vadd.f32 %v11495_v41, %v6534_v52  ;;  %8891 = vmatprep.mubr.msk.f32.mxu1 %vm2290_vm10, %v6746_v30 }
 0x764   : > { %8892 = vmatmul.mubr.msk.f32.gmra.mrb[20].mxu1 %vm2290_vm10, %v6747_v27  ;;  %v6749_v16 = vmax.f32 %v6717_v55, 0.0 }
 0x765   : > { %v6748_v15 = vmax.f32 %v6716_v62, 0.0  ;;  %v8849_v43 = vpop.f32.mrb[52].mxu0 }
 0x766   : > { %v6719_v39 = vadd.f32 %v8849_v43, %v11495_v41  ;;  %v6544_v32 = vpop.f32.mrb[53].mxu0 }
 0x767   : > { %v6718_v53 = vadd.f32 %v11495_v41, %v6544_v32  ;;  %8894 = vmatprep.mubr.msk.f32.mxu1 %vm2290_vm10, %v6748_v15 }
 0x768   : > { %8895 = vmatmul.mubr.msk.f32.gmra.mrb[22].mxu1 %vm2290_vm10, %v6749_v16  ;;  %v6751_v20 = vmax.f32 %v6719_v39, 0.0 }
 0x769   : > { %v6750_v59 = vmax.f32 %v6718_v53, 0.0  ;;  %v8852_v40 = vpop.f32.mrb[54].mxu0 }
 0x76a   : > { %v6721_v11 = vadd.f32 %v8852_v40, %v11495_v41  ;;  %v6554_v24 = vpop.f32.mrb[55].mxu0 }
 0x76b   : > { %v6720_v38 = vadd.f32 %v11495_v41, %v6554_v24  ;;  %8897 = vmatprep.mubr.msk.f32.mxu1 %vm2290_vm10, %v6750_v59 }
 0x76c   : > { %8898 = vmatmul.mubr.msk.f32.gmra.mrb[24].mxu1 %vm2290_vm10, %v6751_v20  ;;  %v6753_v22 = vmax.f32 %v6721_v11, 0.0 }
 0x76d   : > { %v6752_v63 = vmax.f32 %v6720_v38, 0.0  ;;  %v8855_v56 = vpop.f32.mrb[56].mxu0 }
 0x76e   : > { %v6723_v60 = vadd.f32 %v8855_v56, %v11495_v41  ;;  %v6564_v33 = vpop.f32.mrb[57].mxu0 }
 0x76f   : > { %v6722_v0 = vadd.f32 %v11495_v41, %v6564_v33  ;;  %8900 = vmatprep.mubr.msk.f32.mxu1 %vm2290_vm10, %v6752_v63 }
 0x770   : > { %8901 = vmatmul.mubr.msk.f32.gmra.mrb[26].mxu1 %vm2290_vm10, %v6753_v22  ;;  %v6755_v13 = vmax.f32 %v6723_v60, 0.0 }
 0x771   : > { %v6754_v61 = vmax.f32 %v6722_v0, 0.0  ;;  %v8858_v19 = vpop.f32.mrb[58].mxu0 }
 0x772   : > { %v6725_v29 = vadd.f32 %v8858_v19, %v11495_v41  ;;  %v6574_v51 = vpop.f32.mrb[59].mxu0 }
 0x773   : > { %v6724_v21 = vadd.f32 %v11495_v41, %v6574_v51  ;;  %8903 = vmatprep.mubr.msk.f32.mxu1 %vm2290_vm10, %v6754_v61 }
 0x774   : > { %8904 = vmatmul.mubr.msk.f32.gmra.mrb[28].mxu1 %vm2290_vm10, %v6755_v13  ;;  %v6757_v58 = vmax.f32 %v6725_v29, 0.0 }
 0x775   : > { %v6756_v12 = vmax.f32 %v6724_v21, 0.0  ;;  %v8861_v57 = vpop.f32.mrb[60].mxu0 }
 0x776   : > { %v6727_v23 = vadd.f32 %v8861_v57, %v11495_v41  ;;  %v6584_v34 = vpop.f32.mrb[61].mxu0 }
 0x777   : > { %v6726_v35 = vadd.f32 %v11495_v41, %v6584_v34  ;;  %8906 = vmatprep.mubr.msk.f32.mxu1 %vm2290_vm10, %v6756_v12 }
 0x778   : > { %8907 = vmatmul.mubr.msk.f32.gmra.mrb[30].mxu1 %vm2290_vm10, %v6757_v58  ;;  %v6759_v14 = vmax.f32 %v6727_v23, 0.0 }
 0x779   : > { %v6758_v36 = vmax.f32 %v6726_v35, 0.0  ;;  %v8864_v18 = vpop.f32.mrb[62].mxu0 }
 0x77a   : > { %v6729_v17 = vadd.f32 %v8864_v18, %v11495_v41  ;;  %v6594_v28 = vpop.f32.mrb[63].mxu0 }
 0x77b   : > { %v6728_v42 = vadd.f32 %v11495_v41, %v6594_v28  ;;  %8909 = vmatprep.mubr.msk.f32.mxu1 %vm2290_vm10, %v6758_v36 }
 0x77c   : > { %8910 = vmatmul.mubr.msk.f32.gmra.mrb[0].mxu1 %vm2290_vm10, %v6759_v14  ;;  %v6761_v27 = vmax.f32 %v6729_v17, 0.0 }
 0x77d   : > { %v6760_v30 = vmax.f32 %v6728_v42, 0.0  ;;  %v8867_v37 = vpop.f32.mrb[64].mxu0 }
 0x77e   : > { %v6731_v55 = vadd.f32 %v8867_v37, %v11495_v41  ;;  %v6604_v52 = vpop.f32.mrb[65].mxu0 }
 0x77f   : > { %v6730_v62 = vadd.f32 %v11495_v41, %v6604_v52  ;;  %8912 = vmatprep.mubr.msk.f32.mxu1 %vm2290_vm10, %v6760_v30 }
 0x780   : > { %8913 = vmatmul.mubr.msk.f32.gmra.mrb[2].mxu1 %vm2290_vm10, %v6761_v27  ;;  %v6763_v16 = vmax.f32 %v6731_v55, 0.0  ;;  %v11564_v55 = vld [vmem:[%s11726_s8] ss:$0 sm:$0xff] }
 0x781   : > { %v6762_v15 = vmax.f32 %v6730_v62, 0.0  ;;  %v8870_v43 = vpop.f32.mrb[66].mxu0 }
 0x782   : > { %v6733_v39 = vadd.f32 %v8870_v43, %v11495_v41  ;;  %v6614_v32 = vpop.f32.mrb[67].mxu0 }
 0x783   : > { %v6732_v53 = vadd.f32 %v11495_v41, %v6614_v32  ;;  %8915 = vmatprep.mubr.msk.f32.mxu1 %vm2290_vm10, %v6762_v15 }
 0x784   : > { %8916 = vmatmul.mubr.msk.f32.gmra.mrb[4].mxu1 %vm2290_vm10, %v6763_v16  ;;  %v6765_v20 = vmax.f32 %v6733_v39, 0.0 }
 0x785   : > { %v6764_v59 = vmax.f32 %v6732_v53, 0.0  ;;  %v8873_v40 = vpop.f32.mrb[68].mxu0 }
 0x786   : > { %v6735_v11 = vadd.f32 %v8873_v40, %v11495_v41  ;;  %v6624_v24 = vpop.f32.mrb[69].mxu0 }
 0x787   : > { %v6734_v38 = vadd.f32 %v11495_v41, %v6624_v24  ;;  %8918 = vmatprep.mubr.msk.f32.mxu1 %vm2290_vm10, %v6764_v59 }
 0x788   : > { %8919 = vmatmul.mubr.msk.f32.gmra.mrb[6].mxu1 %vm2290_vm10, %v6765_v20  ;;  %v6767_v22 = vmax.f32 %v6735_v11, 0.0 }
 0x789   : > { %v6766_v63 = vmax.f32 %v6734_v38, 0.0  ;;  %v8876_v56 = vpop.f32.mrb[70].mxu0 }
 0x78a   : > { %v6737_v60 = vadd.f32 %v8876_v56, %v11495_v41  ;;  %v6634_v33 = vpop.f32.mrb[71].mxu0 }
 0x78b   : > { %v6736_v0 = vadd.f32 %v11495_v41, %v6634_v33  ;;  %8921 = vmatprep.mubr.msk.f32.mxu1 %vm2290_vm10, %v6766_v63 }
 0x78c   : > { %8922 = vmatmul.mubr.msk.f32.gmra.mrb[8].mxu1 %vm2290_vm10, %v6767_v22  ;;  %v6769_v13 = vmax.f32 %v6737_v60, 0.0 }
 0x78d   : > { %v6768_v61 = vmax.f32 %v6736_v0, 0.0  ;;  %v8879_v19 = vpop.f32.mrb[72].mxu0 }
 0x78e   : > { %v6739_v29 = vadd.f32 %v8879_v19, %v11495_v41  ;;  %v6644_v51 = vpop.f32.mrb[73].mxu0 }
 0x78f   : > { %v6738_v21 = vadd.f32 %v11495_v41, %v6644_v51  ;;  %8924 = vmatprep.mubr.msk.f32.mxu1 %vm2290_vm10, %v6768_v61  ;;  %v11800_v51 = vld [vmem:[#allocation26_spill] sm:$0xff] }
 0x790   : > { %8925 = vmatmul.mubr.msk.f32.gmra.mrb[10].mxu1 %vm2290_vm10, %v6769_v13  ;;  %v6771_v58 = vmax.f32 %v6739_v29, 0.0 }
 0x791   : > { %v6770_v12 = vmax.f32 %v6738_v21, 0.0  ;;  %v8882_v57 = vpop.f32.mrb[74].mxu0 }
 0x792   : > { %v6741_v23 = vadd.f32 %v8882_v57, %v11495_v41  ;;  %v6654_v34 = vpop.f32.mrb[75].mxu0 }
 0x793   : > { %v6740_v35 = vadd.f32 %v11495_v41, %v6654_v34  ;;  %8927 = vmatprep.mubr.msk.f32.mxu1 %vm2290_vm10, %v6770_v12 }
 0x794   : > { %8928 = vmatmul.mubr.msk.f32.gmra.mrb[12].mxu1 %vm2290_vm10, %v6771_v58  ;;  %v6773_v14 = vmax.f32 %v6741_v23, 0.0  ;;  %v11801_v58 = vld [vmem:[#allocation5_spill] sm:$0xff]  ;;  %v11802_v23 = vld [vmem:[#allocation27_spill] sm:$0xff] }
 0x795   : > { %v6772_v36 = vmax.f32 %v6740_v35, 0.0  ;;  %v8885_v18 = vpop.f32.mrb[76].mxu0  ;;  %v11803_v35 = vld [vmem:[#allocation4_spill] sm:$0xff] }
 0x796   : > { %v6743_v17 = vadd.f32 %v8885_v18, %v11495_v41  ;;  %v6664_v28 = vpop.f32.mrb[77].mxu0 }
 0x797   : > { %v6742_v42 = vadd.f32 %v11495_v41, %v6664_v28  ;;  %8930 = vmatprep.mubr.msk.f32.mxu1 %vm2290_vm10, %v6772_v36  ;;  %v11804_v36 = vld [vmem:[#allocation28_spill] sm:$0xff] }
 0x798   : > { %8931 = vmatmul.mubr.msk.f32.gmra.mrb[14].mxu1 %vm2290_vm10, %v6773_v14  ;;  %v6775_v37 = vmax.f32 %v6743_v17, 0.0 }
 0x799   : > { %v6774_v30 = vmax.f32 %v6742_v42, 0.0  ;;  %v11805_v42 = vld [vmem:[#allocation7_spill] sm:$0xff] }
 0x79b   : > { %8933 = vmatprep.mubr.msk.f32.mxu1 %vm2290_vm10, %v6774_v30 }
 0x79c   : > { %8934 = vmatmul.mubr.msk.f32.gmra.mrb[16].mxu1 %vm2290_vm10, %v6775_v37 }
 0x833   : > { %v8890_v27 = vpop.f32.mrb[18].mxu1 }
 0x834   : > { %v9010_v52 = vadd.f32 %v8890_v27, %v10446_v45  ;;  %v6942_v62 = vpop.f32.mrb[19].mxu1 }
 0x835   : > { %v9011_v41 = vadd.f32 %v6942_v62, %v10448_v46 }
 0x836   : > { %v7141_v15 = vadd.f32 %v9010_v52, %v11564_v55  ;;  %v11806_v52 = vld [vmem:[#allocation6_spill] sm:$0xff] }
 0x837   : > { %v7140_v43 = vadd.f32 %v9011_v41, %v11564_v55  ;;  %v8893_v16 = vpop.f32.mrb[20].mxu1 }
 0x838   : > { %v7173_v39 = vadd.f32 %v7141_v15, %v9472_v2  ;;  %v9012_v45 = vadd.f32 %v8893_v16, %v10452_v49  ;;  %v6952_v46 = vpop.f32.mrb[21].mxu1  ;;  %v11807_v15 = vld [vmem:[#allocation9_spill] sm:$0xff]  ;;  %v11808_v16 = vld [vmem:[#allocation8_spill] sm:$0xff] }
 0x839   : > { %v7172_v32 = vadd.f32 %v7140_v43, %v9469_v1  ;;  %v9013_v53 = vadd.f32 %v6952_v46, %v10454_v50 }
 0x83a   : > { %7205 = vst.msk [vmem:[%s11574_s23 + $0x8] sm:$0xff] %vm412_vm1, %v7173_v39  ;;  %v7143_v59 = vadd.f32 %v9012_v45, %v11564_v55 }
 0x83b   : > { %7204 = vst.msk [vmem:[%s11574_s23] sm:$0xff] %vm412_vm1, %v7172_v32  ;;  %v7142_v40 = vadd.f32 %v9013_v53, %v11564_v55  ;;  %v8896_v20 = vpop.f32.mrb[22].mxu1 }
 0x83c   : > { %v7175_v2 = vadd.f32 %v7143_v59, %v9484_v4  ;;  %v9014_v49 = vadd.f32 %v8896_v20, %v10458_v44  ;;  %v6962_v11 = vpop.f32.mrb[23].mxu1  ;;  %v11809_v59 = vld [vmem:[#allocation11_spill] sm:$0xff]  ;;  %v11810_v20 = vld [vmem:[#allocation10_spill] sm:$0xff] }
 0x83d   : > { %v7174_v1 = vadd.f32 %v7142_v40, %v9475_v3  ;;  %v9015_v50 = vadd.f32 %v6962_v11, %v10460_v54 }
 0x83e   : > { %7207 = vst.msk [vmem:[%s11574_s23 + $0x18] sm:$0xff] %vm412_vm1, %v7175_v2  ;;  %v7145_v24 = vadd.f32 %v9014_v49, %v11564_v55 }
 0x83f   : > { %7206 = vst.msk [vmem:[%s11574_s23 + $0x10] sm:$0xff] %vm412_vm1, %v7174_v1  ;;  %v7144_v38 = vadd.f32 %v9015_v50, %v11564_v55  ;;  %v8899_v63 = vpop.f32.mrb[24].mxu1 }
 0x840   : > { %v7177_v4 = vadd.f32 %v7145_v24, %v9490_v6  ;;  %v9016_v44 = vadd.f32 %v8899_v63, %v10464_v31  ;;  %v6972_v56 = vpop.f32.mrb[25].mxu1  ;;  %v11811_v24 = vld [vmem:[#allocation13_spill] sm:$0xff]  ;;  %v11812_v63 = vld [vmem:[#allocation12_spill] sm:$0xff] }
 0x841   : > { %v7176_v3 = vadd.f32 %v7144_v38, %v9487_v5  ;;  %v9017_v54 = vadd.f32 %v6972_v56, %v10466_v48 }
 0x842   : > { %7209 = vst.msk [vmem:[%s11574_s23 + $0x28] sm:$0xff] %vm412_vm1, %v7177_v4  ;;  %v7147_v22 = vadd.f32 %v9016_v44, %v11564_v55 }
 0x843   : > { %7208 = vst.msk [vmem:[%s11574_s23 + $0x20] sm:$0xff] %vm412_vm1, %v7176_v3  ;;  %v7146_v60 = vadd.f32 %v9017_v54, %v11564_v55  ;;  %v8902_v33 = vpop.f32.mrb[26].mxu1 }
 0x844   : > { %v7179_v6 = vadd.f32 %v7147_v22, %v9510_v8  ;;  %v9018_v31 = vadd.f32 %v8902_v33, %v10470_v25  ;;  %v6982_v0 = vpop.f32.mrb[27].mxu1  ;;  %v11813_v22 = vld [vmem:[#allocation15_spill] sm:$0xff]  ;;  %v11814_v33 = vld [vmem:[#allocation14_spill] sm:$0xff] }
 0x845   : > { %v7178_v5 = vadd.f32 %v7146_v60, %v9507_v7  ;;  %v9019_v48 = vadd.f32 %v6982_v0, %v10472_v26 }
 0x846   : > { %7211 = vst.msk [vmem:[%s11574_s23 + $0x38] sm:$0xff] %vm412_vm1, %v7179_v6  ;;  %v7149_v61 = vadd.f32 %v9018_v31, %v11564_v55 }
 0x847   : > { %7210 = vst.msk [vmem:[%s11574_s23 + $0x30] sm:$0xff] %vm412_vm1, %v7178_v5  ;;  %v7148_v19 = vadd.f32 %v9019_v48, %v11564_v55  ;;  %v8905_v13 = vpop.f32.mrb[28].mxu1 }
 0x848   : > { %v7181_v8 = vadd.f32 %v7149_v61, %v9528_v10  ;;  %v9020_v25 = vadd.f32 %v8905_v13, %v10476_v47  ;;  %v6992_v29 = vpop.f32.mrb[29].mxu1  ;;  %v11815_v61 = vld [vmem:[#allocation17_spill] sm:$0xff]  ;;  %v11816_v13 = vld [vmem:[#allocation16_spill] sm:$0xff] }
 0x849   : > { %v7180_v7 = vadd.f32 %v7148_v19, %v9513_v9  ;;  %v9021_v26 = vadd.f32 %v6992_v29, %v11800_v51 }
 0x84a   : > { %7213 = vst.msk [vmem:[%s11574_s23 + $0x48] sm:$0xff] %vm412_vm1, %v7181_v8  ;;  %v7151_v21 = vadd.f32 %v9020_v25, %v11564_v55 }
 0x84b   : > { %7212 = vst.msk [vmem:[%s11574_s23 + $0x40] sm:$0xff] %vm412_vm1, %v7180_v7  ;;  %v7150_v12 = vadd.f32 %v9021_v26, %v11564_v55  ;;  %v8908_v57 = vpop.f32.mrb[30].mxu1  ;;  %v11817_v26 = vld [vmem:[#allocation19_spill] sm:$0xff] }
 0x84c   : > { %v7183_v10 = vadd.f32 %v7151_v21, %v11801_v58  ;;  %v9022_v47 = vadd.f32 %v8908_v57, %v11802_v23  ;;  %v7002_v34 = vpop.f32.mrb[31].mxu1 }
 0x84d   : > { %v7182_v9 = vadd.f32 %v7150_v12, %v11803_v35  ;;  %v9023_v18 = vadd.f32 %v7002_v34, %v11804_v36  ;;  %v11818_v12 = vld [vmem:[#allocation18_spill] sm:$0xff]  ;;  %v11819_v34 = vld [vmem:[#allocation21_spill] sm:$0xff] }
 0x84e   : > { %7215 = vst.msk [vmem:[%s11574_s23 + $0x58] sm:$0xff] %vm412_vm1, %v7183_v10  ;;  %v7153_v14 = vadd.f32 %v9022_v47, %v11564_v55 }
 0x84f   : > { %7214 = vst.msk [vmem:[%s11574_s23 + $0x50] sm:$0xff] %vm412_vm1, %v7182_v9  ;;  %v7152_v17 = vadd.f32 %v9023_v18, %v11564_v55  ;;  %v8911_v28 = vpop.f32.mrb[0].mxu1  ;;  %v11820_v9 = vld [vmem:[#allocation20_spill] sm:$0xff] }
 0x850   : > { %v7185_v30 = vadd.f32 %v7153_v14, %v11805_v42  ;;  %v7155_v37 = vadd.f32 %v8911_v28, %v11564_v55  ;;  %v7012_v27 = vpop.f32.mrb[1].mxu1  ;;  %v11821_v42 = vld [vmem:[#allocation23_spill] sm:$0xff] }
 0x851   : > { %v7184_v62 = vadd.f32 %v7152_v17, %v11806_v52  ;;  %v7154_v41 = vadd.f32 %v11564_v55, %v7012_v27 }
 0x852   : > { %7217 = vst.msk [vmem:[%s11574_s23 + $0x68] sm:$0xff] %vm412_vm1, %v7185_v30  ;;  %v7187_v43 = vadd.f32 %v7155_v37, %v11807_v15  ;;  %v11822_v37 = vld [vmem:[#allocation22_spill] sm:$0xff] }
 0x853   : > { %7216 = vst.msk [vmem:[%s11574_s23 + $0x60] sm:$0xff] %vm412_vm1, %v7184_v62  ;;  %v7186_v39 = vadd.f32 %v7154_v41, %v11808_v16  ;;  %v8914_v45 = vpop.f32.mrb[2].mxu1 }
 0x854   : > { %7219 = vst.msk [vmem:[%s11574_s23 + $0x78] sm:$0xff] %vm412_vm1, %v7187_v43  ;;  %v7157_v46 = vadd.f32 %v8914_v45, %v11564_v55  ;;  %v7022_v32 = vpop.f32.mrb[3].mxu1  ;;  %v11823_v43 = vld [vmem:[#allocation25_spill] sm:$0xff] }
 0x855   : > { %7218 = vst.msk [vmem:[%s11574_s23 + $0x70] sm:$0xff] %vm412_vm1, %v7186_v39  ;;  %v7156_v53 = vadd.f32 %v11564_v55, %v7022_v32  ;;  %v11824_v39 = vld [vmem:[#allocation24_spill] sm:$0xff] }
 0x856   : > { %v7189_v40 = vadd.f32 %v7157_v46, %v11809_v59 }
 0x857   : > { %v7188_v2 = vadd.f32 %v7156_v53, %v11810_v20  ;;  %v8917_v49 = vpop.f32.mrb[4].mxu1 }
 0x858   : > { %7221 = vst.msk [vmem:[%s11574_s23 + $0x88] sm:$0xff] %vm412_vm1, %v7189_v40  ;;  %v7159_v11 = vadd.f32 %v8917_v49, %v11564_v55  ;;  %v7032_v1 = vpop.f32.mrb[5].mxu1 }
 0x859   : > { %7220 = vst.msk [vmem:[%s11574_s23 + $0x80] sm:$0xff] %vm412_vm1, %v7188_v2  ;;  %v7158_v50 = vadd.f32 %v11564_v55, %v7032_v1 }
 0x85a   : > { %v7191_v38 = vadd.f32 %v7159_v11, %v11811_v24 }
 0x85b   : > { %v7190_v4 = vadd.f32 %v7158_v50, %v11812_v63  ;;  %v8920_v44 = vpop.f32.mrb[6].mxu1 }
 0x85c   : > { %7223 = vst.msk [vmem:[%s11574_s23 + $0x98] sm:$0xff] %vm412_vm1, %v7191_v38  ;;  %v7161_v56 = vadd.f32 %v8920_v44, %v11564_v55  ;;  %v7042_v3 = vpop.f32.mrb[7].mxu1 }
 0x85d   : > { %7222 = vst.msk [vmem:[%s11574_s23 + $0x90] sm:$0xff] %vm412_vm1, %v7190_v4  ;;  %v7160_v54 = vadd.f32 %v11564_v55, %v7042_v3 }
 0x85e   : > { %v7193_v60 = vadd.f32 %v7161_v56, %v11813_v22 }
 0x85f   : > { %v7192_v6 = vadd.f32 %v7160_v54, %v11814_v33  ;;  %v8923_v31 = vpop.f32.mrb[8].mxu1 }
 0x860   : > { %7225 = vst.msk [vmem:[%s11574_s23 + $0xa8] sm:$0xff] %vm412_vm1, %v7193_v60  ;;  %v7163_v0 = vadd.f32 %v8923_v31, %v11564_v55  ;;  %v7052_v5 = vpop.f32.mrb[9].mxu1 }
 0x861   : > { %7224 = vst.msk [vmem:[%s11574_s23 + $0xa0] sm:$0xff] %vm412_vm1, %v7192_v6  ;;  %v7162_v48 = vadd.f32 %v11564_v55, %v7052_v5 }
 0x862   : > { %v7195_v19 = vadd.f32 %v7163_v0, %v11815_v61 }
 0x863   : > { %v7194_v8 = vadd.f32 %v7162_v48, %v11816_v13  ;;  %v8926_v25 = vpop.f32.mrb[10].mxu1 }
 0x864   : > { %7227 = vst.msk [vmem:[%s11574_s23 + $0xb8] sm:$0xff] %vm412_vm1, %v7195_v19  ;;  %v7165_v29 = vadd.f32 %v8926_v25, %v11564_v55  ;;  %v7062_v7 = vpop.f32.mrb[11].mxu1 }
 0x865   : > { %7226 = vst.msk [vmem:[%s11574_s23 + $0xb0] sm:$0xff] %vm412_vm1, %v7194_v8  ;;  %v7164_v51 = vadd.f32 %v11564_v55, %v7062_v7 }
 0x866   : > { %v7197_v21 = vadd.f32 %v7165_v29, %v11817_v26 }
 0x867   : > { %v7196_v57 = vadd.f32 %v7164_v51, %v11818_v12  ;;  %v8929_v58 = vpop.f32.mrb[12].mxu1 }
 0x868   : > { %7229 = vst.msk [vmem:[%s11574_s23 + $0xc8] sm:$0xff] %vm412_vm1, %v7197_v21  ;;  %v7167_v10 = vadd.f32 %v8929_v58, %v11564_v55  ;;  %v7072_v23 = vpop.f32.mrb[13].mxu1 }
 0x869   : > { %7228 = vst.msk [vmem:[%s11574_s23 + $0xc0] sm:$0xff] %vm412_vm1, %v7196_v57  ;;  %v7166_v47 = vadd.f32 %v11564_v55, %v7072_v23 }
 0x86a   : > { %v7199_v35 = vadd.f32 %v7167_v10, %v11819_v34 }
 0x86b   : > { %v7198_v36 = vadd.f32 %v7166_v47, %v11820_v9  ;;  %v8932_v18 = vpop.f32.mrb[14].mxu1 }
 0x86c   : > { %7231 = vst.msk [vmem:[%s11574_s23 + $0xd8] sm:$0xff] %vm412_vm1, %v7199_v35  ;;  %v7169_v14 = vadd.f32 %v8932_v18, %v11564_v55  ;;  %v7082_v17 = vpop.f32.mrb[15].mxu1 }
 0x86d   : > { %7230 = vst.msk [vmem:[%s11574_s23 + $0xd0] sm:$0xff] %vm412_vm1, %v7198_v36  ;;  %v7168_v28 = vadd.f32 %v11564_v55, %v7082_v17 }
 0x86e   : > { %v7201_v30 = vadd.f32 %v7169_v14, %v11821_v42 }
 0x86f   : > { %v7200_v27 = vadd.f32 %v7168_v28, %v11822_v37  ;;  %v8935_v52 = vpop.f32.mrb[16].mxu1 }
 0x870   : > { %7233 = vst.msk [vmem:[%s11574_s23 + $0xe8] sm:$0xff] %vm412_vm1, %v7201_v30  ;;  %v7171_v62 = vadd.f32 %v8935_v52, %v11564_v55  ;;  %v7092_v41 = vpop.f32.mrb[17].mxu1 }
 0x871   : > { %7232 = vst.msk [vmem:[%s11574_s23 + $0xe0] sm:$0xff] %vm412_vm1, %v7200_v27  ;;  %v7170_v15 = vadd.f32 %v11564_v55, %v7092_v41 }
 0x872   : > { %v7203_v16 = vadd.f32 %v7171_v62, %v11823_v43 }
 0x873   : > { %v7202_v45 = vadd.f32 %v7170_v15, %v11824_v39 }
 0x874   : > { %7235 = vst.msk [vmem:[%s11574_s23 + $0xf8] sm:$0xff] %vm412_vm1, %v7203_v16 }
 0x875   : > { %7234 = vst.msk [vmem:[%s11574_s23 + $0xf0] sm:$0xff] %vm412_vm1, %v7202_v45 }
 0x876 PF: > { %s19_s30 = sadd.s32 1, %s9318_s30  }
 0x877   : > { %p16_p4 = scmp.ge.s32.totalorder %s19_s30, 4  }
 0x879   :  { %18 = sbr.rel (!%p16_p4) target bundleno = 1 (0x1), region = 96 }

</bundles_post_ra>
